<compile_context>
chip_gen: v7x
topology: tpu7x:2x2x1
jax: 0.10.0
libtpu: 0.0.40
codegen_flags: <defaults>
</compile_context>

<pallas_src>
import jax
import jax.numpy as jnp
from jax.experimental import pallas as pl
from jax.experimental.pallas import tpu as pltpu

LN_EPS = 1e-5          # torch.nn.LayerNorm default
LEAKY_SLOPE = 0.01     # torch.nn.LeakyReLU default


def _layer_norm(x, g, b):
    mu = jnp.mean(x, axis=-1, keepdims=True)
    xc = x - mu
    var = jnp.mean(xc * xc, axis=-1, keepdims=True)
    return xc * jax.lax.rsqrt(var + LN_EPS) * g + b


def _leaky_relu(x):
    return jnp.where(x >= 0, x, LEAKY_SLOPE * x)


def local_extraction_kernel(x_ref, wqv_ref, wk_ref, wo_ref,
                            g_ref, be_ref, w1_ref, b1_ref, w2_ref, b2_ref,
                            ug_ref, ub_ref, uw_ref, ubb_ref, out_ref):
    TR, M, C = x_ref.shape                 # row-tile, neighborhood, channels
    rows_m = TR * M
    n_blocks, _, inner = wk_ref.shape

    def mm(a, w):
        # MXU matmul: operands in the (pre-cast) weight dtype, f32 accumulation.
        return jnp.dot(a.astype(w.dtype), w, preferred_element_type=jnp.float32)

    pts = x_ref[...].astype(jnp.float32)                       # (TR, M, C)

    for blk in range(n_blocks):                                # static unroll (blocks=3)
        # ---------------- ContextAttention ----------------
        ctx = jnp.max(pts, axis=1)                             # max-pool over M -> (TR, C)
        k = mm(ctx, wk_ref[blk])                               # (TR, inner)
        p2 = pts.reshape(rows_m, C)                            # layout-free (M % 8 == 0)
        qv = mm(p2, wqv_ref[blk])                              # fused q|v, lane-dense (rows_m, 2*inner)
        q = qv[:, :inner]
        v = qv[:, inner:]
        kb = jnp.broadcast_to(k[:, None, :],
                              (TR, M, inner)).reshape(rows_m, inner)
        # TODO(synk): evaluate bf16 sigmoid here on v6e/v7x if the EUP slot binds.
        att = jax.nn.sigmoid(kb * q) * v                       # EUP sigmoid + VPU muls
        p2 = p2 + mm(att, wo_ref[blk])                         # to_out + residual
        # ---------------- FFN ----------------
        h = _layer_norm(p2, g_ref[blk], be_ref[blk])
        h = _leaky_relu(mm(h, w1_ref[blk]) + b1_ref[blk])
        h = mm(h, w2_ref[blk]) + b2_ref[blk]
        pts = (p2 + h).reshape(TR, M, C)                       # back to 3-D for next pool

    # ------------- final pool over M + `up` head (lane-padded to >=128) -------------
    pooled = jnp.max(pts, axis=1)                              # (TR, C)
    u = _layer_norm(pooled, ug_ref[...], ub_ref[...])
    u = _leaky_relu(mm(u, uw_ref[...]) + ubb_ref[...])         # (TR, out_pad) unmasked store
    out_ref[...] = u.astype(out_ref.dtype)


def _pick_tile_rows(R, M, C, inner, out_pad, x_bytes, weight_bytes, vmem_budget, requested):
    """Rows (= B*N positions) per grid step: multiple of 8 dividing R, VMEM-budgeted,
    capped so the grid has >=2 (preferably >=4, even) steps for pipelining + megacore."""
    if requested is None:
        fixed = 2 * weight_bytes                      # resident weights are double-buffered
        per_tr = (2 * M * C * x_bytes                 # double-buffered input block
                  + 2 * out_pad * 4                   # double-buffered output block
                  + 4 * M * (4 * C + 6 * inner))      # f32 live intermediates per row
        requested = max(8, (vmem_budget - fixed) // max(per_tr, 1))
    tr = int(requested)
    if R >= 32:
        tr = min(tr, R // 4)                          # >= 4 grid steps when possible
    elif R >= 16:
        tr = min(tr, R // 2)                          # never a single, pipeline-less step
    tr = min(max(tr, 8), R)
    tr = max(8, (tr // 8) * 8)                        # sublane multiple (output block rule)
    cands = [t for t in range(tr, 7, -8) if R % t == 0]
    if not cands:
        return R                                      # no multiple-of-8 divisor: one full block
    even = [t for t in cands if (R // t) % 2 == 0]    # even step count balances the 2-TC split
    return even[0] if even else cands[0]


def local_extraction(x, params, *, tile_rows=None, mxu_dtype=jnp.bfloat16, x_hbm_dtype=None):
    """x: (B, N, M, C); params: torch-layout weights (see __main__). Returns (B, N, 2C)."""
    B, N, M, C = x.shape
    assert M % 8 == 0, "M must be a multiple of 8 for layout-free (TR,M,C)<->(TR*M,C) reshapes"
    wq = params["wq"]
    n_blocks, inner, _ = wq.shape
    out_dim = 2 * C
    out_pad = ((out_dim + 127) // 128) * 128          # lane-dense output (unmasked stores)

    cast = lambda a: a.astype(mxu_dtype)
    # Glue: pre-transpose so every in-kernel contraction is (rows, C) @ (C, out);
    # fuse Wq|Wv into one lane-dense weight; pad the `up` head to out_pad lanes.
    wqvT = cast(jnp.concatenate([jnp.transpose(wq, (0, 2, 1)),
                                 jnp.transpose(params["wv"], (0, 2, 1))], axis=-1))  # (blk, C, 2*inner)
    wkT = cast(jnp.transpose(params["wk"], (0, 2, 1)))        # (blk, C, inner)
    woT = cast(jnp.transpose(params["wo"], (0, 2, 1)))        # (blk, inner, C)
    w1T = cast(jnp.transpose(params["w1"], (0, 2, 1)))        # (blk, C, C)
    w2T = cast(jnp.transpose(params["w2"], (0, 2, 1)))
    b1 = params["b1"].reshape(n_blocks, 1, C).astype(jnp.float32)
    b2 = params["b2"].reshape(n_blocks, 1, C).astype(jnp.float32)
    g = params["ln_g"].reshape(n_blocks, 1, C).astype(jnp.float32)
    be = params["ln_b"].reshape(n_blocks, 1, C).astype(jnp.float32)
    ug = params["up_g"].reshape(1, C).astype(jnp.float32)
    ub = params["up_b"].reshape(1, C).astype(jnp.float32)
    uwT = cast(jnp.pad(params["up_w"].T, ((0, 0), (0, out_pad - out_dim))))          # (C, out_pad)
    ubb = jnp.pad(params["up_b2"], (0, out_pad - out_dim)).reshape(1, out_pad).astype(jnp.float32)

    if x_hbm_dtype is None:
        x_hbm_dtype = mxu_dtype                       # bf16 in HBM halves the dominant read
    R = B * N                                         # independent rows
    x3 = x.reshape(R, M, C).astype(x_hbm_dtype)       # (R, M, C): M-pool / broadcast stay sublane ops

    weights = (wqvT, wkT, woT, g, be, w1T, b1, w2T, b2, ug, ub, uwT, ubb)
    weight_bytes = sum(int(w.size) * w.dtype.itemsize for w in weights)

    # Generation-aware VMEM budget: ~96 MiB on v5e/v6e (128 MiB), ~48 MiB on v7x (64 MiB).
    try:
        vmem_cap = int(getattr(pltpu.get_tpu_info(), "vmem_capacity_bytes", 64 << 20))
    except Exception:
        vmem_cap = 64 << 20
    vmem_budget = (vmem_cap * 3) // 4

    TR = _pick_tile_rows(R, M, C, inner, out_pad,
                         jnp.dtype(x_hbm_dtype).itemsize, weight_bytes, vmem_budget, tile_rows)

    def _full(a):                                     # whole-array (resident) weight spec
        return pl.BlockSpec(a.shape, lambda i, nd=a.ndim: (0,) * nd)

    grid_spec = pltpu.PrefetchScalarGridSpec(
        num_scalar_prefetch=0,
        grid=(R // TR,),
        in_specs=[pl.BlockSpec((TR, M, C), lambda i: (i, 0, 0))]
                 + [_full(w) for w in weights],
        out_specs=pl.BlockSpec((TR, out_pad), lambda i: (i, 0)),
    )
    out = pl.pallas_call(
        local_extraction_kernel,
        out_shape=jax.ShapeDtypeStruct((R, out_pad), x.dtype),
        grid_spec=grid_spec,
        compiler_params=pltpu.CompilerParams(
            dimension_semantics=("parallel",),        # row tiles independent -> megacore split
            vmem_limit_bytes=int(vmem_budget),
        ),
    )(x3, *weights)
    return out[:, :out_dim].reshape(B, N, out_dim)


def reference(x, p):
    """Plain-JAX mirror of LocalExtraction.forward (for verification)."""
    pts = x
    for i in range(p["wq"].shape[0]):
        ctx = jnp.max(pts, axis=-2, keepdims=True)
        k = jnp.einsum('bnmc,ic->bnmi', ctx, p["wk"][i])
        q = jnp.einsum('bnmc,ic->bnmi', pts, p["wq"][i])
        v = jnp.einsum('bnmc,ic->bnmi', pts, p["wv"][i])
        pts = pts + jnp.einsum('bnmi,ci->bnmc', jax.nn.sigmoid(k * q) * v, p["wo"][i])
        h = _layer_norm(pts, p["ln_g"][i], p["ln_b"][i])
        h = _leaky_relu(jnp.einsum('bnmc,dc->bnmd', h, p["w1"][i]) + p["b1"][i])
        h = jnp.einsum('bnmc,dc->bnmd', h, p["w2"][i]) + p["b2"][i]
        pts = pts + h
    pooled = jnp.max(pts, axis=-2)
    u = _layer_norm(pooled, p["up_g"], p["up_b"])
    return _leaky_relu(jnp.einsum('bnc,dc->bnd', u, p["up_w"]) + p["up_b2"])


if __name__ == "__main__":
    key = jax.random.PRNGKey(0)
    B, N, M, dim, inner, blocks = 2, 8, 16, 32, 64, 3
    ks = jax.random.split(key, 16)
    x = jax.random.normal(ks[0], (B, N, M, dim), dtype=jnp.float32)
    # torch-layout weights: Conv2d/Linear store (out, in); LayerNorm affine (C,)
    params = dict(
        wq=0.1 * jax.random.normal(ks[1], (blocks, inner, dim), jnp.float32),
        wk=0.1 * jax.random.normal(ks[2], (blocks, inner, dim), jnp.float32),
        wv=0.1 * jax.random.normal(ks[3], (blocks, inner, dim), jnp.float32),
        wo=0.1 * jax.random.normal(ks[4], (blocks, dim, inner), jnp.float32),
        ln_g=1.0 + 0.1 * jax.random.normal(ks[5], (blocks, dim), jnp.float32),
        ln_b=0.1 * jax.random.normal(ks[6], (blocks, dim), jnp.float32),
        w1=0.1 * jax.random.normal(ks[7], (blocks, dim, dim), jnp.float32),
        b1=0.1 * jax.random.normal(ks[8], (blocks, dim), jnp.float32),
        w2=0.1 * jax.random.normal(ks[9], (blocks, dim, dim), jnp.float32),
        b2=0.1 * jax.random.normal(ks[10], (blocks, dim), jnp.float32),
        up_g=1.0 + 0.1 * jax.random.normal(ks[11], (dim,), jnp.float32),
        up_b=0.1 * jax.random.normal(ks[12], (dim,), jnp.float32),
        up_w=0.1 * jax.random.normal(ks[13], (2 * dim, dim), jnp.float32),
        up_b2=0.1 * jax.random.normal(ks[14], (2 * dim,), jnp.float32),
    )

    ref = reference(x, params)

    # 1) f32 MXU path (tile_rows=8 -> 2 grid steps): exact-semantics check.
    out32 = jax.block_until_ready(
        local_extraction(x, params, tile_rows=8, mxu_dtype=jnp.float32))
    assert out32.shape == (B, N, 2 * dim)
    assert jnp.allclose(out32, ref, atol=2e-3, rtol=2e-3), float(jnp.max(jnp.abs(out32 - ref)))

    # 2) default fast path: bf16 MXU operands + bf16 x in HBM (f32 accumulation) — loose tolerance.
    out_bf = jax.block_until_ready(local_extraction(x, params, tile_rows=8))
    assert out_bf.shape == (B, N, 2 * dim)
    rel = float(jnp.linalg.norm(out_bf - ref) / jnp.linalg.norm(ref))
    assert rel < 8e-2, rel

    print("KERNEL_OK")
</pallas_src>

<mosaic_0001>
module attributes {stable_mosaic.version = 11 : i64} {
  func.func @local_extraction_kernel(%arg0: i32, %arg1: memref<8x16x32xf32, #tpu.memory_space<vmem>>, %arg2: memref<3x32x128xf32, #tpu.memory_space<vmem>>, %arg3: memref<3x32x64xf32, #tpu.memory_space<vmem>>, %arg4: memref<3x64x32xf32, #tpu.memory_space<vmem>>, %arg5: memref<3x1x32xf32, #tpu.memory_space<vmem>>, %arg6: memref<3x1x32xf32, #tpu.memory_space<vmem>>, %arg7: memref<3x32x32xf32, #tpu.memory_space<vmem>>, %arg8: memref<3x1x32xf32, #tpu.memory_space<vmem>>, %arg9: memref<3x32x32xf32, #tpu.memory_space<vmem>>, %arg10: memref<3x1x32xf32, #tpu.memory_space<vmem>>, %arg11: memref<1x32xf32, #tpu.memory_space<vmem>>, %arg12: memref<1x32xf32, #tpu.memory_space<vmem>>, %arg13: memref<32x128xf32, #tpu.memory_space<vmem>>, %arg14: memref<1x128xf32, #tpu.memory_space<vmem>>, %arg15: memref<8x128xf32, #tpu.memory_space<vmem>>) attributes {dimension_semantics = [#tpu.dimension_semantics<parallel>], iteration_bounds = array<i64: 2>, scalar_prefetch = 0 : i64, scratch_operands = 0 : i64, tpu.core_type = #tpu.core_type<tc>, window_params = [{transform_indices = @transform_0, window_bounds = array<i64: 8, 16, 32>}, {pipeline_mode = #tpu.pipeline_mode<synchronous>, transform_indices = @transform_1, window_bounds = array<i64: 3, 32, 128>}, {pipeline_mode = #tpu.pipeline_mode<synchronous>, transform_indices = @transform_2, window_bounds = array<i64: 3, 32, 64>}, {pipeline_mode = #tpu.pipeline_mode<synchronous>, transform_indices = @transform_3, window_bounds = array<i64: 3, 64, 32>}, {pipeline_mode = #tpu.pipeline_mode<synchronous>, transform_indices = @transform_4, window_bounds = array<i64: 3, 1, 32>}, {pipeline_mode = #tpu.pipeline_mode<synchronous>, transform_indices = @transform_5, window_bounds = array<i64: 3, 1, 32>}, {pipeline_mode = #tpu.pipeline_mode<synchronous>, transform_indices = @transform_6, window_bounds = array<i64: 3, 32, 32>}, {pipeline_mode = #tpu.pipeline_mode<synchronous>, transform_indices = @transform_7, window_bounds = array<i64: 3, 1, 32>}, {pipeline_mode = #tpu.pipeline_mode<synchronous>, transform_indices = @transform_8, window_bounds = array<i64: 3, 32, 32>}, {pipeline_mode = #tpu.pipeline_mode<synchronous>, transform_indices = @transform_9, window_bounds = array<i64: 3, 1, 32>}, {pipeline_mode = #tpu.pipeline_mode<synchronous>, transform_indices = @transform_10, window_bounds = array<i64: 1, 32>}, {pipeline_mode = #tpu.pipeline_mode<synchronous>, transform_indices = @transform_11, window_bounds = array<i64: 1, 32>}, {pipeline_mode = #tpu.pipeline_mode<synchronous>, transform_indices = @transform_12, window_bounds = array<i64: 32, 128>}, {pipeline_mode = #tpu.pipeline_mode<synchronous>, transform_indices = @transform_13, window_bounds = array<i64: 1, 128>}, {transform_indices = @transform_14, window_bounds = array<i64: 8, 128>}]} {
    %c0 = arith.constant 0 : index
    %c0_0 = arith.constant 0 : index
    %c0_1 = arith.constant 0 : index
    %0 = vector.load %arg1[%c0, %c0_0, %c0_1] : memref<8x16x32xf32, #tpu.memory_space<vmem>>, vector<8x16x32xf32>
    %cst = arith.constant dense<0xFF800000> : vector<8x32xf32>
    %1 = vector.multi_reduction <maximumf>, %0, %cst [1] : vector<8x16x32xf32> to vector<8x32xf32>
    %c0_2 = arith.constant 0 : index
    %c0_3 = arith.constant 0 : index
    %c0_4 = arith.constant 0 : index
    %2 = vector.load %arg3[%c0_2, %c0_3, %c0_4] : memref<3x32x64xf32, #tpu.memory_space<vmem>>, vector<1x32x64xf32>
    %3 = vector.shape_cast %2 : vector<1x32x64xf32> to vector<32x64xf32>
    %cst_5 = arith.constant dense<0.000000e+00> : vector<8x64xf32>
    %4 = tpu.matmul %1, %3, %cst_5 {dimension_numbers = #tpu.dot_dimension_numbers<[1], [0], [0], [1], [0, 0, 1, 1], [], []>} : vector<8x32xf32>, vector<32x64xf32>, vector<8x64xf32> -> vector<8x64xf32>
    %5 = vector.shape_cast %0 : vector<8x16x32xf32> to vector<128x32xf32>
    %c0_6 = arith.constant 0 : index
    %c0_7 = arith.constant 0 : index
    %c0_8 = arith.constant 0 : index
    %6 = vector.load %arg2[%c0_6, %c0_7, %c0_8] : memref<3x32x128xf32, #tpu.memory_space<vmem>>, vector<1x32x128xf32>
    %7 = vector.shape_cast %6 : vector<1x32x128xf32> to vector<32x128xf32>
    %cst_9 = arith.constant dense<0.000000e+00> : vector<128x128xf32>
    %8 = tpu.matmul %5, %7, %cst_9 {dimension_numbers = #tpu.dot_dimension_numbers<[1], [0], [0], [1], [0, 0, 1, 1], [], []>} : vector<128x32xf32>, vector<32x128xf32>, vector<128x128xf32> -> vector<128x128xf32>
    %9 = vector.extract_strided_slice %8 {offsets = [0, 0], sizes = [128, 64], strides = [1, 1]} : vector<128x128xf32> to vector<128x64xf32>
    %10 = vector.extract_strided_slice %8 {offsets = [0, 64], sizes = [128, 64], strides = [1, 1]} : vector<128x128xf32> to vector<128x64xf32>
    %11 = vector.shape_cast %4 : vector<8x64xf32> to vector<8x1x64xf32>
    %12 = vector.shape_cast %11 : vector<8x1x64xf32> to vector<8x1x64xf32>
    %13 = vector.broadcast %12 : vector<8x1x64xf32> to vector<8x16x64xf32>
    %14 = vector.shape_cast %13 : vector<8x16x64xf32> to vector<128x64xf32>
    %15 = arith.mulf %14, %9 : vector<128x64xf32>
    %16 = arith.negf %15 : vector<128x64xf32>
    %17 = math.exp %16 : vector<128x64xf32>
    %cst_10 = arith.constant 1.000000e+00 : f32
    %18 = vector.broadcast %cst_10 : f32 to vector<128x64xf32>
    %19 = arith.addf %18, %17 : vector<128x64xf32>
    %20 = arith.divf %18, %19 : vector<128x64xf32>
    %21 = arith.mulf %20, %10 : vector<128x64xf32>
    %c0_11 = arith.constant 0 : index
    %c0_12 = arith.constant 0 : index
    %c0_13 = arith.constant 0 : index
    %22 = vector.load %arg4[%c0_11, %c0_12, %c0_13] : memref<3x64x32xf32, #tpu.memory_space<vmem>>, vector<1x64x32xf32>
    %23 = vector.shape_cast %22 : vector<1x64x32xf32> to vector<64x32xf32>
    %cst_14 = arith.constant dense<0.000000e+00> : vector<128x32xf32>
    %24 = tpu.matmul %21, %23, %cst_14 {dimension_numbers = #tpu.dot_dimension_numbers<[1], [0], [0], [1], [0, 0, 1, 1], [], []>} : vector<128x64xf32>, vector<64x32xf32>, vector<128x32xf32> -> vector<128x32xf32>
    %25 = arith.addf %5, %24 : vector<128x32xf32>
    %c0_15 = arith.constant 0 : index
    %c0_16 = arith.constant 0 : index
    %c0_17 = arith.constant 0 : index
    %26 = vector.load %arg5[%c0_15, %c0_16, %c0_17] : memref<3x1x32xf32, #tpu.memory_space<vmem>>, vector<1x1x32xf32>
    %27 = vector.shape_cast %26 : vector<1x1x32xf32> to vector<1x32xf32>
    %c0_18 = arith.constant 0 : index
    %c0_19 = arith.constant 0 : index
    %c0_20 = arith.constant 0 : index
    %28 = vector.load %arg6[%c0_18, %c0_19, %c0_20] : memref<3x1x32xf32, #tpu.memory_space<vmem>>, vector<1x1x32xf32>
    %29 = vector.shape_cast %28 : vector<1x1x32xf32> to vector<1x32xf32>
    %cst_21 = arith.constant dense<0.000000e+00> : vector<128xf32>
    %30 = vector.multi_reduction <add>, %25, %cst_21 [1] : vector<128x32xf32> to vector<128xf32>
    %31 = vector.shape_cast %30 : vector<128xf32> to vector<128x1xf32>
    %cst_22 = arith.constant 3.200000e+01 : f32
    %32 = vector.broadcast %cst_22 : f32 to vector<128x1xf32>
    %33 = arith.divf %31, %32 : vector<128x1xf32>
    %34 = vector.broadcast %33 : vector<128x1xf32> to vector<128x32xf32>
    %35 = arith.subf %25, %34 : vector<128x32xf32>
    %36 = arith.mulf %35, %35 : vector<128x32xf32>
    %cst_23 = arith.constant dense<0.000000e+00> : vector<128xf32>
    %37 = vector.multi_reduction <add>, %36, %cst_23 [1] : vector<128x32xf32> to vector<128xf32>
    %38 = vector.shape_cast %37 : vector<128xf32> to vector<128x1xf32>
    %cst_24 = arith.constant 3.200000e+01 : f32
    %39 = vector.broadcast %cst_24 : f32 to vector<128x1xf32>
    %40 = arith.divf %38, %39 : vector<128x1xf32>
    %cst_25 = arith.constant 9.99999974E-6 : f32
    %41 = vector.broadcast %cst_25 : f32 to vector<128x1xf32>
    %42 = arith.addf %40, %41 : vector<128x1xf32>
    %43 = math.rsqrt %42 : vector<128x1xf32>
    %44 = vector.broadcast %43 : vector<128x1xf32> to vector<128x32xf32>
    %45 = arith.mulf %35, %44 : vector<128x32xf32>
    %46 = vector.broadcast %27 : vector<1x32xf32> to vector<128x32xf32>
    %47 = arith.mulf %45, %46 : vector<128x32xf32>
    %48 = vector.broadcast %29 : vector<1x32xf32> to vector<128x32xf32>
    %49 = arith.addf %47, %48 : vector<128x32xf32>
    %c0_26 = arith.constant 0 : index
    %c0_27 = arith.constant 0 : index
    %c0_28 = arith.constant 0 : index
    %50 = vector.load %arg7[%c0_26, %c0_27, %c0_28] : memref<3x32x32xf32, #tpu.memory_space<vmem>>, vector<1x32x32xf32>
    %51 = vector.shape_cast %50 : vector<1x32x32xf32> to vector<32x32xf32>
    %cst_29 = arith.constant dense<0.000000e+00> : vector<128x32xf32>
    %52 = tpu.matmul %49, %51, %cst_29 {dimension_numbers = #tpu.dot_dimension_numbers<[1], [0], [0], [1], [0, 0, 1, 1], [], []>} : vector<128x32xf32>, vector<32x32xf32>, vector<128x32xf32> -> vector<128x32xf32>
    %c0_30 = arith.constant 0 : index
    %c0_31 = arith.constant 0 : index
    %c0_32 = arith.constant 0 : index
    %53 = vector.load %arg8[%c0_30, %c0_31, %c0_32] : memref<3x1x32xf32, #tpu.memory_space<vmem>>, vector<1x1x32xf32>
    %54 = vector.shape_cast %53 : vector<1x1x32xf32> to vector<1x32xf32>
    %55 = vector.broadcast %54 : vector<1x32xf32> to vector<128x32xf32>
    %56 = arith.addf %52, %55 : vector<128x32xf32>
    %cst_33 = arith.constant 0.000000e+00 : f32
    %57 = vector.broadcast %cst_33 : f32 to vector<128x32xf32>
    %58 = arith.cmpf oge, %56, %57 : vector<128x32xf32>
    %cst_34 = arith.constant 0.00999999977 : f32
    %59 = vector.broadcast %cst_34 : f32 to vector<128x32xf32>
    %60 = arith.mulf %59, %56 : vector<128x32xf32>
    %61 = arith.select %58, %56, %60 : vector<128x32xi1>, vector<128x32xf32>
    %c0_35 = arith.constant 0 : index
    %c0_36 = arith.constant 0 : index
    %c0_37 = arith.constant 0 : index
    %62 = vector.load %arg9[%c0_35, %c0_36, %c0_37] : memref<3x32x32xf32, #tpu.memory_space<vmem>>, vector<1x32x32xf32>
    %63 = vector.shape_cast %62 : vector<1x32x32xf32> to vector<32x32xf32>
    %cst_38 = arith.constant dense<0.000000e+00> : vector<128x32xf32>
    %64 = tpu.matmul %61, %63, %cst_38 {dimension_numbers = #tpu.dot_dimension_numbers<[1], [0], [0], [1], [0, 0, 1, 1], [], []>} : vector<128x32xf32>, vector<32x32xf32>, vector<128x32xf32> -> vector<128x32xf32>
    %c0_39 = arith.constant 0 : index
    %c0_40 = arith.constant 0 : index
    %c0_41 = arith.constant 0 : index
    %65 = vector.load %arg10[%c0_39, %c0_40, %c0_41] : memref<3x1x32xf32, #tpu.memory_space<vmem>>, vector<1x1x32xf32>
    %66 = vector.shape_cast %65 : vector<1x1x32xf32> to vector<1x32xf32>
    %67 = vector.broadcast %66 : vector<1x32xf32> to vector<128x32xf32>
    %68 = arith.addf %64, %67 : vector<128x32xf32>
    %69 = arith.addf %25, %68 : vector<128x32xf32>
    %70 = vector.shape_cast %69 : vector<128x32xf32> to vector<8x16x32xf32>
    %cst_42 = arith.constant dense<0xFF800000> : vector<8x32xf32>
    %71 = vector.multi_reduction <maximumf>, %70, %cst_42 [1] : vector<8x16x32xf32> to vector<8x32xf32>
    %c1 = arith.constant 1 : index
    %c0_43 = arith.constant 0 : index
    %c0_44 = arith.constant 0 : index
    %72 = vector.load %arg3[%c1, %c0_43, %c0_44] : memref<3x32x64xf32, #tpu.memory_space<vmem>>, vector<1x32x64xf32>
    %73 = vector.shape_cast %72 : vector<1x32x64xf32> to vector<32x64xf32>
    %cst_45 = arith.constant dense<0.000000e+00> : vector<8x64xf32>
    %74 = tpu.matmul %71, %73, %cst_45 {dimension_numbers = #tpu.dot_dimension_numbers<[1], [0], [0], [1], [0, 0, 1, 1], [], []>} : vector<8x32xf32>, vector<32x64xf32>, vector<8x64xf32> -> vector<8x64xf32>
    %75 = vector.shape_cast %70 : vector<8x16x32xf32> to vector<128x32xf32>
    %c1_46 = arith.constant 1 : index
    %c0_47 = arith.constant 0 : index
    %c0_48 = arith.constant 0 : index
    %76 = vector.load %arg2[%c1_46, %c0_47, %c0_48] : memref<3x32x128xf32, #tpu.memory_space<vmem>>, vector<1x32x128xf32>
    %77 = vector.shape_cast %76 : vector<1x32x128xf32> to vector<32x128xf32>
    %cst_49 = arith.constant dense<0.000000e+00> : vector<128x128xf32>
    %78 = tpu.matmul %75, %77, %cst_49 {dimension_numbers = #tpu.dot_dimension_numbers<[1], [0], [0], [1], [0, 0, 1, 1], [], []>} : vector<128x32xf32>, vector<32x128xf32>, vector<128x128xf32> -> vector<128x128xf32>
    %79 = vector.extract_strided_slice %78 {offsets = [0, 0], sizes = [128, 64], strides = [1, 1]} : vector<128x128xf32> to vector<128x64xf32>
    %80 = vector.extract_strided_slice %78 {offsets = [0, 64], sizes = [128, 64], strides = [1, 1]} : vector<128x128xf32> to vector<128x64xf32>
    %81 = vector.shape_cast %74 : vector<8x64xf32> to vector<8x1x64xf32>
    %82 = vector.shape_cast %81 : vector<8x1x64xf32> to vector<8x1x64xf32>
    %83 = vector.broadcast %82 : vector<8x1x64xf32> to vector<8x16x64xf32>
    %84 = vector.shape_cast %83 : vector<8x16x64xf32> to vector<128x64xf32>
    %85 = arith.mulf %84, %79 : vector<128x64xf32>
    %86 = arith.negf %85 : vector<128x64xf32>
    %87 = math.exp %86 : vector<128x64xf32>
    %cst_50 = arith.constant 1.000000e+00 : f32
    %88 = vector.broadcast %cst_50 : f32 to vector<128x64xf32>
    %89 = arith.addf %88, %87 : vector<128x64xf32>
    %90 = arith.divf %88, %89 : vector<128x64xf32>
    %91 = arith.mulf %90, %80 : vector<128x64xf32>
    %c1_51 = arith.constant 1 : index
    %c0_52 = arith.constant 0 : index
    %c0_53 = arith.constant 0 : index
    %92 = vector.load %arg4[%c1_51, %c0_52, %c0_53] : memref<3x64x32xf32, #tpu.memory_space<vmem>>, vector<1x64x32xf32>
    %93 = vector.shape_cast %92 : vector<1x64x32xf32> to vector<64x32xf32>
    %cst_54 = arith.constant dense<0.000000e+00> : vector<128x32xf32>
    %94 = tpu.matmul %91, %93, %cst_54 {dimension_numbers = #tpu.dot_dimension_numbers<[1], [0], [0], [1], [0, 0, 1, 1], [], []>} : vector<128x64xf32>, vector<64x32xf32>, vector<128x32xf32> -> vector<128x32xf32>
    %95 = arith.addf %75, %94 : vector<128x32xf32>
    %c1_55 = arith.constant 1 : index
    %c0_56 = arith.constant 0 : index
    %c0_57 = arith.constant 0 : index
    %96 = vector.load %arg5[%c1_55, %c0_56, %c0_57] : memref<3x1x32xf32, #tpu.memory_space<vmem>>, vector<1x1x32xf32>
    %97 = vector.shape_cast %96 : vector<1x1x32xf32> to vector<1x32xf32>
    %c1_58 = arith.constant 1 : index
    %c0_59 = arith.constant 0 : index
    %c0_60 = arith.constant 0 : index
    %98 = vector.load %arg6[%c1_58, %c0_59, %c0_60] : memref<3x1x32xf32, #tpu.memory_space<vmem>>, vector<1x1x32xf32>
    %99 = vector.shape_cast %98 : vector<1x1x32xf32> to vector<1x32xf32>
    %cst_61 = arith.constant dense<0.000000e+00> : vector<128xf32>
    %100 = vector.multi_reduction <add>, %95, %cst_61 [1] : vector<128x32xf32> to vector<128xf32>
    %101 = vector.shape_cast %100 : vector<128xf32> to vector<128x1xf32>
    %cst_62 = arith.constant 3.200000e+01 : f32
    %102 = vector.broadcast %cst_62 : f32 to vector<128x1xf32>
    %103 = arith.divf %101, %102 : vector<128x1xf32>
    %104 = vector.broadcast %103 : vector<128x1xf32> to vector<128x32xf32>
    %105 = arith.subf %95, %104 : vector<128x32xf32>
    %106 = arith.mulf %105, %105 : vector<128x32xf32>
    %cst_63 = arith.constant dense<0.000000e+00> : vector<128xf32>
    %107 = vector.multi_reduction <add>, %106, %cst_63 [1] : vector<128x32xf32> to vector<128xf32>
    %108 = vector.shape_cast %107 : vector<128xf32> to vector<128x1xf32>
    %cst_64 = arith.constant 3.200000e+01 : f32
    %109 = vector.broadcast %cst_64 : f32 to vector<128x1xf32>
    %110 = arith.divf %108, %109 : vector<128x1xf32>
    %cst_65 = arith.constant 9.99999974E-6 : f32
    %111 = vector.broadcast %cst_65 : f32 to vector<128x1xf32>
    %112 = arith.addf %110, %111 : vector<128x1xf32>
    %113 = math.rsqrt %112 : vector<128x1xf32>
    %114 = vector.broadcast %113 : vector<128x1xf32> to vector<128x32xf32>
    %115 = arith.mulf %105, %114 : vector<128x32xf32>
    %116 = vector.broadcast %97 : vector<1x32xf32> to vector<128x32xf32>
    %117 = arith.mulf %115, %116 : vector<128x32xf32>
    %118 = vector.broadcast %99 : vector<1x32xf32> to vector<128x32xf32>
    %119 = arith.addf %117, %118 : vector<128x32xf32>
    %c1_66 = arith.constant 1 : index
    %c0_67 = arith.constant 0 : index
    %c0_68 = arith.constant 0 : index
    %120 = vector.load %arg7[%c1_66, %c0_67, %c0_68] : memref<3x32x32xf32, #tpu.memory_space<vmem>>, vector<1x32x32xf32>
    %121 = vector.shape_cast %120 : vector<1x32x32xf32> to vector<32x32xf32>
    %cst_69 = arith.constant dense<0.000000e+00> : vector<128x32xf32>
    %122 = tpu.matmul %119, %121, %cst_69 {dimension_numbers = #tpu.dot_dimension_numbers<[1], [0], [0], [1], [0, 0, 1, 1], [], []>} : vector<128x32xf32>, vector<32x32xf32>, vector<128x32xf32> -> vector<128x32xf32>
    %c1_70 = arith.constant 1 : index
    %c0_71 = arith.constant 0 : index
    %c0_72 = arith.constant 0 : index
    %123 = vector.load %arg8[%c1_70, %c0_71, %c0_72] : memref<3x1x32xf32, #tpu.memory_space<vmem>>, vector<1x1x32xf32>
    %124 = vector.shape_cast %123 : vector<1x1x32xf32> to vector<1x32xf32>
    %125 = vector.broadcast %124 : vector<1x32xf32> to vector<128x32xf32>
    %126 = arith.addf %122, %125 : vector<128x32xf32>
    %cst_73 = arith.constant 0.000000e+00 : f32
    %127 = vector.broadcast %cst_73 : f32 to vector<128x32xf32>
    %128 = arith.cmpf oge, %126, %127 : vector<128x32xf32>
    %cst_74 = arith.constant 0.00999999977 : f32
    %129 = vector.broadcast %cst_74 : f32 to vector<128x32xf32>
    %130 = arith.mulf %129, %126 : vector<128x32xf32>
    %131 = arith.select %128, %126, %130 : vector<128x32xi1>, vector<128x32xf32>
    %c1_75 = arith.constant 1 : index
    %c0_76 = arith.constant 0 : index
    %c0_77 = arith.constant 0 : index
    %132 = vector.load %arg9[%c1_75, %c0_76, %c0_77] : memref<3x32x32xf32, #tpu.memory_space<vmem>>, vector<1x32x32xf32>
    %133 = vector.shape_cast %132 : vector<1x32x32xf32> to vector<32x32xf32>
    %cst_78 = arith.constant dense<0.000000e+00> : vector<128x32xf32>
    %134 = tpu.matmul %131, %133, %cst_78 {dimension_numbers = #tpu.dot_dimension_numbers<[1], [0], [0], [1], [0, 0, 1, 1], [], []>} : vector<128x32xf32>, vector<32x32xf32>, vector<128x32xf32> -> vector<128x32xf32>
    %c1_79 = arith.constant 1 : index
    %c0_80 = arith.constant 0 : index
    %c0_81 = arith.constant 0 : index
    %135 = vector.load %arg10[%c1_79, %c0_80, %c0_81] : memref<3x1x32xf32, #tpu.memory_space<vmem>>, vector<1x1x32xf32>
    %136 = vector.shape_cast %135 : vector<1x1x32xf32> to vector<1x32xf32>
    %137 = vector.broadcast %136 : vector<1x32xf32> to vector<128x32xf32>
    %138 = arith.addf %134, %137 : vector<128x32xf32>
    %139 = arith.addf %95, %138 : vector<128x32xf32>
    %140 = vector.shape_cast %139 : vector<128x32xf32> to vector<8x16x32xf32>
    %cst_82 = arith.constant dense<0xFF800000> : vector<8x32xf32>
    %141 = vector.multi_reduction <maximumf>, %140, %cst_82 [1] : vector<8x16x32xf32> to vector<8x32xf32>
    %c2 = arith.constant 2 : index
    %c0_83 = arith.constant 0 : index
    %c0_84 = arith.constant 0 : index
    %142 = vector.load %arg3[%c2, %c0_83, %c0_84] : memref<3x32x64xf32, #tpu.memory_space<vmem>>, vector<1x32x64xf32>
    %143 = vector.shape_cast %142 : vector<1x32x64xf32> to vector<32x64xf32>
    %cst_85 = arith.constant dense<0.000000e+00> : vector<8x64xf32>
    %144 = tpu.matmul %141, %143, %cst_85 {dimension_numbers = #tpu.dot_dimension_numbers<[1], [0], [0], [1], [0, 0, 1, 1], [], []>} : vector<8x32xf32>, vector<32x64xf32>, vector<8x64xf32> -> vector<8x64xf32>
    %145 = vector.shape_cast %140 : vector<8x16x32xf32> to vector<128x32xf32>
    %c2_86 = arith.constant 2 : index
    %c0_87 = arith.constant 0 : index
    %c0_88 = arith.constant 0 : index
    %146 = vector.load %arg2[%c2_86, %c0_87, %c0_88] : memref<3x32x128xf32, #tpu.memory_space<vmem>>, vector<1x32x128xf32>
    %147 = vector.shape_cast %146 : vector<1x32x128xf32> to vector<32x128xf32>
    %cst_89 = arith.constant dense<0.000000e+00> : vector<128x128xf32>
    %148 = tpu.matmul %145, %147, %cst_89 {dimension_numbers = #tpu.dot_dimension_numbers<[1], [0], [0], [1], [0, 0, 1, 1], [], []>} : vector<128x32xf32>, vector<32x128xf32>, vector<128x128xf32> -> vector<128x128xf32>
    %149 = vector.extract_strided_slice %148 {offsets = [0, 0], sizes = [128, 64], strides = [1, 1]} : vector<128x128xf32> to vector<128x64xf32>
    %150 = vector.extract_strided_slice %148 {offsets = [0, 64], sizes = [128, 64], strides = [1, 1]} : vector<128x128xf32> to vector<128x64xf32>
    %151 = vector.shape_cast %144 : vector<8x64xf32> to vector<8x1x64xf32>
    %152 = vector.shape_cast %151 : vector<8x1x64xf32> to vector<8x1x64xf32>
    %153 = vector.broadcast %152 : vector<8x1x64xf32> to vector<8x16x64xf32>
    %154 = vector.shape_cast %153 : vector<8x16x64xf32> to vector<128x64xf32>
    %155 = arith.mulf %154, %149 : vector<128x64xf32>
    %156 = arith.negf %155 : vector<128x64xf32>
    %157 = math.exp %156 : vector<128x64xf32>
    %cst_90 = arith.constant 1.000000e+00 : f32
    %158 = vector.broadcast %cst_90 : f32 to vector<128x64xf32>
    %159 = arith.addf %158, %157 : vector<128x64xf32>
    %160 = arith.divf %158, %159 : vector<128x64xf32>
    %161 = arith.mulf %160, %150 : vector<128x64xf32>
    %c2_91 = arith.constant 2 : index
    %c0_92 = arith.constant 0 : index
    %c0_93 = arith.constant 0 : index
    %162 = vector.load %arg4[%c2_91, %c0_92, %c0_93] : memref<3x64x32xf32, #tpu.memory_space<vmem>>, vector<1x64x32xf32>
    %163 = vector.shape_cast %162 : vector<1x64x32xf32> to vector<64x32xf32>
    %cst_94 = arith.constant dense<0.000000e+00> : vector<128x32xf32>
    %164 = tpu.matmul %161, %163, %cst_94 {dimension_numbers = #tpu.dot_dimension_numbers<[1], [0], [0], [1], [0, 0, 1, 1], [], []>} : vector<128x64xf32>, vector<64x32xf32>, vector<128x32xf32> -> vector<128x32xf32>
    %165 = arith.addf %145, %164 : vector<128x32xf32>
    %c2_95 = arith.constant 2 : index
    %c0_96 = arith.constant 0 : index
    %c0_97 = arith.constant 0 : index
    %166 = vector.load %arg5[%c2_95, %c0_96, %c0_97] : memref<3x1x32xf32, #tpu.memory_space<vmem>>, vector<1x1x32xf32>
    %167 = vector.shape_cast %166 : vector<1x1x32xf32> to vector<1x32xf32>
    %c2_98 = arith.constant 2 : index
    %c0_99 = arith.constant 0 : index
    %c0_100 = arith.constant 0 : index
    %168 = vector.load %arg6[%c2_98, %c0_99, %c0_100] : memref<3x1x32xf32, #tpu.memory_space<vmem>>, vector<1x1x32xf32>
    %169 = vector.shape_cast %168 : vector<1x1x32xf32> to vector<1x32xf32>
    %cst_101 = arith.constant dense<0.000000e+00> : vector<128xf32>
    %170 = vector.multi_reduction <add>, %165, %cst_101 [1] : vector<128x32xf32> to vector<128xf32>
    %171 = vector.shape_cast %170 : vector<128xf32> to vector<128x1xf32>
    %cst_102 = arith.constant 3.200000e+01 : f32
    %172 = vector.broadcast %cst_102 : f32 to vector<128x1xf32>
    %173 = arith.divf %171, %172 : vector<128x1xf32>
    %174 = vector.broadcast %173 : vector<128x1xf32> to vector<128x32xf32>
    %175 = arith.subf %165, %174 : vector<128x32xf32>
    %176 = arith.mulf %175, %175 : vector<128x32xf32>
    %cst_103 = arith.constant dense<0.000000e+00> : vector<128xf32>
    %177 = vector.multi_reduction <add>, %176, %cst_103 [1] : vector<128x32xf32> to vector<128xf32>
    %178 = vector.shape_cast %177 : vector<128xf32> to vector<128x1xf32>
    %cst_104 = arith.constant 3.200000e+01 : f32
    %179 = vector.broadcast %cst_104 : f32 to vector<128x1xf32>
    %180 = arith.divf %178, %179 : vector<128x1xf32>
    %cst_105 = arith.constant 9.99999974E-6 : f32
    %181 = vector.broadcast %cst_105 : f32 to vector<128x1xf32>
    %182 = arith.addf %180, %181 : vector<128x1xf32>
    %183 = math.rsqrt %182 : vector<128x1xf32>
    %184 = vector.broadcast %183 : vector<128x1xf32> to vector<128x32xf32>
    %185 = arith.mulf %175, %184 : vector<128x32xf32>
    %186 = vector.broadcast %167 : vector<1x32xf32> to vector<128x32xf32>
    %187 = arith.mulf %185, %186 : vector<128x32xf32>
    %188 = vector.broadcast %169 : vector<1x32xf32> to vector<128x32xf32>
    %189 = arith.addf %187, %188 : vector<128x32xf32>
    %c2_106 = arith.constant 2 : index
    %c0_107 = arith.constant 0 : index
    %c0_108 = arith.constant 0 : index
    %190 = vector.load %arg7[%c2_106, %c0_107, %c0_108] : memref<3x32x32xf32, #tpu.memory_space<vmem>>, vector<1x32x32xf32>
    %191 = vector.shape_cast %190 : vector<1x32x32xf32> to vector<32x32xf32>
    %cst_109 = arith.constant dense<0.000000e+00> : vector<128x32xf32>
    %192 = tpu.matmul %189, %191, %cst_109 {dimension_numbers = #tpu.dot_dimension_numbers<[1], [0], [0], [1], [0, 0, 1, 1], [], []>} : vector<128x32xf32>, vector<32x32xf32>, vector<128x32xf32> -> vector<128x32xf32>
    %c2_110 = arith.constant 2 : index
    %c0_111 = arith.constant 0 : index
    %c0_112 = arith.constant 0 : index
    %193 = vector.load %arg8[%c2_110, %c0_111, %c0_112] : memref<3x1x32xf32, #tpu.memory_space<vmem>>, vector<1x1x32xf32>
    %194 = vector.shape_cast %193 : vector<1x1x32xf32> to vector<1x32xf32>
    %195 = vector.broadcast %194 : vector<1x32xf32> to vector<128x32xf32>
    %196 = arith.addf %192, %195 : vector<128x32xf32>
    %cst_113 = arith.constant 0.000000e+00 : f32
    %197 = vector.broadcast %cst_113 : f32 to vector<128x32xf32>
    %198 = arith.cmpf oge, %196, %197 : vector<128x32xf32>
    %cst_114 = arith.constant 0.00999999977 : f32
    %199 = vector.broadcast %cst_114 : f32 to vector<128x32xf32>
    %200 = arith.mulf %199, %196 : vector<128x32xf32>
    %201 = arith.select %198, %196, %200 : vector<128x32xi1>, vector<128x32xf32>
    %c2_115 = arith.constant 2 : index
    %c0_116 = arith.constant 0 : index
    %c0_117 = arith.constant 0 : index
    %202 = vector.load %arg9[%c2_115, %c0_116, %c0_117] : memref<3x32x32xf32, #tpu.memory_space<vmem>>, vector<1x32x32xf32>
    %203 = vector.shape_cast %202 : vector<1x32x32xf32> to vector<32x32xf32>
    %cst_118 = arith.constant dense<0.000000e+00> : vector<128x32xf32>
    %204 = tpu.matmul %201, %203, %cst_118 {dimension_numbers = #tpu.dot_dimension_numbers<[1], [0], [0], [1], [0, 0, 1, 1], [], []>} : vector<128x32xf32>, vector<32x32xf32>, vector<128x32xf32> -> vector<128x32xf32>
    %c2_119 = arith.constant 2 : index
    %c0_120 = arith.constant 0 : index
    %c0_121 = arith.constant 0 : index
    %205 = vector.load %arg10[%c2_119, %c0_120, %c0_121] : memref<3x1x32xf32, #tpu.memory_space<vmem>>, vector<1x1x32xf32>
    %206 = vector.shape_cast %205 : vector<1x1x32xf32> to vector<1x32xf32>
    %207 = vector.broadcast %206 : vector<1x32xf32> to vector<128x32xf32>
    %208 = arith.addf %204, %207 : vector<128x32xf32>
    %209 = arith.addf %165, %208 : vector<128x32xf32>
    %210 = vector.shape_cast %209 : vector<128x32xf32> to vector<8x16x32xf32>
    %cst_122 = arith.constant dense<0xFF800000> : vector<8x32xf32>
    %211 = vector.multi_reduction <maximumf>, %210, %cst_122 [1] : vector<8x16x32xf32> to vector<8x32xf32>
    %c0_123 = arith.constant 0 : index
    %c0_124 = arith.constant 0 : index
    %212 = vector.load %arg11[%c0_123, %c0_124] : memref<1x32xf32, #tpu.memory_space<vmem>>, vector<1x32xf32>
    %c0_125 = arith.constant 0 : index
    %c0_126 = arith.constant 0 : index
    %213 = vector.load %arg12[%c0_125, %c0_126] : memref<1x32xf32, #tpu.memory_space<vmem>>, vector<1x32xf32>
    %cst_127 = arith.constant dense<0.000000e+00> : vector<8xf32>
    %214 = vector.multi_reduction <add>, %211, %cst_127 [1] : vector<8x32xf32> to vector<8xf32>
    %215 = vector.shape_cast %214 : vector<8xf32> to vector<8x1xf32>
    %cst_128 = arith.constant 3.200000e+01 : f32
    %216 = vector.broadcast %cst_128 : f32 to vector<8x1xf32>
    %217 = arith.divf %215, %216 : vector<8x1xf32>
    %218 = vector.broadcast %217 : vector<8x1xf32> to vector<8x32xf32>
    %219 = arith.subf %211, %218 : vector<8x32xf32>
    %220 = arith.mulf %219, %219 : vector<8x32xf32>
    %cst_129 = arith.constant dense<0.000000e+00> : vector<8xf32>
    %221 = vector.multi_reduction <add>, %220, %cst_129 [1] : vector<8x32xf32> to vector<8xf32>
    %222 = vector.shape_cast %221 : vector<8xf32> to vector<8x1xf32>
    %cst_130 = arith.constant 3.200000e+01 : f32
    %223 = vector.broadcast %cst_130 : f32 to vector<8x1xf32>
    %224 = arith.divf %222, %223 : vector<8x1xf32>
    %cst_131 = arith.constant 9.99999974E-6 : f32
    %225 = vector.broadcast %cst_131 : f32 to vector<8x1xf32>
    %226 = arith.addf %224, %225 : vector<8x1xf32>
    %227 = math.rsqrt %226 : vector<8x1xf32>
    %228 = vector.broadcast %227 : vector<8x1xf32> to vector<8x32xf32>
    %229 = arith.mulf %219, %228 : vector<8x32xf32>
    %230 = vector.broadcast %212 : vector<1x32xf32> to vector<8x32xf32>
    %231 = arith.mulf %229, %230 : vector<8x32xf32>
    %232 = vector.broadcast %213 : vector<1x32xf32> to vector<8x32xf32>
    %233 = arith.addf %231, %232 : vector<8x32xf32>
    %c0_132 = arith.constant 0 : index
    %c0_133 = arith.constant 0 : index
    %234 = vector.load %arg13[%c0_132, %c0_133] : memref<32x128xf32, #tpu.memory_space<vmem>>, vector<32x128xf32>
    %cst_134 = arith.constant dense<0.000000e+00> : vector<8x128xf32>
    %235 = tpu.matmul %233, %234, %cst_134 {dimension_numbers = #tpu.dot_dimension_numbers<[1], [0], [0], [1], [0, 0, 1, 1], [], []>} : vector<8x32xf32>, vector<32x128xf32>, vector<8x128xf32> -> vector<8x128xf32>
    %c0_135 = arith.constant 0 : index
    %c0_136 = arith.constant 0 : index
    %236 = vector.load %arg14[%c0_135, %c0_136] : memref<1x128xf32, #tpu.memory_space<vmem>>, vector<1x128xf32>
    %237 = vector.broadcast %236 : vector<1x128xf32> to vector<8x128xf32>
    %238 = arith.addf %235, %237 : vector<8x128xf32>
    %cst_137 = arith.constant 0.000000e+00 : f32
    %239 = vector.broadcast %cst_137 : f32 to vector<8x128xf32>
    %240 = arith.cmpf oge, %238, %239 : vector<8x128xf32>
    %cst_138 = arith.constant 0.00999999977 : f32
    %241 = vector.broadcast %cst_138 : f32 to vector<8x128xf32>
    %242 = arith.mulf %241, %238 : vector<8x128xf32>
    %243 = arith.select %240, %238, %242 : vector<8x128xi1>, vector<8x128xf32>
    %c0_139 = arith.constant 0 : index
    %c0_140 = arith.constant 0 : index
    %244 = vector.load %arg15[%c0_139, %c0_140] : memref<8x128xf32, #tpu.memory_space<vmem>>, vector<8x128xf32>
    tpu.vector_store %arg15[%c0_139, %c0_140], %243 {strides = array<i32>} : memref<8x128xf32, #tpu.memory_space<vmem>>, vector<8x128xf32>,
    return
  }
  func.func @transform_0(%arg0: i32) -> (i32, i32, i32) {
    %c0_i32 = arith.constant 0 : i32
    %c0_i32_0 = arith.constant 0 : i32
    %c0_i32_1 = arith.constant 0 : i32
    return %arg0, %c0_i32, %c0_i32_0 : i32, i32, i32
  }
  func.func @transform_1(%arg0: i32) -> (i32, i32, i32) {
    %c0_i32 = arith.constant 0 : i32
    %c0_i32_0 = arith.constant 0 : i32
    %c0_i32_1 = arith.constant 0 : i32
    %c0_i32_2 = arith.constant 0 : i32
    return %c0_i32, %c0_i32_0, %c0_i32_1 : i32, i32, i32
  }
  func.func @transform_2(%arg0: i32) -> (i32, i32, i32) {
    %c0_i32 = arith.constant 0 : i32
    %c0_i32_0 = arith.constant 0 : i32
    %c0_i32_1 = arith.constant 0 : i32
    %c0_i32_2 = arith.constant 0 : i32
    return %c0_i32, %c0_i32_0, %c0_i32_1 : i32, i32, i32
  }
  func.func @transform_3(%arg0: i32) -> (i32, i32, i32) {
    %c0_i32 = arith.constant 0 : i32
    %c0_i32_0 = arith.constant 0 : i32
    %c0_i32_1 = arith.constant 0 : i32
    %c0_i32_2 = arith.constant 0 : i32
    return %c0_i32, %c0_i32_0, %c0_i32_1 : i32, i32, i32
  }
  func.func @transform_4(%arg0: i32) -> (i32, i32, i32) {
    %c0_i32 = arith.constant 0 : i32
    %c0_i32_0 = arith.constant 0 : i32
    %c0_i32_1 = arith.constant 0 : i32
    %c0_i32_2 = arith.constant 0 : i32
    return %c0_i32, %c0_i32_0, %c0_i32_1 : i32, i32, i32
  }
  func.func @transform_5(%arg0: i32) -> (i32, i32, i32) {
    %c0_i32 = arith.constant 0 : i32
    %c0_i32_0 = arith.constant 0 : i32
    %c0_i32_1 = arith.constant 0 : i32
    %c0_i32_2 = arith.constant 0 : i32
    return %c0_i32, %c0_i32_0, %c0_i32_1 : i32, i32, i32
  }
  func.func @transform_6(%arg0: i32) -> (i32, i32, i32) {
    %c0_i32 = arith.constant 0 : i32
    %c0_i32_0 = arith.constant 0 : i32
    %c0_i32_1 = arith.constant 0 : i32
    %c0_i32_2 = arith.constant 0 : i32
    return %c0_i32, %c0_i32_0, %c0_i32_1 : i32, i32, i32
  }
  func.func @transform_7(%arg0: i32) -> (i32, i32, i32) {
    %c0_i32 = arith.constant 0 : i32
    %c0_i32_0 = arith.constant 0 : i32
    %c0_i32_1 = arith.constant 0 : i32
    %c0_i32_2 = arith.constant 0 : i32
    return %c0_i32, %c0_i32_0, %c0_i32_1 : i32, i32, i32
  }
  func.func @transform_8(%arg0: i32) -> (i32, i32, i32) {
    %c0_i32 = arith.constant 0 : i32
    %c0_i32_0 = arith.constant 0 : i32
    %c0_i32_1 = arith.constant 0 : i32
    %c0_i32_2 = arith.constant 0 : i32
    return %c0_i32, %c0_i32_0, %c0_i32_1 : i32, i32, i32
  }
  func.func @transform_9(%arg0: i32) -> (i32, i32, i32) {
    %c0_i32 = arith.constant 0 : i32
    %c0_i32_0 = arith.constant 0 : i32
    %c0_i32_1 = arith.constant 0 : i32
    %c0_i32_2 = arith.constant 0 : i32
    return %c0_i32, %c0_i32_0, %c0_i32_1 : i32, i32, i32
  }
  func.func @transform_10(%arg0: i32) -> (i32, i32) {
    %c0_i32 = arith.constant 0 : i32
    %c0_i32_0 = arith.constant 0 : i32
    %c0_i32_1 = arith.constant 0 : i32
    return %c0_i32, %c0_i32_0 : i32, i32
  }
  func.func @transform_11(%arg0: i32) -> (i32, i32) {
    %c0_i32 = arith.constant 0 : i32
    %c0_i32_0 = arith.constant 0 : i32
    %c0_i32_1 = arith.constant 0 : i32
    return %c0_i32, %c0_i32_0 : i32, i32
  }
  func.func @transform_12(%arg0: i32) -> (i32, i32) {
    %c0_i32 = arith.constant 0 : i32
    %c0_i32_0 = arith.constant 0 : i32
    %c0_i32_1 = arith.constant 0 : i32
    return %c0_i32, %c0_i32_0 : i32, i32
  }
  func.func @transform_13(%arg0: i32) -> (i32, i32) {
    %c0_i32 = arith.constant 0 : i32
    %c0_i32_0 = arith.constant 0 : i32
    %c0_i32_1 = arith.constant 0 : i32
    return %c0_i32, %c0_i32_0 : i32, i32
  }
  func.func @transform_14(%arg0: i32) -> (i32, i32) {
    %c0_i32 = arith.constant 0 : i32
    %c0_i32_0 = arith.constant 0 : i32
    return %arg0, %c0_i32 : i32, i32
  }
}

</mosaic_0001>

<bundles_post_ra>
// kernel: tpu_custom_call.1
= control target key start
LH: loop header
LB: loop body
LE: loop exit
PB: predicated region body
PF: predicated region fallthrough
CT: control target
= control target key end

     0   :  { %s9416_s0 = inlined_call_operand.vmem [shape: f32[16,16,32], index: 0, kind: input, shape index: {}]   ;;  %s9417_s1 = inlined_call_operand.hbm [shape: f32[3,32,128], index: 1, kind: input, shape index: {}]   ;;  %s9418_s2 = inlined_call_operand.hbm [shape: f32[3,32,64], index: 2, kind: input, shape index: {}]   ;;  %s9419_s3 = inlined_call_operand.vmem [shape: f32[3,64,32], index: 3, kind: input, shape index: {}]   ;;  %s9420_s4 = inlined_call_operand.vmem [shape: f32[3,1,32], index: 4, kind: input, shape index: {}]   ;;  %s9421_s5 = inlined_call_operand.vmem [shape: f32[3,1,32], index: 5, kind: input, shape index: {}]   ;;  %s9422_s6 = inlined_call_operand.hbm [shape: f32[3,32,32], index: 6, kind: input, shape index: {}]   ;;  %s9423_s7 = inlined_call_operand.vmem [shape: f32[3,1,32], index: 7, kind: input, shape index: {}]   ;;  %s9424_s8 = inlined_call_operand.hbm [shape: f32[3,32,32], index: 8, kind: input, shape index: {}]   ;;  %s9425_s9 = inlined_call_operand.vmem [shape: f32[3,1,32], index: 9, kind: input, shape index: {}]   ;;  %s9426_s10 = inlined_call_operand.vmem [shape: f32[1,32], index: 10, kind: input, shape index: {}]   ;;  %s9427_s11 = inlined_call_operand.vmem [shape: f32[1,32], index: 11, kind: input, shape index: {}]   ;;  %s9428_s12 = inlined_call_operand.vmem [shape: f32[32,128], index: 12, kind: input, shape index: {}]   ;;  %s9429_s13 = inlined_call_operand.vmem [shape: f32[1,128], index: 13, kind: input, shape index: {}]   ;;  %s9430_s14 = inlined_call_operand.hbm [shape: f32[16,128], index: 14, kind: output, shape index: {}]  }
   0x1   :  { %9444 = sst [smem:[#allocation23_spill]] %s9429_s13 }
   0x2   :  { %9445 = sst [smem:[#allocation24_spill]] %s9430_s14 }
   0x3   :  { %19 = vsyncpa [#allocation3], 0 }
   0x4   :  { %20 = vsyncpa [#allocation6], 0 }
   0x5   :  { %21 = vsyncpa [#allocation9], 0 }
   0x6   :  { %22 = vsyncpa [#allocation4], 0 }
   0x7   :  { %24 = vsyncpa [#allocation4 + $0x1], 0  ;;  %s7583_s29 = smov 0   ;;  %s7585_s30 = smov 0  }
   0x8   :  { %s7587_s15 = smov 0   ;;  %s7589_s16 = smov 0  }
   0x9 LB: > { %9446 = sst [smem:[#allocation15_spill]] %s7482_s29  ;;  %s7604_s17 = sadd.s32 4294967295, %s7494_s16   ;;  %s7494_s16 = sphi %s7589_s16, %s9475_s16   ;;  %s7490_s15 = sphi %s7587_s15, %s9478_s15   ;;  %s7486_s30 = sphi %s7585_s30, %s9477_s30   ;;  %s7482_s29 = sphi %s7583_s29, %s9476_s29  }
   0xa   : > { %9447 = sst [smem:[#allocation16_spill]] %s7486_s30  ;;  %s5759_s18 = sadd.s32 4294967294, %s7494_s16  }
   0xb   : > { %9448 = sst [smem:[#allocation17_spill]] %s7490_s15  ;;  %s7608_s19 = sadd.s32 1, %s7494_s16  }
   0xc   : > { %9449 = sst [smem:[#allocation18_spill]] %s7494_s16  ;;  %s336_s20 = sadd.s32 1, %s7490_s15 }
   0xd   : > { %9450 = sst [smem:[#allocation19_spill]] %s7608_s19  ;;  %s333_s21 = ssub.s32 %s7494_s16, %s7608_s19 }
   0xe   : > { %p346_p0 = scmp.ne.s32.totalorder %s7490_s15, %s7486_s30  ;;  %p334_p1 = scmp.eq.s32.totalorder %s333_s21, 0 }
   0xf   : > { %p347_p2 = scmp.eq.s32.totalorder %s7604_s17, 1  ;;  %p352_p3 = scmp.ne.s32.totalorder %s7486_s30, %s7482_s29 }
  0x10   : > { %p353_p4 = scmp.eq.s32.totalorder %s5759_s18, 1  ;;  %p5760_p7 = scmp.ge.s32.totalorder %s7494_s16, 1 }
  0x11   : > { %s7619_s22 = scalar_select %p334_p1, %s7490_s15, %s336_s20  }
  0x12   : > { %p7621_p5 = por %p347_p2, %p346_p0  ;;  %p7625_p6 = por %p353_p4, %p352_p3 }
  0x13   : > { %9451 = sst [smem:[#allocation20_spill]] %s7619_s22  ;;  %p360_p8 = scmp.lt.s32.totalorder %s7494_s16, 3 }
  0x14   : > { %s9452_s23 = scalar_select %p7621_p5, 1, 0 }
  0x15   : > { %s9454_s24 = scalar_select %p7625_p6, 1, 0 }
  0x16   : > { %9453 = sst [smem:[#allocation21_spill]] %s9452_s23  ;;  %p9437_p9 = scmp.eq.s32.totalorder %s7604_s17, 0 }
  0x17   : > { %9455 = sst [smem:[#allocation22_spill]] %s9454_s24  ;;  %p7632_p10 = pnand %p5760_p7, %p360_p8 }
  0x18   : > { %s7496_s26 = smov [#allocation5]   ;;  %s7497_s18 = smov [#allocation2]  }
  0x19   : > { %s9456_s25 = scalar_select %p7632_p10, 1, 0 }
  0x1a   : > { %p6949_p11 = pneg %p7632_p10  ;;  %s385_s27 = sshll.u32 %s7496_s26, 4  ;;  %s7638_s27 = int_to_ptr.vmem [resolvable:$true] %s385_s27 }
  0x1b   : > { %s372_s20 = sshll.u32 %s7497_s18, 4  ;;  %s7498_s21 = smov [#allocation7]   ;;  %s7646_s20 = int_to_ptr.vmem [resolvable:$true] %s372_s20 }
  0x1c   : > { %p7642_p12 = pnand %p9437_p9, %p6949_p11  ;;  %s7648_s22 = sshll.u32 %s7498_s21, 4  ;;  %s408_s22 = int_to_ptr.vmem [resolvable:$true] %s7648_s22 }
  0x1d   : > { %s7308_s24 = scalar_lea.hbm %s9418_s2, 1536 }
  0x1e   : > { %p7309_p13 = scmp.ne.s32.totalorder %s9418_s2, %s7308_s24  ;;  %p7658_p0 = pneg %p7642_p12 }
  0x1f   : > { %p7315_p3 = scmp.lt.u32.totalorder %s7308_s24, %s9418_s2 }
  0x20   : > { %p7311_p1 = pnand %p7658_p0, %p7309_p13 }
  0x22   : > { %p7312_p2 = pneg %p7311_p1 }
  0x24   : > { %p7317_p4 = pnand %p7315_p3, %p7312_p2 }
  0x26   : > { %7320 = shalt.err (!%p7317_p4)
}
  0x27   : > { %s7321_s29 = scalar_lea.vmem %s7638_s27, 1536  ;;  %p7329_p9 = scmp.lt.s32.totalorder %s7638_s27, %s7638_s27 }
  0x28   : > { %p7322_p7 = scmp.ne.s32.totalorder %s7638_s27, %s7321_s29  ;;  %p7330_p6 = scmp.lt.s32.totalorder %s7321_s29, %s7321_s29 }
  0x2a   : > { %p7324_p8 = pnand %p7322_p7, %p7658_p0  ;;  %p7331_p13 = por %p7330_p6, %p7329_p9 }
  0x2c   : > { %p7325_p11 = pneg %p7324_p8 }
  0x2e   : > { %p7332_p1 = pnand %p7331_p13, %p7325_p11 }
  0x30   : > { %7335 = shalt.err (!%p7332_p1)
}
  0x31   : > { %s7499_s15 = smov 128   ;;  %s7500_s19 = smov 8  }
  0x32   : > { %6955 = dma.hbm_to_vmem [thread:$0]  (!%p7642_p12), %s9418_s2, 1536, %s7638_s27, [#allocation6], %s7499_s15, %s7499_s15, %s7500_s19  }
  0x33   : > { %s7336_s29 = scalar_lea.hbm %s9417_s1, 1536 }
  0x34   : > { %p7337_p6 = scmp.ne.s32.totalorder %s9417_s1, %s7336_s29  ;;  %p7343_p3 = scmp.lt.u32.totalorder %s7336_s29, %s9417_s1 }
  0x36   : > { %p7339_p9 = pnand %p7337_p6, %p7658_p0 }
  0x38   : > { %p7340_p2 = pneg %p7339_p9 }
  0x3a   : > { %p7345_p4 = pnand %p7343_p3, %p7340_p2 }
  0x3c   : > { %7348 = shalt.err (!%p7345_p4)
}
  0x3d   : > { %s7349_s27 = scalar_lea.vmem %s7646_s20, 1536  ;;  %p7357_p13 = scmp.lt.s32.totalorder %s7646_s20, %s7646_s20 }
  0x3e   : > { %p7350_p7 = scmp.ne.s32.totalorder %s7646_s20, %s7349_s27  ;;  %p7358_p1 = scmp.lt.s32.totalorder %s7349_s27, %s7349_s27 }
  0x40   : > { %p7352_p8 = pnand %p7350_p7, %p7658_p0  ;;  %p7359_p6 = por %p7358_p1, %p7357_p13 }
  0x42   : > { %p7353_p11 = pneg %p7352_p8 }
  0x44   : > { %p7360_p9 = pnand %p7359_p6, %p7353_p11 }
  0x46   : > { %7363 = shalt.err (!%p7360_p9)
}
  0x47   : > { %6952 = dma.hbm_to_vmem [thread:$0]  (!%p7642_p12), %s9417_s1, 1536, %s7646_s20, [#allocation3], %s7499_s15, %s7499_s15, %s7500_s19  }
  0x48   : > { %s7364_s24 = scalar_lea.hbm %s9422_s6, 1536 }
  0x49   : > { %p7365_p2 = scmp.ne.s32.totalorder %s9422_s6, %s7364_s24  ;;  %p7371_p7 = scmp.lt.u32.totalorder %s7364_s24, %s9422_s6 }
  0x4b   : > { %p7367_p3 = pnand %p7365_p2, %p7658_p0 }
  0x4d   : > { %p7368_p4 = pneg %p7367_p3 }
  0x4f   : > { %p7373_p8 = pnand %p7371_p7, %p7368_p4 }
  0x51   : > { %7376 = shalt.err (!%p7373_p8)
}
  0x52   : > { %s7377_s27 = scalar_lea.vmem %s408_s22, 1536  ;;  %p7385_p6 = scmp.lt.s32.totalorder %s408_s22, %s408_s22 }
  0x53   : > { %p7378_p11 = scmp.ne.s32.totalorder %s408_s22, %s7377_s27  ;;  %p7386_p9 = scmp.lt.s32.totalorder %s7377_s27, %s7377_s27 }
  0x55   : > { %p7380_p13 = pnand %p7378_p11, %p7658_p0  ;;  %p7387_p5 = por %p7386_p9, %p7385_p6 }
  0x57   : > { %p7381_p1 = pneg %p7380_p13 }
  0x59   : > { %p7388_p10 = pnand %p7387_p5, %p7381_p1 }
  0x5b   : > { %7391 = shalt.err (!%p7388_p10)
}
  0x5c   : > { %6958 = dma.hbm_to_vmem [thread:$0]  (!%p7642_p12), %s9422_s6, 1536, %s408_s22, [#allocation6], %s7499_s15, %s7499_s15, %s7500_s19  }
  0x5d   : > { %s7501_s14 = smov [#allocation8]   ;;  %s7392_s26 = scalar_lea.hbm %s9424_s8, 1536 }
  0x5e   : > { %s423_s30 = sshll.u32 %s7501_s14, 4  ;;  %p7393_p5 = scmp.ne.s32.totalorder %s9424_s8, %s7392_s26  ;;  %s424_s30 = int_to_ptr.vmem [resolvable:$true] %s423_s30 }
  0x5f   : > { %p7399_p3 = scmp.lt.u32.totalorder %s7392_s26, %s9424_s8 }
  0x60   : > { %p7395_p10 = pnand %p7393_p5, %p7658_p0 }
  0x62   : > { %p7396_p2 = pneg %p7395_p10 }
  0x64   : > { %p7401_p4 = pnand %p7399_p3, %p7396_p2 }
  0x66   : > { %7404 = shalt.err (!%p7401_p4)
}
  0x67   : > { %s7405_s22 = scalar_lea.vmem %s424_s30, 1536  ;;  %p7413_p13 = scmp.lt.s32.totalorder %s424_s30, %s424_s30 }
  0x68   : > { %p7406_p7 = scmp.ne.s32.totalorder %s424_s30, %s7405_s22  ;;  %p7414_p1 = scmp.lt.s32.totalorder %s7405_s22, %s7405_s22 }
  0x6a   : > { %p7408_p8 = pnand %p7406_p7, %p7658_p0  ;;  %p7415_p6 = por %p7414_p1, %p7413_p13 }
  0x6c   : > { %p7409_p11 = pneg %p7408_p8 }
  0x6e   : > { %p7416_p9 = pnand %p7415_p6, %p7409_p11 }
  0x70   : > { %7419 = shalt.err (!%p7416_p9)
}
  0x71   : > { %6961 = dma.hbm_to_vmem [thread:$0]  (!%p7642_p12), %s9424_s8, 1536, %s424_s30, [#allocation9], %s7499_s15, %s7499_s15, %s7500_s19  }
  0x72   : > { %p9459_p5 = scmp.ne.s32.totalorder %s9456_s25, 0 }
  0x73   : > { %p9460_p0 = scmp.eq.s32.totalorder (!%p9459_p5), %s7604_s17, 0 }
  0x74   : > { %464 = sbr.rel (%p9459_p5) target bundleno = 4711 (0x1267), region = 76 }
  0x7b   : > { %7465 = dma.done.wait (%p9460_p0), [#allocation3], 1536   ;;  %p9461_p10 = pmov %p9460_p0 }
  0x7c   : > { %p9462_p2 = pmov %p9460_p0 }
  0x7d   : > { %7467 = vsyncadd (%p9461_p10), [#allocation3], 4294965760 }
  0x7e   : > { %7469 = dma.done.wait (%p9462_p2), [#allocation6], 3072   ;;  %p9463_p3 = pmov %p9460_p0 }
  0x7f   : > { %p9464_p4 = pmov %p9460_p0 }
  0x80   : > { %7471 = vsyncadd (%p9463_p3), [#allocation6], 4294964224 }
  0x81   : > { %7473 = dma.done.wait (%p9464_p4), [#allocation9], 1536   ;;  %p9465_p12 = pmov %p9460_p0 }
  0x82   : > { %s5772_s16 = sshll.u32 %s7604_s17, 3  ;;  %v7502_v0 = vmov 0.0|0.0   ;;  %vm7503_vm0 = vmmov 0   ;;  %v7504_v1 = vmov 0.0   ;;  %vm546_vm1 = vcmask 261120   ;;  %v717_v2 = vld [vmem:[#allocation2] sm:$0xff] }
  0x83   : > { %7475 = vsyncadd (%p9465_p12), [#allocation9], 4294965760  ;;  %p524_p7 = scmp.lt.s32.totalorder %s5772_s16, 15  ;;  %6787 = vmatprep.subr.bf16.mxu0 %v7502_v0  ;;  %6343 = vmatprep.mubr.msk.f32.mxu0 %vm7503_vm0, %v7504_v1  ;;  %v718_v3 = vld [vmem:[#allocation2 + $0x8] sm:$0xff]  ;;  %v719_v4 = vld [vmem:[#allocation2 + $0x10] sm:$0xff]  ;;  %vm631_vm2 = vcmask 1041409  }
  0x84   : > { %v6793_v5 = vpack.c.bf16 %v718_v3, %v717_v2  ;;  %v720_v6 = vld [vmem:[#allocation2 + $0x18] sm:$0xff]  ;;  %v619_v14 = vld [vmem:[#allocation5] sm:$0xff]  ;;  %v620_v18 = vld [vmem:[#allocation5 + $0x8] sm:$0xff]  ;;  %vm633_vm3 = vcmask 1042434   ;;  %vm635_vm4 = vcmask 1043459   ;;  %vm637_vm5 = vcmask 1044484  }
  0x85   : > { %s9480_s16 = smov (!%p524_p7, %s5772_s16), 15  ;;  %v6797_v9 = vpack.c.bf16 %v720_v6, %v719_v4  ;;  %v6788_v22 = vpack.c.bf16 %v620_v18, %v619_v14  ;;  %v621_v25 = vld [vmem:[#allocation5 + $0x10] sm:$0xff]  ;;  %v622_v26 = vld [vmem:[#allocation5 + $0x18] sm:$0xff]  ;;  %vm639_vm6 = vcmask 1045509   ;;  %vm641_vm7 = vcmask 1046534   ;;  %s9466_s23 = sld [smem:[#allocation16_spill]] }
  0x86   : > { %s6062_s25 = sshll.u32 %s9480_s16, 4  ;;  %6794 = vmatprep.subr.bf16.mxu1 %v6793_v5  ;;  %v6791_v35 = vpack.c.bf16 %v622_v26, %v621_v25  ;;  %vm643_vm8 = vcmask 1047559   ;;  %vm1204_vm9 = vcmask 523264   ;;  %s9467_s29 = sld [smem:[#allocation23_spill]] }
  0x87   : > { %s7772_s19 = scalar_lea.vmem %s9416_s0, %s6062_s25  ;;  %6796 = vmatpush3.bf16.msra.mxu1 %v6793_v5  ;;  %6789 = vmatpush3.bf16.msra.mxu0 %v6788_v22  ;;  %s9468_s27 = sld [smem:[#allocation21_spill]] }
  0x88   : > { %v7775_v7 = vld [vmem:[%s7772_s19] sm:$0xff]  ;;  %v7778_v8 = vld [vmem:[%s7772_s19 + $0x8] sm:$0xff]  ;;  %v7787_v12 = vld [vmem:[%s7772_s19 + $0x10] sm:$0xff]  ;;  %6798 = vmatprep.subr.bf16.mxu1 %v6797_v9  ;;  %6790 = vmatprep.subr.bf16.mxu0 %v7502_v0  ;;  %s6059_s22 = sshll.u32 %s7604_s17, 7  ;;  %s9469_s28 = sld [smem:[#allocation24_spill]] }
  0x89   : > { %v547_v10 = vsel %vm546_vm1, %v7775_v7, -inf  ;;  %6354 = vmatprep.mubr.msk.f32.mxu1 %vm546_vm1, %v7775_v7  ;;  %v548_v11 = vsel %vm546_vm1, %v7778_v8, -inf  ;;  %v7790_v13 = vld [vmem:[%s7772_s19 + $0x18] sm:$0xff]  ;;  %v556_v16 = vsel %vm546_vm1, %v7787_v12, -inf  ;;  %v7797_v19 = vld [vmem:[%s7772_s19 + $0x20] sm:$0xff]  ;;  %v7800_v20 = vld [vmem:[%s7772_s19 + $0x28] sm:$0xff] }
  0x8a   : > { %v549_v15 = vmax.f32 %v547_v10, %v548_v11  ;;  %v557_v17 = vsel %vm546_vm1, %v7790_v13, -inf  ;;  %v565_v23 = vsel %vm546_vm1, %v7797_v19, -inf  ;;  %v566_v24 = vsel %vm546_vm1, %v7800_v20, -inf  ;;  %v7807_v27 = vld [vmem:[%s7772_s19 + $0x30] sm:$0xff]  ;;  %v7810_v30 = vld [vmem:[%s7772_s19 + $0x38] sm:$0xff]  ;;  %v7815_v32 = vld [vmem:[%s7772_s19 + $0x40] sm:$0xff] }
  0x8b   : > { %v558_v21 = vmax.f32 %v556_v16, %v557_v17  ;;  %v567_v29 = vmax.f32 %v565_v23, %v566_v24  ;;  %v574_v31 = vsel %vm546_vm1, %v7807_v27, -inf  ;;  %v7818_v33 = vld [vmem:[%s7772_s19 + $0x48] sm:$0xff]  ;;  %v575_v36 = vsel %vm546_vm1, %v7810_v30, -inf  ;;  %v7823_v37 = vld [vmem:[%s7772_s19 + $0x50] sm:$0xff]  ;;  %v7826_v38 = vld [vmem:[%s7772_s19 + $0x58] sm:$0xff]  ;;  %6800 = vmatpush3.bf16.msra.mxu1 %v6797_v9  ;;  %6792 = vmatpush3.bf16.msra.mxu0 %v6791_v35  ;;  %s520_s24 = sand.u32 1, %s9466_s23  }
  0x8c   : > { %v550_v28 = vrot.slane %v549_v15, 4  ;;  %v583_v39 = vsel %vm546_vm1, %v7815_v32, -inf  ;;  %v576_v42 = vmax.f32 %v574_v31, %v575_v36  ;;  %v7832_v43 = vld [vmem:[%s7772_s19 + $0x60] sm:$0xff]  ;;  %v7835_v44 = vld [vmem:[%s7772_s19 + $0x68] sm:$0xff]  ;;  %v584_v45 = vsel %vm546_vm1, %v7818_v33, -inf  ;;  %v7844_v53 = vld [vmem:[%s7772_s19 + $0x70] sm:$0xff] }
  0x8d   : > { %v559_v34 = vrot.slane %v558_v21, 4  ;;  %v568_v41 = vrot.slane %v567_v29, 4  ;;  %v585_v47 = vmax.f32 %v583_v39, %v584_v45  ;;  %v592_v48 = vsel %vm546_vm1, %v7823_v37, -inf  ;;  %v7853_v62 = vld [vmem:[%s7772_s19 + $0x78] sm:$0xff]  ;;  %s7505_s19 = smov 64   ;;  %s5771_s26 = sshll.u32 %s520_s24, 3 }
  0x8e   : > { %v551_v40 = vmax.f32 %v549_v15, %v550_v28  ;;  %v593_v49 = vsel %vm546_vm1, %v7826_v38, -inf  ;;  %v577_v52 = vrot.slane %v576_v42, 4  ;;  %v601_v57 = vsel %vm546_vm1, %v7832_v43, -inf  ;;  %6355 = vmatmul.mubr.msk.f32.vlgmr.msra.gmra.mrb[0].mxu1 %vm546_vm1, %v7778_v8  ;;  %s522_s20 = scalar_lea.vmem [#allocation10], %s5771_s26  ;;  %s9374_s15 = scalar_lea.hbm %s9469_s28, %s6059_s22 }
  0x8f   : > { %v560_v46 = vmax.f32 %v558_v21, %v559_v34  ;;  %v569_v51 = vmax.f32 %v567_v29, %v568_v41  ;;  %v594_v54 = vmax.f32 %v592_v48, %v593_v49  ;;  %v586_v56 = vrot.slane %v585_v47, 4  ;;  %6357 = vmatprep.mubr.msk.f32.mxu1 %vm546_vm1, %v7787_v12  ;;  %s5659_s13 = sshll.u32 %s522_s20, 4  ;;  %p9470_p11 = scmp.ne.s32.totalorder %s9468_s27, 0  ;;  %s9376_s13 = int_to_ptr.vmem [resolvable:$true] %s5659_s13 }
  0x90   : > { %v552_v50 = vrot.slane %v551_v40, 2  ;;  %v602_v58 = vsel %vm546_vm1, %v7835_v44, -inf  ;;  %v578_v61 = vmax.f32 %v576_v42, %v577_v52  ;;  %v610_v5 = vsel %vm546_vm1, %v7844_v53, -inf  ;;  %s7420_s14 = scalar_lea.vmem %s9376_s13, 128  ;;  %s7507_s17 = smov [#allocation10]  }
  0x91   : > { %v561_v55 = vrot.slane %v560_v46, 2  ;;  %v570_v60 = vrot.slane %v569_v51, 2  ;;  %v595_v63 = vrot.slane %v594_v54, 4  ;;  %v587_v3 = vmax.f32 %v585_v47, %v586_v56  ;;  %p7421_p8 = scmp.ne.s32.totalorder %s9376_s13, %s7420_s14  ;;  %s7424_s30 = sshll.u32 %s7507_s17, 4  ;;  %s7425_s30 = int_to_ptr.vmem [resolvable:$false] %s7424_s30 }
  0x92   : > { %v553_v59 = vmax.f32 %v551_v40, %v552_v50  ;;  %v603_v4 = vmax.f32 %v601_v57, %v602_v58  ;;  %v579_v10 = vrot.slane %v578_v61, 2  ;;  %v611_v17 = vsel %vm546_vm1, %v7853_v62, -inf  ;;  %6358 = vmatmul.mubr.msk.f32.gmra.mrb[2].mxu1 %vm546_vm1, %v7790_v13  ;;  %s7426_s23 = scalar_lea.vmem %s7425_s30, 256  ;;  %p7427_p6 = scmp.lt.s32.totalorder %s9376_s13, %s7425_s30 }
  0x93   : > { %v562_v2 = vmax.f32 %v560_v46, %v561_v55  ;;  %v571_v9 = vmax.f32 %v569_v51, %v570_v60  ;;  %v596_v11 = vmax.f32 %v594_v54, %v595_v63  ;;  %v588_v15 = vrot.slane %v587_v3, 2  ;;  %6360 = vmatprep.mubr.msk.f32.mxu1 %vm546_vm1, %v7797_v19  ;;  %v1196_v63 = vld [vmem:[%s9419_s3] sm:$0xff]  ;;  %p7422_p13 = pnand %p7421_p8, %p9470_p11  ;;  %p7428_p9 = scmp.lt.s32.totalorder %s7426_s23, %s7420_s14 }
  0x94   : > { %v554_v6 = vrot.slane %v553_v59, 1  ;;  %v604_v16 = vrot.slane %v603_v4, 4  ;;  %v580_v22 = vmax.f32 %v578_v61, %v579_v10  ;;  %v612_v28 = vmax.f32 %v610_v5, %v611_v17  ;;  %v1199_v5 = vld [vmem:[%s9419_s3 + $0x18] sm:$0xff]  ;;  %v1201_v10 = vld [vmem:[%s9419_s3 + $0x28] sm:$0xff] }
  0x95   : > { %v563_v14 = vrot.slane %v562_v2, 1  ;;  %v572_v21 = vrot.slane %v571_v9, 1  ;;  %v597_v23 = vrot.slane %v596_v11, 2  ;;  %v589_v25 = vmax.f32 %v587_v3, %v588_v15  ;;  %v1198_v3 = vld [vmem:[%s9419_s3 + $0x10] sm:$0xff]  ;;  %v1203_v15 = vld [vmem:[%s9419_s3 + $0x38] sm:$0xff]  ;;  %p7423_p1 = pneg %p7422_p13  ;;  %p7429_p5 = por %p7428_p9, %p7427_p6 }
  0x96   : > { %v555_v18 = vmax.f32 %v553_v59, %v554_v6  ;;  %v605_v26 = vmax.f32 %v603_v4, %v604_v16  ;;  %v581_v31 = vrot.slane %v580_v22, 1  ;;  %v613_v39 = vrot.slane %v612_v28, 4  ;;  %6361 = vmatmul.mubr.msk.f32.gmra.mrb[4].mxu1 %vm546_vm1, %v7800_v20 }
  0x97   : > { %v564_v24 = vmax.f32 %v562_v2, %v563_v14  ;;  %v573_v29 = vmax.f32 %v571_v9, %v572_v21  ;;  %v598_v34 = vmax.f32 %v596_v11, %v597_v23  ;;  %v590_v35 = vrot.slane %v589_v25, 1  ;;  %6363 = vmatprep.mubr.msk.f32.mxu1 %vm546_vm1, %v7807_v27  ;;  %v1197_v2 = vld [vmem:[%s9419_s3 + $0x8] sm:$0xff]  ;;  %v1200_v9 = vld [vmem:[%s9419_s3 + $0x20] sm:$0xff]  ;;  %v1202_v14 = vld [vmem:[%s9419_s3 + $0x30] sm:$0xff]  ;;  %p7430_p0 = pnand %p7429_p5, %p7423_p1 }
  0x98   : > { %v606_v36 = vrot.slane %v605_v26, 2  ;;  %v582_v41 = vmax.f32 %v580_v22, %v581_v31  ;;  %v614_v48 = vmax.f32 %v612_v28, %v613_v39  ;;  %v6801_v4 = vpack.c.bf16 %v1197_v2, %v1196_v63 }
  0x99   : > { %v632_v40 = vsel %vm631_vm2, %v564_v24, %v555_v18  ;;  %v599_v42 = vrot.slane %v598_v34, 1  ;;  %v591_v46 = vmax.f32 %v589_v25, %v590_v35  ;;  %v6805_v6 = vpack.c.bf16 %v1199_v5, %v1198_v3 }
  0x9a   : > { %v634_v45 = vsel %vm633_vm3, %v573_v29, %v632_v40  ;;  %v607_v47 = vmax.f32 %v605_v26, %v606_v36  ;;  %v615_v52 = vrot.slane %v614_v48, 2  ;;  %6364 = vmatmul.mubr.msk.f32.gmra.mrb[6].mxu1 %vm546_vm1, %v7810_v30  ;;  %6802 = vmatprep.subr.bf16.mxu0 %v6801_v4  ;;  %v6809_v11 = vpack.c.bf16 %v1201_v10, %v1200_v9 }
  0x9b   : > { %v600_v49 = vmax.f32 %v598_v34, %v599_v42  ;;  %v636_v50 = vsel %vm635_vm4, %v582_v41, %v634_v45  ;;  %6366 = vmatprep.mubr.msk.f32.mxu1 %vm546_vm1, %v7815_v32  ;;  %v6813_v16 = vpack.c.bf16 %v1203_v15, %v1202_v14  ;;  %v7506_v25 = vmov 1966171168  }
  0x9c   : > { %v608_v51 = vrot.slane %v607_v47, 1  ;;  %v638_v54 = vsel %vm637_vm5, %v591_v46, %v636_v50  ;;  %v616_v56 = vmax.f32 %v614_v48, %v615_v52  ;;  %v917_v26 = vunpack.c.l.s4 %v7506_v25 }
  0x9d   : > { %v640_v57 = vsel %vm639_vm6, %v600_v49, %v638_v54  ;;  %v919_v28 = vlaneseq }
  0x9e   : > { %v609_v55 = vmax.f32 %v607_v47, %v608_v51  ;;  %v617_v58 = vrot.slane %v616_v56, 1  ;;  %6367 = vmatmul.mubr.msk.f32.gmra.mrb[8].mxu1 %vm546_vm1, %v7818_v33  ;;  %v918_v31 = vunpack.c.0.s8 %v917_v26 }
  0x9f   : > { %6369 = vmatprep.mubr.msk.f32.mxu1 %vm546_vm1, %v7823_v37  ;;  %v920_v34 = vshrl.u32 %v919_v28, 7 }
  0xa0   : > { %v642_v59 = vsel %vm641_vm7, %v609_v55, %v640_v57  ;;  %v618_v60 = vmax.f32 %v616_v56, %v617_v58 }
  0xa1   : > { %v7926_v39 = vsub.s32 %v918_v31, %v920_v34  ;;  %v7931_v47 = vsub.s32 0, %v920_v34 }
  0xa2   : > { %v644_v61 = vsel %vm643_vm8, %v618_v60, %v642_v59  ;;  %6370 = vmatmul.mubr.msk.f32.gmra.mrb[10].mxu1 %vm546_vm1, %v7826_v38 }
  0xa3   : > { %6344 = vmatmul.mubr.msk.f32.vlgmr.msra.gmra.mrb[0].mxu0 %vm546_vm1, %v644_v61  ;;  %6372 = vmatprep.mubr.msk.f32.mxu1 %vm546_vm1, %v7832_v43 }
  0xa4   : > { %6804 = vmatpush3.bf16.msra.mxu0 %v6801_v4 }
  0xa5   : > { %6806 = vmatprep.subr.bf16.mxu0 %v6805_v6 }
  0xa6   : > { %6373 = vmatmul.mubr.msk.f32.gmra.mrb[12].mxu1 %vm546_vm1, %v7835_v44 }
  0xa7   : > { %6375 = vmatprep.mubr.msk.f32.mxu1 %vm546_vm1, %v7844_v53 }
  0xa8   : > { %6808 = vmatpush3.bf16.msra.mxu0 %v6805_v6 }
  0xa9   : > { %6810 = vmatprep.subr.bf16.mxu0 %v6809_v11 }
  0xaa   : > { %6376 = vmatmul.mubr.msk.f32.gmra.mrb[14].mxu1 %vm546_vm1, %v7853_v62 }
  0xac   : > { %6812 = vmatpush3.bf16.msra.mxu0 %v6809_v11 }
  0xad   : > { %6814 = vmatprep.subr.bf16.mxu0 %v6813_v16 }
  0xb0   : > { %6816 = vmatpush3.bf16.msra.mxu0 %v6813_v16 }
 0x161   : > { %v6356_v17 = vpop.f32.mrb[0].mxu1 }
 0x162   : > { %v835_v18 = vpop.f32.mrb[1].mxu1 }
 0x163   : > { %1132 = vrot.lane.b32.xlu0 %v835_v18, %s7505_s19 }
 0x165   : > { %v6359_v21 = vpop.f32.mrb[2].mxu1 }
 0x166   : > { %v845_v22 = vpop.f32.mrb[3].mxu1 }
 0x167   : > { %1134 = vrot.lane.b32.xlu0 %v6356_v17, %s7505_s19  ;;  %1136 = vrot.lane.b32.xlu1 %v845_v22, %s7505_s19 }
 0x169   : > { %v6362_v23 = vpop.f32.mrb[4].mxu1 }
 0x16a   : > { %v855_v24 = vpop.f32.mrb[5].mxu1 }
 0x16b   : > { %1138 = vrot.lane.b32.xlu1 %v6359_v21, %s7505_s19  ;;  %1140 = vrot.lane.b32.xlu0 %v855_v24, %s7505_s19 }
 0x16d   : > { %v6365_v29 = vpop.f32.mrb[6].mxu1 }
 0x16e   : > { %v865_v35 = vpop.f32.mrb[7].mxu1 }
 0x16f   : > { %1142 = vrot.lane.b32.xlu1 %v6362_v23, %s7505_s19  ;;  %1144 = vrot.lane.b32.xlu0 %v865_v35, %s7505_s19 }
 0x171   : > { %v6368_v36 = vpop.f32.mrb[8].mxu1 }
 0x172   : > { %v875_v40 = vpop.f32.mrb[9].mxu1 }
 0x173   : > { %1146 = vrot.lane.b32.xlu1 %v6365_v29, %s7505_s19  ;;  %1148 = vrot.lane.b32.xlu0 %v875_v40, %s7505_s19 }
 0x175   : > { %v6371_v42 = vpop.f32.mrb[10].mxu1 }
 0x176   : > { %v713_v41 = vpop.f32.mrb[0].mxu0  ;;  %v885_v48 = vpop.f32.mrb[11].mxu1 }
 0x177   : > { %v915_v45 = vcombine.high %v713_v41, %v713_v41  ;;  %v922_v46 = vrot.slane %v713_v41, %v7926_v39  ;;  %v6345_v49 = vpop.f32.mrb[1].mxu0  ;;  %1150 = vrot.lane.b32.xlu1 %v6368_v36, %s7505_s19  ;;  %1152 = vrot.lane.b32.xlu0 %v885_v48, %s7505_s19 }
 0x179   : > { %v929_v50 = vrot.slane %v915_v45, %v7926_v39  ;;  %v930_v51 = vcombine.high %v922_v46, %v922_v46  ;;  %v938_v52 = vrot.slane %v922_v46, %v7926_v39  ;;  %v6374_v54 = vpop.f32.mrb[12].mxu1 }
 0x17a   : > { %v895_v59 = vpop.f32.mrb[13].mxu1 }
 0x17b   : > { %v931_v55 = vcombine.high %v929_v50, %v929_v50  ;;  %v952_v56 = vrot.slane %v930_v51, %v7926_v39  ;;  %v960_v57 = vcombine.high %v938_v52, %v938_v52  ;;  %v967_v58 = vrot.slane %v938_v52, %v7931_v47  ;;  %1154 = vrot.lane.b32.xlu1 %v6371_v42, %s7505_s19 }
 0x17c   : > { %v945_v60 = vrot.slane %v929_v50, %v7926_v39  ;;  %1156 = vrot.lane.b32.xlu0 %v895_v59, %s7505_s19 }
 0x17d   : > { %v971_v61 = vrot.slane %v952_v56, %v7931_v47  ;;  %v975_v63 = vrot.slane %v960_v57, %v7931_v47  ;;  %v1004_v2 = vmul.f32 %v967_v58, %v835_v18  ;;  %v1005_v3 = vmul.f32 %v6356_v17, %v967_v58  ;;  %v6377_v9 = vpop.f32.mrb[14].mxu1 }
 0x17e   : > { %v962_v4 = vcombine.high %v952_v56, %v952_v56  ;;  %v983_v5 = vrot.slane %v945_v60, %v7931_v47  ;;  %v959_v6 = vrot.slane %v931_v55, %v7926_v39  ;;  %v905_v16 = vpop.f32.mrb[15].mxu1  ;;  %v961_v28 = vcombine.high %v945_v60, %v945_v60 }
 0x17f   : > { %v1006_v10 = vmul.f32 %v971_v61, %v845_v22  ;;  %v1007_v11 = vmul.f32 %v6359_v21, %v971_v61  ;;  %v1008_v14 = vmul.f32 %v975_v63, %v855_v24  ;;  %v1009_v15 = vmul.f32 %v6362_v23, %v975_v63  ;;  %1158 = vrot.lane.b32.xlu1 %v6374_v54, %s7505_s19 }
 0x180   : > { %v979_v25 = vrot.slane %v962_v4, %v7931_v47  ;;  %v1013_v26 = vmul.f32 %v6368_v36, %v983_v5  ;;  %1160 = vrot.lane.b32.xlu0 %v905_v16, %s7505_s19  ;;  %v1012_v17 = vmul.f32 %v983_v5, %v875_v40  ;;  %v987_v34 = vrot.slane %v959_v6, %v7931_v47 }
 0x181   : > { %v991_v41 = vrot.slane %v961_v28, %v7931_v47  ;;  %v963_v23 = vcombine.high %v959_v6, %v959_v6  ;;  %v5792_v50 = vmul.f32 -1.442695, %v1004_v2  ;;  %v5793_v51 = vmul.f32 -1.442695, %v1005_v3 }
 0x182   : > { %v1011_v18 = vmul.f32 %v6365_v29, %v979_v25  ;;  %v1010_v31 = vmul.f32 %v979_v25, %v865_v35  ;;  %v1015_v21 = vmul.f32 %v6371_v42, %v987_v34  ;;  %v1014_v22 = vmul.f32 %v987_v34, %v885_v48 }
 0x183   : > { %1162 = vrot.lane.b32.xlu1 %v6377_v9, %s7505_s19  ;;  %v1017_v24 = vmul.f32 %v6374_v54, %v991_v41  ;;  %v1016_v45 = vmul.f32 %v991_v41, %v895_v59  ;;  %v995_v36 = vrot.slane %v963_v23, %v7931_v47  ;;  %7018 = vpow2.f32 %v5792_v50 }
 0x184   : > { %v5794_v29 = vmul.f32 -1.442695, %v1006_v10  ;;  %7020 = vpow2.f32 %v5793_v51  ;;  %v5795_v35 = vmul.f32 -1.442695, %v1007_v11  ;;  %v5796_v40 = vmul.f32 -1.442695, %v1008_v14 }
 0x185   : > { %v1019_v46 = vmul.f32 %v6377_v9, %v995_v36  ;;  %v1018_v49 = vmul.f32 %v995_v36, %v905_v16  ;;  %v5798_v52 = vmul.f32 -1.442695, %v1010_v31  ;;  %v5797_v42 = vmul.f32 -1.442695, %v1009_v15 }
 0x186   : > { %7022 = vpow2.f32 %v5794_v29  ;;  %v5799_v55 = vmul.f32 -1.442695, %v1011_v18  ;;  %v5800_v54 = vmul.f32 -1.442695, %v1012_v17  ;;  %v5801_v59 = vmul.f32 -1.442695, %v1013_v26 }
 0x187   : > { %7024 = vpow2.f32 %v5795_v35  ;;  %v5802_v60 = vmul.f32 -1.442695, %v1014_v22  ;;  %v5803_v4 = vmul.f32 -1.442695, %v1015_v21  ;;  %v5804_v5 = vmul.f32 -1.442695, %v1016_v45 }
 0x188   : > { %7026 = vpow2.f32 %v5796_v40  ;;  %v5805_v14 = vmul.f32 -1.442695, %v1017_v24  ;;  %v5806_v15 = vmul.f32 -1.442695, %v1018_v49  ;;  %v5807_v18 = vmul.f32 -1.442695, %v1019_v46 }
 0x189   : > { %7028 = vpow2.f32 %v5798_v52 }
 0x18a   : > { %7030 = vpow2.f32 %v5797_v42 }
 0x18b   : > { %7032 = vpow2.f32 %v5799_v55 }
 0x18c   : > { %7034 = vpow2.f32 %v5800_v54 }
 0x18d   : > { %v7019_v48 = vpop.eup %7018 }
 0x18e   : > { %v7021_v56 = vpop.eup %7020  ;;  %v1068_v57 = vadd.f32 1.0, %v7019_v48 }
 0x18f   : > { %v1069_v61 = vadd.f32 1.0, %v7021_v56 }
 0x190   : > { %v7023_v58 = vpop.eup %7022  ;;  %7036 = vrcp.f32 %v1068_v57 }
 0x191   : > { %v7025_v63 = vpop.eup %7024  ;;  %v1070_v2 = vadd.f32 1.0, %v7023_v58  ;;  %7038 = vpow2.f32 %v5801_v59 }
 0x192   : > { %v7027_v3 = vpop.eup %7026  ;;  %7040 = vpow2.f32 %v5802_v60  ;;  %v1071_v6 = vadd.f32 1.0, %v7025_v63 }
 0x193   : > { %7042 = vrcp.f32 %v1069_v61  ;;  %v7029_v9 = vpop.eup %7028  ;;  %v1072_v10 = vadd.f32 1.0, %v7027_v3 }
 0x194   : > { %7044 = vrcp.f32 %v1070_v2  ;;  %v7031_v11 = vpop.eup %7030  ;;  %v1074_v16 = vadd.f32 1.0, %v7029_v9 }
 0x195   : > { %7046 = vpow2.f32 %v5803_v4  ;;  %v7033_v25 = vpop.eup %7032  ;;  %v1073_v26 = vadd.f32 1.0, %v7031_v11 }
 0x196   : > { %7048 = vpow2.f32 %v5804_v5  ;;  %v7035_v28 = vpop.eup %7034  ;;  %v1075_v41 = vadd.f32 1.0, %v7033_v25 }
 0x197   : > { %7050 = vrcp.f32 %v1071_v6  ;;  %v1076_v23 = vadd.f32 1.0, %v7035_v28 }
 0x198   : > { %7052 = vrcp.f32 %v1072_v10 }
 0x199   : > { %7054 = vpow2.f32 %v5805_v14 }
 0x19a   : > { %v7037_v17 = vpop.eup %7036  ;;  %7056 = vpow2.f32 %v5806_v15 }
 0x19b   : > { %v7039_v34 = vpop.eup %7038  ;;  %7058 = vrcp.f32 %v1074_v16 }
 0x19c   : > { %v7041_v22 = vpop.eup %7040  ;;  %7060 = vrcp.f32 %v1073_v26  ;;  %v1077_v46 = vadd.f32 1.0, %v7039_v34 }
 0x19d   : > { %v7043_v24 = vpop.eup %7042  ;;  %7062 = vpow2.f32 %v5807_v18  ;;  %v1078_v40 = vadd.f32 1.0, %v7041_v22 }
 0x19e   : > { %v7045_v45 = vpop.eup %7044  ;;  %7064 = vrcp.f32 %v1075_v41 }
 0x19f   : > { %v7047_v50 = vpop.eup %7046  ;;  %7066 = vrcp.f32 %v1076_v23 }
 0x1a0   : > { %v7049_v35 = vpop.eup %7048  ;;  %7068 = vrcp.f32 %v1077_v46  ;;  %v1079_v56 = vadd.f32 1.0, %v7047_v50 }
 0x1a1   : > { %v7051_v52 = vpop.eup %7050  ;;  %7070 = vrcp.f32 %v1078_v40  ;;  %v1080_v60 = vadd.f32 1.0, %v7049_v35 }
 0x1a2   : > { %v7053_v42 = vpop.eup %7052  ;;  %7072 = vrcp.f32 %v1079_v56 }
 0x1a3   : > { %v7055_v54 = vpop.eup %7054  ;;  %7074 = vrcp.f32 %v1080_v60 }
 0x1a4   : > { %v7057_v59 = vpop.eup %7056  ;;  %v1081_v4 = vadd.f32 1.0, %v7055_v54 }
 0x1a5   : > { %v7059_v61 = vpop.eup %7058  ;;  %v1082_v10 = vadd.f32 1.0, %v7057_v59 }
 0x1a6   : > { %v7061_v63 = vpop.eup %7060  ;;  %7076 = vrcp.f32 %v1081_v4 }
 0x1a7   : > { %v7063_v9 = vpop.eup %7062  ;;  %7078 = vrcp.f32 %v1082_v10 }
 0x1a8   : > { %v7065_v11 = vpop.eup %7064  ;;  %v1083_v28 = vadd.f32 1.0, %v7063_v9 }
 0x1a9   : > { %v7067_v14 = vpop.eup %7066 }
 0x1aa   : > { %7080 = vrcp.f32 %v1083_v28 }
 0x1d5   : > { %v1133_v31 = vpop.permute.xlu0 %1132 }
 0x1d6   : > { %v1180_v21 = vmul.f32 %v7037_v17, %v1133_v31  ;;  %v7069_v17 = vpop.eup %7068 }
 0x1d7   : > { %v7071_v18 = vpop.eup %7070 }
 0x1d8   : > { %6394 = vmatprep.mubr.msk.f32.mxu0 %vm1204_vm9, %v1180_v21  ;;  %v7073_v22 = vpop.eup %7072 }
 0x1d9   : > { %v1135_v36 = vpop.permute.xlu0 %1134  ;;  %v1137_v49 = vpop.permute.xlu1 %1136 }
 0x1da   : > { %v1181_v51 = vmul.f32 %v7043_v24, %v1135_v36  ;;  %v1182_v29 = vmul.f32 %v7045_v45, %v1137_v49  ;;  %v7075_v23 = vpop.eup %7074 }
 0x1db   : > { %v7077_v50 = vpop.eup %7076 }
 0x1dc   : > { %6395 = vmatmul.mubr.msk.f32.vlgmr.msra.gmra.mrb[2].mxu0 %vm1204_vm9, %v1181_v51  ;;  %v7079_v46 = vpop.eup %7078 }
 0x1dd   : > { %v1139_v48 = vpop.permute.xlu1 %1138  ;;  %v1141_v55 = vpop.permute.xlu0 %1140  ;;  %6397 = vmatprep.mubr.msk.f32.mxu0 %vm1204_vm9, %v1182_v29 }
 0x1de   : > { %v1183_v57 = vmul.f32 %v7051_v52, %v1139_v48  ;;  %v1184_v58 = vmul.f32 %v7053_v42, %v1141_v55  ;;  %v7081_v52 = vpop.eup %7080 }
 0x1e0   : > { %6398 = vmatmul.mubr.msk.f32.gmra.mrb[4].mxu0 %vm1204_vm9, %v1183_v57 }
 0x1e1   : > { %v1143_v2 = vpop.permute.xlu1 %1142  ;;  %v1145_v3 = vpop.permute.xlu0 %1144  ;;  %6400 = vmatprep.mubr.msk.f32.mxu0 %vm1204_vm9, %v1184_v58 }
 0x1e2   : > { %v1185_v5 = vmul.f32 %v7061_v63, %v1143_v2  ;;  %v1186_v6 = vmul.f32 %v7059_v61, %v1145_v3 }
 0x1e4   : > { %6401 = vmatmul.mubr.msk.f32.gmra.mrb[6].mxu0 %vm1204_vm9, %v1185_v5 }
 0x1e5   : > { %v1147_v15 = vpop.permute.xlu1 %1146  ;;  %v1149_v16 = vpop.permute.xlu0 %1148  ;;  %6403 = vmatprep.mubr.msk.f32.mxu0 %vm1204_vm9, %v1186_v6 }
 0x1e6   : > { %v1187_v25 = vmul.f32 %v7065_v11, %v1147_v15  ;;  %v1188_v26 = vmul.f32 %v7067_v14, %v1149_v16 }
 0x1e8   : > { %6404 = vmatmul.mubr.msk.f32.gmra.mrb[8].mxu0 %vm1204_vm9, %v1187_v25 }
 0x1e9   : > { %v1151_v31 = vpop.permute.xlu1 %1150  ;;  %v1153_v34 = vpop.permute.xlu0 %1152  ;;  %6406 = vmatprep.mubr.msk.f32.mxu0 %vm1204_vm9, %v1188_v26 }
 0x1ea   : > { %v1189_v41 = vmul.f32 %v7069_v17, %v1151_v31  ;;  %v1190_v21 = vmul.f32 %v7071_v18, %v1153_v34 }
 0x1ec   : > { %6407 = vmatmul.mubr.msk.f32.gmra.mrb[10].mxu0 %vm1204_vm9, %v1189_v41 }
 0x1ed   : > { %v1155_v24 = vpop.permute.xlu1 %1154  ;;  %6409 = vmatprep.mubr.msk.f32.mxu0 %vm1204_vm9, %v1190_v21 }
 0x1ee   : > { %v1157_v45 = vpop.permute.xlu0 %1156  ;;  %v1191_v36 = vmul.f32 %v7073_v22, %v1155_v24 }
 0x1ef   : > { %v1192_v49 = vmul.f32 %v7075_v23, %v1157_v45 }
 0x1f0   : > { %6410 = vmatmul.mubr.msk.f32.gmra.mrb[12].mxu0 %vm1204_vm9, %v1191_v36 }
 0x1f1   : > { %v1159_v51 = vpop.permute.xlu1 %1158  ;;  %6412 = vmatprep.mubr.msk.f32.mxu0 %vm1204_vm9, %v1192_v49  ;;  %v1669_v49 = vld [vmem:[#allocation7] sm:$0xff] }
 0x1f2   : > { %v1161_v29 = vpop.permute.xlu0 %1160  ;;  %v1193_v35 = vmul.f32 %v7077_v50, %v1159_v51  ;;  %v1670_v50 = vld [vmem:[#allocation7 + $0x8] sm:$0xff] }
 0x1f3   : > { %v1194_v40 = vmul.f32 %v7079_v46, %v1161_v29  ;;  %v6817_v46 = vpack.c.bf16 %v1670_v50, %v1669_v49 }
 0x1f4   : > { %6413 = vmatmul.mubr.msk.f32.gmra.mrb[14].mxu0 %vm1204_vm9, %v1193_v35 }
 0x1f5   : > { %v1163_v42 = vpop.permute.xlu1 %1162  ;;  %6415 = vmatprep.mubr.msk.f32.mxu0 %vm1204_vm9, %v1194_v40  ;;  %6818 = vmatprep.subr.bf16.mxu1 %v6817_v46 }
 0x1f6   : > { %v1195_v48 = vmul.f32 %v7081_v52, %v1163_v42  ;;  %6820 = vmatpush3.bf16.msra.mxu1 %v6817_v46 }
 0x1f8   : > { %6416 = vmatmul.mubr.msk.f32.gmra.mrb[16].mxu0 %vm1204_vm9, %v1195_v48 }
 0x2af   : > { %v6396_v55 = vpop.f32.mrb[2].mxu0 }
 0x2b0   : > { %v7970_v54 = vadd.f32 %v6396_v55, %v7778_v8  ;;  %v1319_v56 = vpop.f32.mrb[3].mxu0 }
 0x2b1   : > { %v7973_v57 = vadd.f32 %v1319_v56, %v7775_v7 }
 0x2b2   : > { %v1419_v58 = vsel %vm546_vm1, %v7970_v54, 0.0 }
 0x2b3   : > { %1420 = vadd.xlane.f32.xlu1 %v1419_v58  ;;  %v6399_v59 = vpop.f32.mrb[4].mxu0  ;;  %v1416_v60 = vsel %vm546_vm1, %v7973_v57, 0.0 }
 0x2b4   : > { %1417 = vadd.xlane.f32.xlu0 %v1416_v60  ;;  %v1329_v61 = vpop.f32.mrb[5].mxu0  ;;  %v7983_v8 = vadd.f32 %v6399_v59, %v7790_v13 }
 0x2b5   : > { %v7980_v63 = vadd.f32 %v1329_v61, %v7787_v12 }
 0x2b6   : > { %v1425_v12 = vsel %vm546_vm1, %v7983_v8, 0.0 }
 0x2b7   : > { %v6402_v2 = vpop.f32.mrb[6].mxu0  ;;  %v1422_v7 = vsel %vm546_vm1, %v7980_v63, 0.0 }
 0x2b8   : > { %1423 = vadd.xlane.f32.xlu0 %v1422_v7  ;;  %v1339_v3 = vpop.f32.mrb[7].mxu0  ;;  %v7991_v5 = vadd.f32 %v6402_v2, %v7800_v20 }
 0x2b9   : > { %v7988_v4 = vadd.f32 %v1339_v3, %v7797_v19 }
 0x2ba   : > { %v1431_v20 = vsel %vm546_vm1, %v7991_v5, 0.0 }
 0x2bb   : > { %v6405_v6 = vpop.f32.mrb[8].mxu0  ;;  %v1428_v13 = vsel %vm546_vm1, %v7988_v4, 0.0 }
 0x2bc   : > { %1426 = vadd.xlane.f32.xlu0 %v1425_v12  ;;  %1429 = vadd.xlane.f32.xlu1 %v1428_v13  ;;  %v1349_v9 = vpop.f32.mrb[9].mxu0  ;;  %v8001_v11 = vadd.f32 %v6405_v6, %v7810_v30 }
 0x2bd   : > { %v7998_v10 = vadd.f32 %v1349_v9, %v7807_v27 }
 0x2be   : > { %v1437_v30 = vsel %vm546_vm1, %v8001_v11, 0.0 }
 0x2bf   : > { %v6408_v19 = vpop.f32.mrb[10].mxu0  ;;  %v1434_v14 = vsel %vm546_vm1, %v7998_v10, 0.0 }
 0x2c0   : > { %1432 = vadd.xlane.f32.xlu0 %v1431_v20  ;;  %1435 = vadd.xlane.f32.xlu1 %v1434_v14  ;;  %v1359_v15 = vpop.f32.mrb[11].mxu0  ;;  %v8011_v25 = vadd.f32 %v6408_v19, %v7818_v33 }
 0x2c1   : > { %v8008_v16 = vadd.f32 %v1359_v15, %v7815_v32 }
 0x2c2   : > { %v1443_v33 = vsel %vm546_vm1, %v8011_v25, 0.0 }
 0x2c3   : > { %v6411_v27 = vpop.f32.mrb[12].mxu0  ;;  %v1440_v26 = vsel %vm546_vm1, %v8008_v16, 0.0 }
 0x2c4   : > { %1438 = vadd.xlane.f32.xlu0 %v1437_v30  ;;  %1441 = vadd.xlane.f32.xlu1 %v1440_v26  ;;  %v1369_v28 = vpop.f32.mrb[13].mxu0  ;;  %v8021_v18 = vadd.f32 %v6411_v27, %v7826_v38 }
 0x2c5   : > { %v8018_v17 = vadd.f32 %v1369_v28, %v7823_v37 }
 0x2c6   : > { %v1449_v38 = vsel %vm546_vm1, %v8021_v18, 0.0 }
 0x2c7   : > { %v6414_v32 = vpop.f32.mrb[14].mxu0  ;;  %v1446_v31 = vsel %vm546_vm1, %v8018_v17, 0.0 }
 0x2c8   : > { %1444 = vadd.xlane.f32.xlu0 %v1443_v33  ;;  %1447 = vadd.xlane.f32.xlu1 %v1446_v31  ;;  %v1379_v34 = vpop.f32.mrb[15].mxu0  ;;  %v8031_v21 = vadd.f32 %v6414_v32, %v7835_v44 }
 0x2c9   : > { %v8028_v41 = vadd.f32 %v1379_v34, %v7832_v43 }
 0x2ca   : > { %v1455_v43 = vsel %vm546_vm1, %v8031_v21, 0.0 }
 0x2cb   : > { %v6417_v37 = vpop.f32.mrb[16].mxu0  ;;  %v1452_v22 = vsel %vm546_vm1, %v8028_v41, 0.0 }
 0x2cc   : > { %1450 = vadd.xlane.f32.xlu0 %v1449_v38  ;;  %1453 = vadd.xlane.f32.xlu1 %v1452_v22  ;;  %v1389_v23 = vpop.f32.mrb[17].mxu0  ;;  %v8041_v45 = vadd.f32 %v6417_v37, %v7853_v62 }
 0x2cd   : > { %v8038_v24 = vadd.f32 %v1389_v23, %v7844_v53 }
 0x2ce   : > { %v1461_v36 = vsel %vm546_vm1, %v8041_v45, 0.0 }
 0x2cf   : > { %v1458_v44 = vsel %vm546_vm1, %v8038_v24, 0.0 }
 0x2d0   : > { %1456 = vadd.xlane.f32.xlu0 %v1455_v43  ;;  %1459 = vadd.xlane.f32.xlu1 %v1458_v44 }
 0x2d4   : > { %1462 = vadd.xlane.f32.xlu0 %v1461_v36 }
 0x340   : > { %v1421_v53 = vpop.xlane.xlu1 %1420 }
 0x341   : > { %v1466_v62 = vmul.f32 0.03125, %v1421_v53  ;;  %v1418_v51 = vpop.xlane.xlu0 %1417 }
 0x342   : > { %v1465_v29 = vmul.f32 0.03125, %v1418_v51 }
 0x343   : > { %v8050_v35 = vsub.f32 %v7970_v54, %v1466_v62 }
 0x344   : > { %v8053_v40 = vsub.f32 %v7973_v57, %v1465_v29 }
 0x345   : > { %v1424_v52 = vpop.xlane.xlu0 %1423  ;;  %v1498_v42 = vmul.f32 %v8050_v35, %v8050_v35 }
 0x346   : > { %v1467_v48 = vmul.f32 0.03125, %v1424_v52  ;;  %v1497_v55 = vmul.f32 %v8053_v40, %v8053_v40 }
 0x347   : > { %v1516_v56 = vsel %vm546_vm1, %v1498_v42, 0.0 }
 0x348   : > { %v8061_v58 = vsub.f32 %v7980_v63, %v1467_v48  ;;  %1517 = vadd.xlane.f32.xlu0 %v1516_v56  ;;  %v1513_v59 = vsel %vm546_vm1, %v1497_v55, 0.0 }
 0x349   : > { %v1427_v60 = vpop.xlane.xlu0 %1426  ;;  %v1430_v61 = vpop.xlane.xlu1 %1429  ;;  %1514 = vadd.xlane.f32.xlu1 %v1513_v59 }
 0x34a   : > { %v1468_v2 = vmul.f32 0.03125, %v1427_v60  ;;  %v1469_v7 = vmul.f32 0.03125, %v1430_v61  ;;  %v1499_v3 = vmul.f32 %v8061_v58, %v8061_v58 }
 0x34c   : > { %v8067_v6 = vsub.f32 %v7983_v8, %v1468_v2  ;;  %v8070_v12 = vsub.f32 %v7988_v4, %v1469_v7  ;;  %v1519_v13 = vsel %vm546_vm1, %v1499_v3, 0.0 }
 0x34d   : > { %v1433_v9 = vpop.xlane.xlu0 %1432  ;;  %v1436_v19 = vpop.xlane.xlu1 %1435  ;;  %1520 = vadd.xlane.f32.xlu1 %v1519_v13 }
 0x34e   : > { %v1470_v20 = vmul.f32 0.03125, %v1433_v9  ;;  %v1471_v14 = vmul.f32 0.03125, %v1436_v19  ;;  %v1500_v15 = vmul.f32 %v8067_v6, %v8067_v6  ;;  %v1501_v27 = vmul.f32 %v8070_v12, %v8070_v12 }
 0x350   : > { %v8078_v30 = vsub.f32 %v7991_v5, %v1470_v20  ;;  %v8081_v26 = vsub.f32 %v7998_v10, %v1471_v14  ;;  %v1522_v28 = vsel %vm546_vm1, %v1500_v15, 0.0  ;;  %v1525_v32 = vsel %vm546_vm1, %v1501_v27, 0.0 }
 0x351   : > { %v1439_v33 = vpop.xlane.xlu0 %1438  ;;  %v1442_v31 = vpop.xlane.xlu1 %1441  ;;  %1523 = vadd.xlane.f32.xlu0 %v1522_v28  ;;  %1526 = vadd.xlane.f32.xlu1 %v1525_v32 }
 0x352   : > { %v1472_v34 = vmul.f32 0.03125, %v1439_v33  ;;  %v1473_v37 = vmul.f32 0.03125, %v1442_v31  ;;  %v1502_v38 = vmul.f32 %v8078_v30, %v8078_v30  ;;  %v1503_v22 = vmul.f32 %v8081_v26, %v8081_v26 }
 0x354   : > { %v8090_v23 = vsub.f32 %v8001_v11, %v1472_v34  ;;  %v8093_v43 = vsub.f32 %v8008_v16, %v1473_v37  ;;  %v1528_v44 = vsel %vm546_vm1, %v1502_v38, 0.0  ;;  %v1531_v36 = vsel %vm546_vm1, %v1503_v22, 0.0 }
 0x355   : > { %v1445_v49 = vpop.xlane.xlu0 %1444  ;;  %v1448_v50 = vpop.xlane.xlu1 %1447  ;;  %1529 = vadd.xlane.f32.xlu0 %v1528_v44  ;;  %1532 = vadd.xlane.f32.xlu1 %v1531_v36 }
 0x356   : > { %v1474_v46 = vmul.f32 0.03125, %v1445_v49  ;;  %v1475_v53 = vmul.f32 0.03125, %v1448_v50  ;;  %v1504_v62 = vmul.f32 %v8090_v23, %v8090_v23  ;;  %v1505_v51 = vmul.f32 %v8093_v43, %v8093_v43 }
 0x358   : > { %v8102_v29 = vsub.f32 %v8011_v25, %v1474_v46  ;;  %v8105_v52 = vsub.f32 %v8018_v17, %v1475_v53  ;;  %v1534_v42 = vsel %vm546_vm1, %v1504_v62, 0.0  ;;  %v1537_v48 = vsel %vm546_vm1, %v1505_v51, 0.0  ;;  %v1671_v53 = vld [vmem:[#allocation7 + $0x10] sm:$0xff]  ;;  %v1672_v62 = vld [vmem:[#allocation7 + $0x18] sm:$0xff] }
 0x359   : > { %v1451_v55 = vpop.xlane.xlu0 %1450  ;;  %v1454_v56 = vpop.xlane.xlu1 %1453  ;;  %1535 = vadd.xlane.f32.xlu0 %v1534_v42  ;;  %1538 = vadd.xlane.f32.xlu1 %v1537_v48  ;;  %v6821_v42 = vpack.c.bf16 %v1672_v62, %v1671_v53  ;;  %v1921_v48 = vld [vmem:[#allocation8] sm:$0xff] }
 0x35a   : > { %v1476_v59 = vmul.f32 0.03125, %v1451_v55  ;;  %v1477_v60 = vmul.f32 0.03125, %v1454_v56  ;;  %v1506_v61 = vmul.f32 %v8102_v29, %v8102_v29  ;;  %v1507_v2 = vmul.f32 %v8105_v52, %v8105_v52  ;;  %v1922_v55 = vld [vmem:[#allocation8 + $0x8] sm:$0xff]  ;;  %v1923_v56 = vld [vmem:[#allocation8 + $0x10] sm:$0xff] }
 0x35b   : > { %6822 = vmatprep.subr.bf16.mxu1 %v6821_v42 }
 0x35c   : > { %v8114_v7 = vsub.f32 %v8021_v18, %v1476_v59  ;;  %v8117_v3 = vsub.f32 %v8028_v41, %v1477_v60  ;;  %v1540_v13 = vsel %vm546_vm1, %v1506_v61, 0.0  ;;  %v1543_v9 = vsel %vm546_vm1, %v1507_v2, 0.0  ;;  %6824 = vmatpush3.bf16.msra.mxu1 %v6821_v42  ;;  %v1924_v60 = vld [vmem:[#allocation8 + $0x18] sm:$0xff] }
 0x35d   : > { %v1457_v19 = vpop.xlane.xlu0 %1456  ;;  %1541 = vadd.xlane.f32.xlu0 %v1540_v13  ;;  %1544 = vadd.xlane.f32.xlu1 %v1543_v9  ;;  %v1460_v20 = vpop.xlane.xlu1 %1459  ;;  %v6825_v59 = vpack.c.bf16 %v1922_v55, %v1921_v48  ;;  %v6829_v61 = vpack.c.bf16 %v1924_v60, %v1923_v56 }
 0x35e   : > { %v1478_v14 = vmul.f32 0.03125, %v1457_v19  ;;  %v1479_v15 = vmul.f32 0.03125, %v1460_v20  ;;  %v1508_v27 = vmul.f32 %v8114_v7, %v8114_v7  ;;  %v1509_v28 = vmul.f32 %v8117_v3, %v8117_v3  ;;  %6833 = vmatprep.subr.bf16.mxu1 %v7502_v0 }
 0x35f   : > { %6826 = vmatprep.subr.bf16.mxu0 %v6825_v59 }
 0x360   : > { %v8126_v32 = vsub.f32 %v8031_v21, %v1478_v14  ;;  %v8129_v33 = vsub.f32 %v8038_v24, %v1479_v15  ;;  %v1546_v31 = vsel %vm546_vm1, %v1508_v27, 0.0  ;;  %v1549_v34 = vsel %vm546_vm1, %v1509_v28, 0.0  ;;  %6828 = vmatpush3.bf16.msra.mxu0 %v6825_v59 }
 0x361   : > { %1547 = vadd.xlane.f32.xlu0 %v1546_v31  ;;  %v1463_v37 = vpop.xlane.xlu0 %1462  ;;  %1550 = vadd.xlane.f32.xlu1 %v1549_v34 }
 0x362   : > { %v1480_v38 = vmul.f32 0.03125, %v1463_v37  ;;  %v1510_v22 = vmul.f32 %v8126_v32, %v8126_v32  ;;  %v1511_v44 = vmul.f32 %v8129_v33, %v8129_v33  ;;  %6830 = vmatprep.subr.bf16.mxu0 %v6829_v61 }
 0x364   : > { %v8138_v36 = vsub.f32 %v8041_v45, %v1480_v38  ;;  %v1552_v49 = vsel %vm546_vm1, %v1510_v22, 0.0  ;;  %v1555_v50 = vsel %vm546_vm1, %v1511_v44, 0.0  ;;  %6832 = vmatpush3.bf16.msra.mxu0 %v6829_v61 }
 0x365   : > { %1553 = vadd.xlane.f32.xlu0 %v1552_v49  ;;  %1556 = vadd.xlane.f32.xlu1 %v1555_v50 }
 0x366   : > { %v1512_v46 = vmul.f32 %v8138_v36, %v8138_v36 }
 0x368   : > { %v1558_v51 = vsel %vm546_vm1, %v1512_v46, 0.0 }
 0x369   : > { %1559 = vadd.xlane.f32.xlu0 %v1558_v51  ;;  %v8149_v51 = vld [vmem:[%s9420_s4] ss:$0 sm:$0xff] }
 0x3d5   : > { %v1518_v2 = vpop.xlane.xlu0 %1517 }
 0x3d6   : > { %v1562_v13 = vmul.f32 0.03125, %v1518_v2  ;;  %v1515_v9 = vpop.xlane.xlu1 %1514 }
 0x3d7   : > { %v1561_v19 = vmul.f32 0.03125, %v1515_v9 }
 0x3d8   : > { %v1578_v20 = vadd.f32 1e-05, %v1562_v13 }
 0x3d9   : > { %v1577_v14 = vadd.f32 1e-05, %v1561_v19  ;;  %v8157_v19 = vld [vmem:[%s9421_s5] ss:$0 sm:$0xff] }
 0x3da   : > { %7082 = vrsqrt.f32 %v1578_v20  ;;  %v1521_v15 = vpop.xlane.xlu1 %1520 }
 0x3db   : > { %7084 = vrsqrt.f32 %v1577_v14  ;;  %v1563_v27 = vmul.f32 0.03125, %v1521_v15 }
 0x3dd   : > { %v1579_v28 = vadd.f32 1e-05, %v1563_v27 }
 0x3de   : > { %v1524_v31 = vpop.xlane.xlu0 %1523  ;;  %v1527_v34 = vpop.xlane.xlu1 %1526 }
 0x3df   : > { %7086 = vrsqrt.f32 %v1579_v28  ;;  %v1564_v37 = vmul.f32 0.03125, %v1524_v31  ;;  %v1565_v38 = vmul.f32 0.03125, %v1527_v34 }
 0x3e1   : > { %v1580_v22 = vadd.f32 1e-05, %v1564_v37  ;;  %v1581_v44 = vadd.f32 1e-05, %v1565_v38 }
 0x3e2   : > { %v1530_v49 = vpop.xlane.xlu0 %1529  ;;  %v1533_v50 = vpop.xlane.xlu1 %1532 }
 0x3e3   : > { %7088 = vrsqrt.f32 %v1580_v22  ;;  %v1566_v46 = vmul.f32 0.03125, %v1530_v49  ;;  %v1567_v53 = vmul.f32 0.03125, %v1533_v50 }
 0x3e4   : > { %v7083_v62 = vpop.eup %7082  ;;  %7090 = vrsqrt.f32 %v1581_v44 }
 0x3e5   : > { %v7085_v42 = vpop.eup %7084  ;;  %v1610_v48 = vmul.f32 %v7083_v62, %v8050_v35  ;;  %v1582_v55 = vadd.f32 1e-05, %v1566_v46  ;;  %v1583_v56 = vadd.f32 1e-05, %v1567_v53 }
 0x3e6   : > { %v1536_v59 = vpop.xlane.xlu0 %1535  ;;  %v1539_v60 = vpop.xlane.xlu1 %1538  ;;  %v1609_v61 = vmul.f32 %v7085_v42, %v8053_v40 }
 0x3e7   : > { %v1632_v2 = vmul.f32 %v8149_v51, %v1610_v48  ;;  %7092 = vrsqrt.f32 %v1582_v55  ;;  %v1568_v13 = vmul.f32 0.03125, %v1536_v59  ;;  %v1569_v9 = vmul.f32 0.03125, %v1539_v60 }
 0x3e8   : > { %7094 = vrsqrt.f32 %v1583_v56  ;;  %v1631_v20 = vmul.f32 %v8149_v51, %v1609_v61 }
 0x3e9   : > { %v7087_v35 = vpop.eup %7086  ;;  %v1584_v14 = vadd.f32 1e-05, %v1568_v13  ;;  %v1585_v15 = vadd.f32 1e-05, %v1569_v9  ;;  %v1654_v38 = vadd.f32 %v8157_v19, %v1632_v2 }
 0x3ea   : > { %v1542_v27 = vpop.xlane.xlu0 %1541  ;;  %v1545_v28 = vpop.xlane.xlu1 %1544  ;;  %v1653_v40 = vadd.f32 %v8157_v19, %v1631_v20  ;;  %v1611_v31 = vmul.f32 %v7087_v35, %v8061_v58 }
 0x3eb   : > { %7096 = vrsqrt.f32 %v1584_v14  ;;  %v1570_v34 = vmul.f32 0.03125, %v1542_v27  ;;  %v1571_v37 = vmul.f32 0.03125, %v1545_v28 }
 0x3ec   : > { %7098 = vrsqrt.f32 %v1585_v15  ;;  %6426 = vmatprep.mubr.msk.f32.mxu1 %vm546_vm1, %v1653_v40  ;;  %v1633_v22 = vmul.f32 %v8149_v51, %v1611_v31 }
 0x3ed   : > { %v7089_v44 = vpop.eup %7088  ;;  %v1586_v49 = vadd.f32 1e-05, %v1570_v34  ;;  %v1587_v50 = vadd.f32 1e-05, %v1571_v37  ;;  %6427 = vmatmul.mubr.msk.f32.vlgmr.msra.gmra.mrb[16].mxu1 %vm546_vm1, %v1654_v38 }
 0x3ee   : > { %v7091_v46 = vpop.eup %7090  ;;  %v1548_v53 = vpop.xlane.xlu0 %1547  ;;  %v1655_v58 = vadd.f32 %v8157_v19, %v1633_v22  ;;  %v1612_v42 = vmul.f32 %v7089_v44, %v8067_v6 }
 0x3ef   : > { %v1551_v62 = vpop.xlane.xlu1 %1550  ;;  %7100 = vrsqrt.f32 %v1586_v49  ;;  %v1572_v48 = vmul.f32 0.03125, %v1548_v53  ;;  %v1613_v56 = vmul.f32 %v7091_v46, %v8070_v12 }
 0x3f0   : > { %v1573_v55 = vmul.f32 0.03125, %v1551_v62  ;;  %7102 = vrsqrt.f32 %v1587_v50  ;;  %6429 = vmatprep.mubr.msk.f32.mxu1 %vm546_vm1, %v1655_v58  ;;  %v1634_v59 = vmul.f32 %v8149_v51, %v1612_v42 }
 0x3f1   : > { %v7093_v60 = vpop.eup %7092  ;;  %v1588_v61 = vadd.f32 1e-05, %v1572_v48  ;;  %v1635_v13 = vmul.f32 %v8149_v51, %v1613_v56 }
 0x3f2   : > { %v1589_v2 = vadd.f32 1e-05, %v1573_v55  ;;  %v7095_v9 = vpop.eup %7094  ;;  %v1554_v20 = vpop.xlane.xlu0 %1553  ;;  %v1656_v6 = vadd.f32 %v8157_v19, %v1634_v59  ;;  %v1614_v14 = vmul.f32 %v7093_v60, %v8078_v30 }
 0x3f3   : > { %v1557_v35 = vpop.xlane.xlu1 %1556  ;;  %7104 = vrsqrt.f32 %v1588_v61  ;;  %v1574_v15 = vmul.f32 0.03125, %v1554_v20  ;;  %v1657_v27 = vadd.f32 %v8157_v19, %v1635_v13  ;;  %v1615_v40 = vmul.f32 %v7095_v9, %v8081_v26 }
 0x3f4   : > { %v1575_v12 = vmul.f32 0.03125, %v1557_v35  ;;  %7106 = vrsqrt.f32 %v1589_v2  ;;  %6430 = vmatmul.mubr.msk.f32.gmra.mrb[18].mxu1 %vm546_vm1, %v1656_v6  ;;  %v1636_v28 = vmul.f32 %v8149_v51, %v1614_v14 }
 0x3f5   : > { %v7097_v31 = vpop.eup %7096  ;;  %v1590_v34 = vadd.f32 1e-05, %v1574_v15  ;;  %6432 = vmatprep.mubr.msk.f32.mxu1 %vm546_vm1, %v1657_v27  ;;  %v1637_v44 = vmul.f32 %v8149_v51, %v1615_v40 }
 0x3f6   : > { %v1591_v37 = vadd.f32 1e-05, %v1575_v12  ;;  %v7099_v38 = vpop.eup %7098  ;;  %v1560_v22 = vpop.xlane.xlu0 %1559  ;;  %v1658_v30 = vadd.f32 %v8157_v19, %v1636_v28  ;;  %v1616_v49 = vmul.f32 %v7097_v31, %v8090_v23 }
 0x3f7   : > { %7108 = vrsqrt.f32 %v1590_v34  ;;  %v1576_v50 = vmul.f32 0.03125, %v1560_v22  ;;  %v1617_v46 = vmul.f32 %v7099_v38, %v8093_v43  ;;  %v1659_v26 = vadd.f32 %v8157_v19, %v1637_v44  ;;  %v8225_v38 = vld [vmem:[%s9423_s7] ss:$0 sm:$0xff] }
 0x3f8   : > { %7110 = vrsqrt.f32 %v1591_v37  ;;  %6433 = vmatmul.mubr.msk.f32.gmra.mrb[20].mxu1 %vm546_vm1, %v1658_v30  ;;  %v1638_v53 = vmul.f32 %v8149_v51, %v1616_v49 }
 0x3f9   : > { %v7101_v62 = vpop.eup %7100  ;;  %v1592_v58 = vadd.f32 1e-05, %v1576_v50  ;;  %v1639_v42 = vmul.f32 %v8149_v51, %v1617_v46  ;;  %6435 = vmatprep.mubr.msk.f32.mxu1 %vm546_vm1, %v1659_v26 }
 0x3fa   : > { %v7103_v48 = vpop.eup %7102  ;;  %v1660_v23 = vadd.f32 %v8157_v19, %v1638_v53  ;;  %v1618_v55 = vmul.f32 %v7101_v62, %v8102_v29 }
 0x3fb   : > { %7112 = vrsqrt.f32 %v1592_v58  ;;  %v1661_v43 = vadd.f32 %v8157_v19, %v1639_v42  ;;  %v1619_v56 = vmul.f32 %v7103_v48, %v8105_v52 }
 0x3fc   : > { %6436 = vmatmul.mubr.msk.f32.gmra.mrb[22].mxu1 %vm546_vm1, %v1660_v23  ;;  %v1640_v59 = vmul.f32 %v8149_v51, %v1618_v55 }
 0x3fd   : > { %v7105_v60 = vpop.eup %7104  ;;  %6438 = vmatprep.mubr.msk.f32.mxu1 %vm546_vm1, %v1661_v43  ;;  %v1641_v61 = vmul.f32 %v8149_v51, %v1619_v56 }
 0x3fe   : > { %v7107_v2 = vpop.eup %7106  ;;  %v1662_v13 = vadd.f32 %v8157_v19, %v1640_v59  ;;  %v1620_v9 = vmul.f32 %v7105_v60, %v8114_v7 }
 0x3ff   : > { %v1663_v29 = vadd.f32 %v8157_v19, %v1641_v61  ;;  %v1621_v20 = vmul.f32 %v7107_v2, %v8117_v3 }
 0x400   : > { %6439 = vmatmul.mubr.msk.f32.gmra.mrb[24].mxu1 %vm546_vm1, %v1662_v13  ;;  %v1642_v52 = vmul.f32 %v8149_v51, %v1620_v9 }
 0x401   : > { %v7109_v35 = vpop.eup %7108  ;;  %6441 = vmatprep.mubr.msk.f32.mxu1 %vm546_vm1, %v1663_v29  ;;  %v1643_v6 = vmul.f32 %v8149_v51, %v1621_v20 }
 0x402   : > { %v7111_v14 = vpop.eup %7110  ;;  %v1664_v15 = vadd.f32 %v8157_v19, %v1642_v52  ;;  %v1622_v12 = vmul.f32 %v7109_v35, %v8126_v32 }
 0x403   : > { %v1665_v7 = vadd.f32 %v8157_v19, %v1643_v6  ;;  %v1623_v27 = vmul.f32 %v7111_v14, %v8129_v33 }
 0x404   : > { %6442 = vmatmul.mubr.msk.f32.gmra.mrb[26].mxu1 %vm546_vm1, %v1664_v15  ;;  %v1644_v3 = vmul.f32 %v8149_v51, %v1622_v12 }
 0x405   : > { %v7113_v28 = vpop.eup %7112  ;;  %6444 = vmatprep.mubr.msk.f32.mxu1 %vm546_vm1, %v1665_v7  ;;  %v1645_v40 = vmul.f32 %v8149_v51, %v1623_v27 }
 0x406   : > { %v1666_v31 = vadd.f32 %v8157_v19, %v1644_v3  ;;  %v1624_v34 = vmul.f32 %v7113_v28, %v8138_v36 }
 0x407   : > { %v1667_v37 = vadd.f32 %v8157_v19, %v1645_v40 }
 0x408   : > { %6445 = vmatmul.mubr.msk.f32.gmra.mrb[28].mxu1 %vm546_vm1, %v1666_v31  ;;  %v1646_v32 = vmul.f32 %v8149_v51, %v1624_v34 }
 0x409   : > { %6447 = vmatprep.mubr.msk.f32.mxu1 %vm546_vm1, %v1667_v37 }
 0x40a   : > { %v1668_v33 = vadd.f32 %v8157_v19, %v1646_v32 }
 0x40c   : > { %6448 = vmatmul.mubr.msk.f32.gmra.mrb[30].mxu1 %vm546_vm1, %v1668_v33 }
 0x40d   : > { %6490 = vmatprep.mubr.msk.f32.mxu1 %vm7503_vm0, %v7504_v1 }
 0x4c0   : > { %v6428_v36 = vpop.f32.mrb[16].mxu1 }
 0x4c1   : > { %v1800_v22 = vadd.f32 %v6428_v36, %v8225_v38  ;;  %v1794_v30 = vpop.f32.mrb[17].mxu1 }
 0x4c2   : > { %v1795_v51 = vadd.f32 %v8225_v38, %v1794_v30 }
 0x4c3   : > { %v1890_v44 = vmul.f32 0.01, %v1800_v22  ;;  %vm1874_vm10 = vcmp.ge.f32.partialorder %v1800_v22, 0.0 }
 0x4c4   : > { %vm1873_vm11 = vcmp.ge.f32.partialorder %v1795_v51, 0.0  ;;  %v1889_v19 = vmul.f32 0.01, %v1795_v51 }
 0x4c5   : > { %v1906_v50 = vsel %vm1874_vm10, %v1800_v22, %v1890_v44 }
 0x4c6   : > { %v1905_v49 = vsel %vm1873_vm11, %v1795_v51, %v1889_v19 }
 0x4c7   : > { %v6431_v46 = vpop.f32.mrb[18].mxu1  ;;  %6458 = vmatprep.mubr.msk.f32.mxu0 %vm546_vm1, %v1905_v49 }
 0x4c8   : > { %v1810_v26 = vadd.f32 %v6431_v46, %v8225_v38  ;;  %v1804_v53 = vpop.f32.mrb[19].mxu1  ;;  %6459 = vmatmul.mubr.msk.f32.vlgmr.msra.gmra.mrb[18].mxu0 %vm546_vm1, %v1906_v50 }
 0x4c9   : > { %v1805_v62 = vadd.f32 %v8225_v38, %v1804_v53 }
 0x4ca   : > { %v1892_v58 = vmul.f32 0.01, %v1810_v26  ;;  %vm1876_vm12 = vcmp.ge.f32.partialorder %v1810_v26, 0.0 }
 0x4cb   : > { %vm1875_vm13 = vcmp.ge.f32.partialorder %v1805_v62, 0.0  ;;  %v1891_v42 = vmul.f32 0.01, %v1805_v62  ;;  %v6434_v48 = vpop.f32.mrb[20].mxu1 }
 0x4cc   : > { %v1820_v23 = vadd.f32 %v6434_v48, %v8225_v38  ;;  %v1814_v55 = vpop.f32.mrb[21].mxu1  ;;  %v1908_v60 = vsel %vm1876_vm12, %v1810_v26, %v1892_v58 }
 0x4cd   : > { %v1815_v43 = vadd.f32 %v8225_v38, %v1814_v55  ;;  %v1907_v56 = vsel %vm1875_vm13, %v1805_v62, %v1891_v42 }
 0x4ce   : > { %v1894_v59 = vmul.f32 0.01, %v1820_v23  ;;  %6461 = vmatprep.mubr.msk.f32.mxu0 %vm546_vm1, %v1907_v56  ;;  %vm1878_vm14 = vcmp.ge.f32.partialorder %v1820_v23, 0.0 }
 0x4cf   : > { %vm1877_vm15 = vcmp.ge.f32.partialorder %v1815_v43, 0.0  ;;  %v1893_v61 = vmul.f32 0.01, %v1815_v43  ;;  %v6437_v2 = vpop.f32.mrb[22].mxu1  ;;  %6462 = vmatmul.mubr.msk.f32.gmra.mrb[20].mxu0 %vm546_vm1, %v1908_v60 }
 0x4d0   : > { %v1830_v13 = vadd.f32 %v6437_v2, %v8225_v38  ;;  %v1824_v9 = vpop.f32.mrb[23].mxu1  ;;  %v1910_v35 = vsel %vm1878_vm14, %v1820_v23, %v1894_v59  ;;  %v2215_v2 = vld [vmem:[#allocation5 + $0x28] sm:$0xff] }
 0x4d1   : > { %v1825_v29 = vadd.f32 %v8225_v38, %v1824_v9  ;;  %v1909_v20 = vsel %vm1877_vm15, %v1815_v43, %v1893_v61  ;;  %v2214_v61 = vld [vmem:[#allocation5 + $0x20] sm:$0xff]  ;;  %v2217_v9 = vld [vmem:[#allocation5 + $0x38] sm:$0xff] }
 0x4d2   : > { %v1896_v52 = vmul.f32 0.01, %v1830_v13  ;;  %6464 = vmatprep.mubr.msk.f32.mxu0 %vm546_vm1, %v1909_v20  ;;  %vm1880_vm10 = vcmp.ge.f32.partialorder %v1830_v13, 0.0 }
 0x4d3   : > { %vm1879_vm11 = vcmp.ge.f32.partialorder %v1825_v29, 0.0  ;;  %v1895_v6 = vmul.f32 0.01, %v1825_v29  ;;  %v6440_v14 = vpop.f32.mrb[24].mxu1  ;;  %6465 = vmatmul.mubr.msk.f32.gmra.mrb[22].mxu0 %vm546_vm1, %v1910_v35 }
 0x4d4   : > { %v1840_v15 = vadd.f32 %v6440_v14, %v8225_v38  ;;  %v1834_v12 = vpop.f32.mrb[25].mxu1  ;;  %v1912_v28 = vsel %vm1880_vm10, %v1830_v13, %v1896_v52  ;;  %v6834_v13 = vpack.c.bf16 %v2215_v2, %v2214_v61  ;;  %v2307_v52 = vld [vmem:[#allocation2 + $0x28] sm:$0xff] }
 0x4d5   : > { %v1835_v7 = vadd.f32 %v8225_v38, %v1834_v12  ;;  %v1911_v27 = vsel %vm1879_vm11, %v1825_v29, %v1895_v6  ;;  %v2306_v29 = vld [vmem:[#allocation2 + $0x20] sm:$0xff] }
 0x4d6   : > { %v1898_v3 = vmul.f32 0.01, %v1840_v15  ;;  %6467 = vmatprep.mubr.msk.f32.mxu0 %vm546_vm1, %v1911_v27  ;;  %vm1882_vm12 = vcmp.ge.f32.partialorder %v1840_v15, 0.0  ;;  %6835 = vmatpush3.bf16.msra.mxu1 %v6834_v13  ;;  %v8260_v35 = vpack.c.bf16 %v2307_v52, %v2306_v29 }
 0x4d7   : > { %vm1881_vm13 = vcmp.ge.f32.partialorder %v1835_v7, 0.0  ;;  %v1897_v40 = vmul.f32 0.01, %v1835_v7  ;;  %v6443_v31 = vpop.f32.mrb[26].mxu1  ;;  %6468 = vmatmul.mubr.msk.f32.gmra.mrb[24].mxu0 %vm546_vm1, %v1912_v28  ;;  %6836 = vmatprep.subr.bf16.mxu1 %v7502_v0 }
 0x4d8   : > { %v1850_v34 = vadd.f32 %v6443_v31, %v8225_v38  ;;  %v1844_v37 = vpop.f32.mrb[27].mxu1  ;;  %v1914_v22 = vsel %vm1882_vm12, %v1840_v15, %v1898_v3  ;;  %v8266_v15 = vld [vmem:[%s9425_s9] ss:$0 sm:$0xff] }
 0x4d9   : > { %v1845_v32 = vadd.f32 %v8225_v38, %v1844_v37  ;;  %v1913_v33 = vsel %vm1881_vm13, %v1835_v7, %v1897_v40 }
 0x4da   : > { %v1900_v36 = vmul.f32 0.01, %v1850_v34  ;;  %6470 = vmatprep.mubr.msk.f32.mxu0 %vm546_vm1, %v1913_v33  ;;  %vm1884_vm14 = vcmp.ge.f32.partialorder %v1850_v34, 0.0 }
 0x4db   : > { %vm1883_vm15 = vcmp.ge.f32.partialorder %v1845_v32, 0.0  ;;  %v1899_v30 = vmul.f32 0.01, %v1845_v32  ;;  %v6446_v51 = vpop.f32.mrb[28].mxu1  ;;  %6471 = vmatmul.mubr.msk.f32.gmra.mrb[26].mxu0 %vm546_vm1, %v1914_v22 }
 0x4dc   : > { %v1860_v44 = vadd.f32 %v6446_v51, %v8225_v38  ;;  %v1854_v19 = vpop.f32.mrb[29].mxu1  ;;  %v1916_v26 = vsel %vm1884_vm14, %v1850_v34, %v1900_v36 }
 0x4dd   : > { %v1855_v49 = vadd.f32 %v8225_v38, %v1854_v19  ;;  %v1915_v50 = vsel %vm1883_vm15, %v1845_v32, %v1899_v30 }
 0x4de   : > { %v1902_v46 = vmul.f32 0.01, %v1860_v44  ;;  %6473 = vmatprep.mubr.msk.f32.mxu0 %vm546_vm1, %v1915_v50  ;;  %vm1886_vm10 = vcmp.ge.f32.partialorder %v1860_v44, 0.0 }
 0x4df   : > { %vm1885_vm11 = vcmp.ge.f32.partialorder %v1855_v49, 0.0  ;;  %v1901_v53 = vmul.f32 0.01, %v1855_v49  ;;  %v6449_v62 = vpop.f32.mrb[30].mxu1  ;;  %6474 = vmatmul.mubr.msk.f32.gmra.mrb[28].mxu0 %vm546_vm1, %v1916_v26 }
 0x4e0   : > { %v1870_v58 = vadd.f32 %v6449_v62, %v8225_v38  ;;  %v1864_v42 = vpop.f32.mrb[31].mxu1  ;;  %v1918_v43 = vsel %vm1886_vm10, %v1860_v44, %v1902_v46 }
 0x4e1   : > { %v1865_v48 = vadd.f32 %v8225_v38, %v1864_v42  ;;  %v1917_v23 = vsel %vm1885_vm11, %v1855_v49, %v1901_v53  ;;  %v2216_v38 = vld [vmem:[#allocation5 + $0x30] sm:$0xff] }
 0x4e2   : > { %v1904_v55 = vmul.f32 0.01, %v1870_v58  ;;  %6476 = vmatprep.mubr.msk.f32.mxu0 %vm546_vm1, %v1917_v23  ;;  %vm1888_vm12 = vcmp.ge.f32.partialorder %v1870_v58, 0.0  ;;  %v6837_v20 = vpack.c.bf16 %v2217_v9, %v2216_v38 }
 0x4e3   : > { %vm1887_vm13 = vcmp.ge.f32.partialorder %v1865_v48, 0.0  ;;  %v1903_v56 = vmul.f32 0.01, %v1865_v48  ;;  %6477 = vmatmul.mubr.msk.f32.gmra.mrb[30].mxu0 %vm546_vm1, %v1918_v43 }
 0x4e4   : > { %v1920_v60 = vsel %vm1888_vm12, %v1870_v58, %v1904_v55  ;;  %6838 = vmatpush3.bf16.msra.mxu1 %v6837_v20 }
 0x4e5   : > { %v1919_v59 = vsel %vm1887_vm13, %v1865_v48, %v1903_v56  ;;  %6840 = vmatprep.subr.bf16.mxu1 %v8260_v35 }
 0x4e6   : > { %6479 = vmatprep.mubr.msk.f32.mxu0 %vm546_vm1, %v1919_v59 }
 0x4e7   : > { %6480 = vmatmul.mubr.msk.f32.gmra.mrb[32].mxu0 %vm546_vm1, %v1920_v60 }
 0x59b   : > { %v6460_v6 = vpop.f32.mrb[18].mxu0 }
 0x59c   : > { %v2046_v14 = vpop.f32.mrb[19].mxu0  ;;  %v2052_v3 = vadd.f32 %v6460_v6, %v8266_v15 }
 0x59d   : > { %v2047_v28 = vadd.f32 %v8266_v15, %v2046_v14 }
 0x59e   : > { %v8280_v36 = vadd.f32 %v2052_v3, %v7970_v54 }
 0x59f   : > { %v8283_v22 = vadd.f32 %v2047_v28, %v7973_v57 }
 0x5a1   : > { %v2141_v50 = vsel %vm546_vm1, %v8283_v22, -inf }
 0x5a2   : > { %v6463_v12 = vpop.f32.mrb[20].mxu0 }
 0x5a3   : > { %v2062_v7 = vadd.f32 %v6463_v12, %v8266_v15  ;;  %v2056_v27 = vpop.f32.mrb[21].mxu0 }
 0x5a4   : > { %v2057_v40 = vadd.f32 %v8266_v15, %v2056_v27 }
 0x5a5   : > { %v8273_v31 = vadd.f32 %v2062_v7, %v7983_v8 }
 0x5a6   : > { %v8276_v34 = vadd.f32 %v2057_v40, %v7980_v63  ;;  %v6466_v37 = vpop.f32.mrb[22].mxu0 }
 0x5a7   : > { %v2072_v32 = vadd.f32 %v6466_v37, %v8266_v15  ;;  %v2066_v33 = vpop.f32.mrb[23].mxu0  ;;  %v2151_v8 = vsel %vm546_vm1, %v8273_v31, -inf }
 0x5a8   : > { %v2067_v30 = vadd.f32 %v8266_v15, %v2066_v33  ;;  %v2150_v63 = vsel %vm546_vm1, %v8276_v34, -inf }
 0x5a9   : > { %v8287_v51 = vadd.f32 %v2072_v32, %v7991_v5  ;;  %v2142_v5 = vsel %vm546_vm1, %v8280_v36, -inf }
 0x5aa   : > { %v8294_v44 = vadd.f32 %v2067_v30, %v7988_v4  ;;  %v6469_v19 = vpop.f32.mrb[24].mxu0  ;;  %v2152_v4 = vmax.f32 %v2150_v63, %v2151_v8  ;;  %v2143_v48 = vmax.f32 %v2141_v50, %v2142_v5 }
 0x5ab   : > { %v2160_v54 = vsel %vm546_vm1, %v8287_v51, -inf  ;;  %v2082_v57 = vadd.f32 %v6469_v19, %v8266_v15  ;;  %v2076_v49 = vpop.f32.mrb[25].mxu0 }
 0x5ac   : > { %v2159_v46 = vsel %vm546_vm1, %v8294_v44, -inf  ;;  %v2077_v26 = vadd.f32 %v8266_v15, %v2076_v49  ;;  %v2153_v60 = vrot.slane %v2152_v4, 4  ;;  %v2144_v38 = vrot.slane %v2143_v48, 4 }
 0x5ad   : > { %v8307_v53 = vadd.f32 %v2082_v57, %v8001_v11  ;;  %v2161_v62 = vmax.f32 %v2159_v46, %v2160_v54 }
 0x5ae   : > { %v8310_v58 = vadd.f32 %v2077_v26, %v7998_v10  ;;  %v6472_v42 = vpop.f32.mrb[26].mxu0  ;;  %v2145_v28 = vmax.f32 %v2143_v48, %v2144_v38 }
 0x5af   : > { %v2169_v23 = vsel %vm546_vm1, %v8307_v53, -inf  ;;  %v2092_v55 = vadd.f32 %v6472_v42, %v8266_v15  ;;  %v2086_v43 = vpop.f32.mrb[27].mxu0  ;;  %v2162_v10 = vrot.slane %v2161_v62, 4 }
 0x5b0   : > { %v2168_v56 = vsel %vm546_vm1, %v8310_v58, -inf  ;;  %v2087_v59 = vadd.f32 %v8266_v15, %v2086_v43  ;;  %v2146_v50 = vrot.slane %v2145_v28, 2 }
 0x5b1   : > { %v2170_v11 = vmax.f32 %v2168_v56, %v2169_v23  ;;  %v8319_v61 = vadd.f32 %v2092_v55, %v8011_v25  ;;  %v2154_v25 = vmax.f32 %v2152_v4, %v2153_v60  ;;  %v2163_v7 = vmax.f32 %v2161_v62, %v2162_v10 }
 0x5b2   : > { %v8322_v2 = vadd.f32 %v2087_v59, %v8008_v16  ;;  %v6475_v13 = vpop.f32.mrb[28].mxu0 }
 0x5b3   : > { %v2171_v9 = vrot.slane %v2170_v11, 4  ;;  %v2178_v29 = vsel %vm546_vm1, %v8319_v61, -inf  ;;  %v2096_v20 = vpop.f32.mrb[29].mxu0  ;;  %v2102_v6 = vadd.f32 %v6475_v13, %v8266_v15 }
 0x5b4   : > { %v2177_v52 = vsel %vm546_vm1, %v8322_v2, -inf  ;;  %v2097_v14 = vadd.f32 %v8266_v15, %v2096_v20 }
 0x5b5   : > { %v2179_v12 = vmax.f32 %v2177_v52, %v2178_v29  ;;  %v8331_v16 = vadd.f32 %v2102_v6, %v8021_v18  ;;  %v2172_v40 = vmax.f32 %v2170_v11, %v2171_v9  ;;  %v2155_v18 = vrot.slane %v2154_v25, 2 }
 0x5b6   : > { %v8334_v27 = vadd.f32 %v2097_v14, %v8018_v17  ;;  %v6478_v3 = vpop.f32.mrb[30].mxu0  ;;  %v2164_v17 = vrot.slane %v2163_v7, 2  ;;  %v2147_v11 = vmax.f32 %v2145_v28, %v2146_v50 }
 0x5b7   : > { %v2180_v37 = vrot.slane %v2179_v12, 4  ;;  %v2106_v32 = vpop.f32.mrb[31].mxu0  ;;  %v2187_v33 = vsel %vm546_vm1, %v8331_v16, -inf  ;;  %v2112_v8 = vadd.f32 %v6478_v3, %v8266_v15  ;;  %v2173_v46 = vrot.slane %v2172_v40, 2 }
 0x5b8   : > { %v2186_v30 = vsel %vm546_vm1, %v8334_v27, -inf  ;;  %v2107_v63 = vadd.f32 %v8266_v15, %v2106_v32  ;;  %v2156_v55 = vmax.f32 %v2154_v25, %v2155_v18  ;;  %v2165_v56 = vmax.f32 %v2163_v7, %v2164_v17 }
 0x5b9   : > { %v2181_v19 = vmax.f32 %v2179_v12, %v2180_v37  ;;  %v2188_v54 = vmax.f32 %v2186_v30, %v2187_v33  ;;  %v8343_v57 = vadd.f32 %v2112_v8, %v8031_v21  ;;  %v2174_v10 = vmax.f32 %v2172_v40, %v2173_v46 }
 0x5ba   : > { %v8346_v49 = vadd.f32 %v2107_v63, %v8028_v41  ;;  %v6481_v5 = vpop.f32.mrb[32].mxu0  ;;  %v2157_v20 = vrot.slane %v2156_v55, 1  ;;  %v2148_v25 = vrot.slane %v2147_v11, 1 }
 0x5bb   : > { %v2182_v26 = vrot.slane %v2181_v19, 2  ;;  %v2189_v4 = vrot.slane %v2188_v54, 4  ;;  %v2116_v62 = vpop.f32.mrb[33].mxu0  ;;  %v2196_v42 = vsel %vm546_vm1, %v8343_v57, -inf  ;;  %v2122_v23 = vadd.f32 %v6481_v5, %v8266_v15 }
 0x5bc   : > { %v2195_v48 = vsel %vm546_vm1, %v8346_v49, -inf  ;;  %v2117_v21 = vadd.f32 %v8266_v15, %v2116_v62  ;;  %v2175_v12 = vrot.slane %v2174_v10, 1  ;;  %v2158_v28 = vmax.f32 %v2156_v55, %v2157_v20  ;;  %v2308_v62 = vld [vmem:[#allocation2 + $0x30] sm:$0xff] }
 0x5bd   : > { %v2190_v43 = vmax.f32 %v2188_v54, %v2189_v4  ;;  %v2197_v41 = vmax.f32 %v2195_v48, %v2196_v42  ;;  %v8355_v59 = vadd.f32 %v2122_v23, %v8041_v45  ;;  %v2183_v9 = vmax.f32 %v2181_v19, %v2182_v26  ;;  %v2309_v42 = vld [vmem:[#allocation2 + $0x38] sm:$0xff]  ;;  %v5899_v20 = vld [vmem:[%s9419_s3 + $0x70] sm:$0xff] }
 0x5be   : > { %v8358_v60 = vadd.f32 %v2117_v21, %v8038_v24  ;;  %v2166_v45 = vrot.slane %v2165_v56, 1  ;;  %v2149_v30 = vmax.f32 %v2147_v11, %v2148_v25  ;;  %v2176_v8 = vmax.f32 %v2174_v10, %v2175_v12  ;;  %v5895_v11 = vld [vmem:[%s9419_s3 + $0x50] sm:$0xff] }
 0x5bf   : > { %v2191_v13 = vrot.slane %v2190_v43, 2  ;;  %v2198_v38 = vrot.slane %v2197_v41, 4  ;;  %v2205_v29 = vsel %vm546_vm1, %v8355_v59, -inf  ;;  %v2184_v3 = vrot.slane %v2183_v9, 1 }
 0x5c0   : > { %v2204_v15 = vsel %vm546_vm1, %v8358_v60, -inf  ;;  %v2167_v33 = vmax.f32 %v2165_v56, %v2166_v45  ;;  %v2226_v54 = vsel %vm631_vm2, %v2158_v28, %v2149_v30  ;;  %v5894_v56 = vld [vmem:[%s9419_s3 + $0x48] sm:$0xff] }
 0x5c1   : > { %v2192_v52 = vmax.f32 %v2190_v43, %v2191_v13  ;;  %v2199_v6 = vmax.f32 %v2197_v41, %v2198_v38  ;;  %v2206_v14 = vmax.f32 %v2204_v15, %v2205_v29  ;;  %v2185_v19 = vmax.f32 %v2183_v9, %v2184_v3  ;;  %v5896_v13 = vld [vmem:[%s9419_s3 + $0x58] sm:$0xff]  ;;  %v5897_v9 = vld [vmem:[%s9419_s3 + $0x60] sm:$0xff]  ;;  %v5898_v29 = vld [vmem:[%s9419_s3 + $0x68] sm:$0xff] }
 0x5c2   : > { %v2227_v50 = vsel %vm633_vm3, %v2167_v33, %v2226_v54  ;;  %v6843_v43 = vpack.c.bf16 %v2309_v42, %v2308_v62  ;;  %v6851_v38 = vpack.c.bf16 %v5896_v13, %v5895_v11  ;;  %v6855_v15 = vpack.c.bf16 %v5898_v29, %v5897_v9 }
 0x5c3   : > { %v2200_v24 = vrot.slane %v2199_v6, 2  ;;  %v2207_v7 = vrot.slane %v2206_v14, 4  ;;  %v2193_v40 = vrot.slane %v2192_v52, 1  ;;  %v2228_v4 = vsel %vm635_vm4, %v2176_v8, %v2227_v50 }
 0x5c4   : > { %v2229_v48 = vsel %vm637_vm5, %v2185_v19, %v2228_v4 }
 0x5c5   : > { %v2201_v37 = vmax.f32 %v2199_v6, %v2200_v24  ;;  %v2208_v32 = vmax.f32 %v2206_v14, %v2207_v7  ;;  %v2194_v17 = vmax.f32 %v2192_v52, %v2193_v40  ;;  %v5900_v52 = vld [vmem:[%s9419_s3 + $0x78] sm:$0xff] }
 0x5c6   : > { %v6859_v6 = vpack.c.bf16 %v5900_v52, %v5899_v20 }
 0x5c7   : > { %v2202_v63 = vrot.slane %v2201_v37, 1  ;;  %v2209_v18 = vrot.slane %v2208_v32, 2  ;;  %v2230_v21 = vsel %vm639_vm6, %v2194_v17, %v2229_v48 }
 0x5c9   : > { %v2210_v5 = vmax.f32 %v2208_v32, %v2209_v18  ;;  %v2203_v46 = vmax.f32 %v2201_v37, %v2202_v63 }
 0x5cb   : > { %v2211_v26 = vrot.slane %v2210_v5, 1  ;;  %v2231_v55 = vsel %vm641_vm7, %v2203_v46, %v2230_v21 }
 0x5cd   : > { %v2212_v23 = vmax.f32 %v2210_v5, %v2211_v26 }
 0x5cf   : > { %v2232_v41 = vsel %vm643_vm8, %v2212_v23, %v2231_v55 }
 0x5d0   : > { %6491 = vmatmul.mubr.msk.f32.vlgmr.msra.gmra.mrb[32].mxu1 %vm546_vm1, %v2232_v41 }
 0x5d1   : > { %6842 = vmatpush3.bf16.msra.mxu1 %v8260_v35  ;;  %6501 = vmatprep.mubr.msk.f32.mxu1 %vm546_vm1, %v8283_v22  ;;  %v5893_v35 = vld [vmem:[%s9419_s3 + $0x40] sm:$0xff] }
 0x5d2   : > { %6844 = vmatprep.subr.bf16.mxu1 %v6843_v43  ;;  %v6847_v10 = vpack.c.bf16 %v5894_v56, %v5893_v35 }
 0x5d4   : > { %6848 = vmatprep.subr.bf16.mxu0 %v6847_v10 }
 0x5d5   : > { %6846 = vmatpush3.bf16.msra.mxu1 %v6843_v43  ;;  %6850 = vmatpush3.bf16.msra.mxu0 %v6847_v10 }
 0x5d6   : > { %6852 = vmatprep.subr.bf16.mxu0 %v6851_v38 }
 0x5d8   : > { %6502 = vmatmul.mubr.msk.f32.vlgmr.msra.gmra.mrb[34].mxu1 %vm546_vm1, %v8280_v36 }
 0x5d9   : > { %6504 = vmatprep.mubr.msk.f32.mxu1 %vm546_vm1, %v8276_v34  ;;  %6854 = vmatpush3.bf16.msra.mxu0 %v6851_v38 }
 0x5da   : > { %6856 = vmatprep.subr.bf16.mxu0 %v6855_v15 }
 0x5dc   : > { %6505 = vmatmul.mubr.msk.f32.gmra.mrb[36].mxu1 %vm546_vm1, %v8273_v31 }
 0x5dd   : > { %6507 = vmatprep.mubr.msk.f32.mxu1 %vm546_vm1, %v8294_v44  ;;  %6858 = vmatpush3.bf16.msra.mxu0 %v6855_v15 }
 0x5de   : > { %6860 = vmatprep.subr.bf16.mxu0 %v6859_v6 }
 0x5e0   : > { %6508 = vmatmul.mubr.msk.f32.gmra.mrb[38].mxu1 %vm546_vm1, %v8287_v51 }
 0x5e1   : > { %6510 = vmatprep.mubr.msk.f32.mxu1 %vm546_vm1, %v8310_v58  ;;  %6862 = vmatpush3.bf16.msra.mxu0 %v6859_v6 }
 0x5e4   : > { %6511 = vmatmul.mubr.msk.f32.gmra.mrb[40].mxu1 %vm546_vm1, %v8307_v53 }
 0x5e5   : > { %6513 = vmatprep.mubr.msk.f32.mxu1 %vm546_vm1, %v8322_v2 }
 0x5e8   : > { %6514 = vmatmul.mubr.msk.f32.gmra.mrb[42].mxu1 %vm546_vm1, %v8319_v61 }
 0x5e9   : > { %6516 = vmatprep.mubr.msk.f32.mxu1 %vm546_vm1, %v8334_v27 }
 0x5ec   : > { %6517 = vmatmul.mubr.msk.f32.gmra.mrb[44].mxu1 %vm546_vm1, %v8331_v16 }
 0x5ed   : > { %6519 = vmatprep.mubr.msk.f32.mxu1 %vm546_vm1, %v8346_v49 }
 0x5f0   : > { %6520 = vmatmul.mubr.msk.f32.gmra.mrb[46].mxu1 %vm546_vm1, %v8343_v57 }
 0x5f1   : > { %6522 = vmatprep.mubr.msk.f32.mxu1 %vm546_vm1, %v8358_v60 }
 0x5f4   : > { %6523 = vmatmul.mubr.msk.f32.gmra.mrb[48].mxu1 %vm546_vm1, %v8355_v59 }
 0x6a3   : > { %v2301_v14 = vpop.f32.mrb[32].mxu1 }
 0x6a4   : > { %v2511_v45 = vrot.slane %v2301_v14, %v7926_v39  ;;  %v6492_v25 = vpop.f32.mrb[33].mxu1  ;;  %v2504_v33 = vcombine.high %v2301_v14, %v2301_v14 }
 0x6a6   : > { %v2519_v12 = vcombine.high %v2511_v45, %v2511_v45  ;;  %v2527_v24 = vrot.slane %v2511_v45, %v7926_v39  ;;  %v2518_v17 = vrot.slane %v2504_v33, %v7926_v39 }
 0x6a8   : > { %v2556_v7 = vrot.slane %v2527_v24, %v7931_v47  ;;  %v2541_v3 = vrot.slane %v2519_v12, %v7926_v39  ;;  %v2549_v8 = vcombine.high %v2527_v24, %v2527_v24  ;;  %v2520_v42 = vcombine.high %v2518_v17, %v2518_v17 }
 0x6a9   : > { %v2534_v23 = vrot.slane %v2518_v17, %v7926_v39 }
 0x6aa   : > { %v2560_v30 = vrot.slane %v2541_v3, %v7931_v47  ;;  %v2564_v5 = vrot.slane %v2549_v8, %v7931_v47  ;;  %v2551_v50 = vcombine.high %v2541_v3, %v2541_v3  ;;  %v2548_v56 = vrot.slane %v2520_v42, %v7926_v39 }
 0x6ab   : > { %v6503_v28 = vpop.f32.mrb[34].mxu1  ;;  %v2572_v35 = vrot.slane %v2534_v23, %v7931_v47  ;;  %v2550_v29 = vcombine.high %v2534_v23, %v2534_v23 }
 0x6ac   : > { %v8433_v40 = vmul.f32 %v6503_v28, %v2556_v7  ;;  %2723 = vrot.lane.b32.xlu0 %v6503_v28, %s7505_s19  ;;  %v2424_v37 = vpop.f32.mrb[35].mxu1  ;;  %v2568_v48 = vrot.slane %v2551_v50, %v7931_v47  ;;  %v2576_v9 = vrot.slane %v2548_v56, %v7931_v47  ;;  %v2552_v45 = vcombine.high %v2548_v56, %v2548_v56 }
 0x6ad   : > { %v2593_v32 = vmul.f32 %v2556_v7, %v2424_v37  ;;  %2721 = vrot.lane.b32.xlu1 %v2424_v37, %s7505_s19  ;;  %v2580_v14 = vrot.slane %v2550_v29, %v7931_v47 }
 0x6ae   : > { %v2584_v3 = vrot.slane %v2552_v45, %v7931_v47 }
 0x6af   : > { %v6506_v63 = vpop.f32.mrb[36].mxu1  ;;  %v5877_v8 = vmul.f32 -1.442695, %v2593_v32 }
 0x6b0   : > { %v2596_v18 = vmul.f32 %v6506_v63, %v2560_v30  ;;  %v2434_v19 = vpop.f32.mrb[37].mxu1 }
 0x6b1   : > { %v2595_v54 = vmul.f32 %v2560_v30, %v2434_v19  ;;  %2725 = vrot.lane.b32.xlu1 %v2434_v19, %s7505_s19  ;;  %7114 = vpow2.f32 %v5877_v8 }
 0x6b2   : > { %v5880_v17 = vmul.f32 -1.442695, %v2596_v18 }
 0x6b3   : > { %v6509_v46 = vpop.f32.mrb[38].mxu1  ;;  %v5879_v19 = vmul.f32 -1.442695, %v2595_v54 }
 0x6b4   : > { %v2598_v26 = vmul.f32 %v6509_v46, %v2564_v5  ;;  %v2444_v4 = vpop.f32.mrb[39].mxu1 }
 0x6b5   : > { %v2597_v62 = vmul.f32 %v2564_v5, %v2444_v4  ;;  %2727 = vrot.lane.b32.xlu1 %v6506_v63, %s7505_s19  ;;  %2729 = vrot.lane.b32.xlu0 %v2444_v4, %s7505_s19  ;;  %v5878_v63 = vmul.f32 -1.442695, %v8433_v40 }
 0x6b6   : > { %v5882_v50 = vmul.f32 -1.442695, %v2598_v26 }
 0x6b7   : > { %v6512_v21 = vpop.f32.mrb[40].mxu1  ;;  %7116 = vpow2.f32 %v5878_v63  ;;  %v5881_v5 = vmul.f32 -1.442695, %v2597_v62 }
 0x6b8   : > { %v2600_v55 = vmul.f32 %v6512_v21, %v2568_v48  ;;  %v2454_v43 = vpop.f32.mrb[41].mxu1  ;;  %7118 = vpow2.f32 %v5879_v19 }
 0x6b9   : > { %v2599_v41 = vmul.f32 %v2568_v48, %v2454_v43  ;;  %2731 = vrot.lane.b32.xlu1 %v6509_v46, %s7505_s19  ;;  %2733 = vrot.lane.b32.xlu0 %v2454_v43, %s7505_s19  ;;  %7120 = vpow2.f32 %v5880_v17 }
 0x6ba   : > { %7122 = vpow2.f32 %v5881_v5  ;;  %v5884_v42 = vmul.f32 -1.442695, %v2600_v55 }
 0x6bb   : > { %v6515_v11 = vpop.f32.mrb[42].mxu1  ;;  %v5883_v46 = vmul.f32 -1.442695, %v2599_v41  ;;  %7124 = vpow2.f32 %v5882_v50  ;;  %v7115_v4 = vpop.eup %7114 }
 0x6bc   : > { %v2602_v10 = vmul.f32 %v6515_v11, %v2572_v35  ;;  %v2464_v13 = vpop.f32.mrb[43].mxu1 }
 0x6bd   : > { %v2601_v38 = vmul.f32 %v2572_v35, %v2464_v13  ;;  %2735 = vrot.lane.b32.xlu1 %v6512_v21, %s7505_s19  ;;  %2737 = vrot.lane.b32.xlu0 %v2464_v13, %s7505_s19  ;;  %7126 = vpow2.f32 %v5883_v46  ;;  %v2657_v21 = vadd.f32 1.0, %v7115_v4 }
 0x6be   : > { %7128 = vpow2.f32 %v5884_v42  ;;  %v5886_v54 = vmul.f32 -1.442695, %v2602_v10 }
 0x6bf   : > { %v6518_v15 = vpop.f32.mrb[44].mxu1  ;;  %v5885_v23 = vmul.f32 -1.442695, %v2601_v38 }
 0x6c0   : > { %v2604_v20 = vmul.f32 %v6518_v15, %v2576_v9  ;;  %v2474_v52 = vpop.f32.mrb[45].mxu1 }
 0x6c1   : > { %v2603_v6 = vmul.f32 %v2576_v9, %v2474_v52  ;;  %2739 = vrot.lane.b32.xlu1 %v6515_v11, %s7505_s19  ;;  %2741 = vrot.lane.b32.xlu0 %v2474_v52, %s7505_s19  ;;  %v7117_v48 = vpop.eup %7116  ;;  %7130 = vpow2.f32 %v5885_v23 }
 0x6c2   : > { %v7119_v32 = vpop.eup %7118  ;;  %v2658_v43 = vadd.f32 1.0, %v7117_v48  ;;  %7132 = vrcp.f32 %v2657_v21  ;;  %v5888_v56 = vmul.f32 -1.442695, %v2604_v20 }
 0x6c3   : > { %v6521_v25 = vpop.f32.mrb[46].mxu1  ;;  %v7121_v40 = vpop.eup %7120  ;;  %v5887_v18 = vmul.f32 -1.442695, %v2603_v6  ;;  %v2659_v62 = vadd.f32 1.0, %v7119_v32 }
 0x6c4   : > { %v2606_v12 = vmul.f32 %v6521_v25, %v2580_v14  ;;  %v2484_v24 = vpop.f32.mrb[47].mxu1  ;;  %v7123_v35 = vpop.eup %7122  ;;  %7134 = vrcp.f32 %v2658_v43  ;;  %v2660_v26 = vadd.f32 1.0, %v7121_v40 }
 0x6c5   : > { %v2605_v7 = vmul.f32 %v2580_v14, %v2484_v24  ;;  %2743 = vrot.lane.b32.xlu1 %v6518_v15, %s7505_s19  ;;  %2745 = vrot.lane.b32.xlu0 %v2484_v24, %s7505_s19  ;;  %v7125_v41 = vpop.eup %7124  ;;  %7136 = vpow2.f32 %v5886_v54  ;;  %v2661_v11 = vadd.f32 1.0, %v7123_v35 }
 0x6c6   : > { %7138 = vpow2.f32 %v5887_v18  ;;  %v2662_v38 = vadd.f32 1.0, %v7125_v41  ;;  %v5890_v9 = vmul.f32 -1.442695, %v2606_v12 }
 0x6c7   : > { %v6524_v28 = vpop.f32.mrb[48].mxu1  ;;  %v5889_v55 = vmul.f32 -1.442695, %v2605_v7  ;;  %7140 = vrcp.f32 %v2659_v62  ;;  %v7127_v13 = vpop.eup %7126 }
 0x6c8   : > { %v2608_v37 = vmul.f32 %v6524_v28, %v2584_v3  ;;  %v2494_v33 = vpop.f32.mrb[49].mxu1  ;;  %7142 = vrcp.f32 %v2660_v26  ;;  %v7129_v10 = vpop.eup %7128  ;;  %v2663_v15 = vadd.f32 1.0, %v7127_v13 }
 0x6c9   : > { %v2607_v30 = vmul.f32 %v2584_v3, %v2494_v33  ;;  %2747 = vrot.lane.b32.xlu1 %v6521_v25, %s7505_s19  ;;  %2749 = vrot.lane.b32.xlu0 %v2494_v33, %s7505_s19  ;;  %7144 = vpow2.f32 %v5888_v56  ;;  %v2664_v45 = vadd.f32 1.0, %v7129_v10 }
 0x6ca   : > { %7146 = vpow2.f32 %v5889_v55  ;;  %v5892_v24 = vmul.f32 -1.442695, %v2608_v37 }
 0x6cb   : > { %v5891_v29 = vmul.f32 -1.442695, %v2607_v30  ;;  %7148 = vrcp.f32 %v2661_v11  ;;  %v7131_v52 = vpop.eup %7130 }
 0x6cc   : > { %7150 = vrcp.f32 %v2662_v38  ;;  %v7133_v14 = vpop.eup %7132 }
 0x6cd   : > { %2751 = vrot.lane.b32.xlu1 %v6524_v28, %s7505_s19  ;;  %7152 = vpow2.f32 %v5890_v9  ;;  %v2665_v28 = vadd.f32 1.0, %v7131_v52 }
 0x6ce   : > { %v7135_v25 = vpop.eup %7134  ;;  %7154 = vpow2.f32 %v5891_v29 }
 0x6cf   : > { %v7137_v3 = vpop.eup %7136  ;;  %7156 = vrcp.f32 %v2663_v15 }
 0x6d0   : > { %v7139_v33 = vpop.eup %7138  ;;  %7158 = vrcp.f32 %v2664_v45  ;;  %v2666_v19 = vadd.f32 1.0, %v7137_v3 }
 0x6d1   : > { %v7141_v30 = vpop.eup %7140  ;;  %7160 = vpow2.f32 %v5892_v24  ;;  %v2667_v37 = vadd.f32 1.0, %v7139_v33 }
 0x6d2   : > { %v7143_v63 = vpop.eup %7142  ;;  %7162 = vrcp.f32 %v2665_v28 }
 0x6d3   : > { %v7145_v5 = vpop.eup %7144  ;;  %7164 = vrcp.f32 %v2666_v19 }
 0x6d4   : > { %v7147_v50 = vpop.eup %7146  ;;  %v2668_v23 = vadd.f32 1.0, %v7145_v5  ;;  %7166 = vrcp.f32 %v2667_v37 }
 0x6d5   : > { %v7149_v46 = vpop.eup %7148  ;;  %v2669_v40 = vadd.f32 1.0, %v7147_v50 }
 0x6d6   : > { %v7151_v48 = vpop.eup %7150  ;;  %7168 = vrcp.f32 %v2668_v23 }
 0x6d7   : > { %v7153_v43 = vpop.eup %7152  ;;  %7170 = vrcp.f32 %v2669_v40 }
 0x6d8   : > { %v7155_v54 = vpop.eup %7154  ;;  %v2670_v26 = vadd.f32 1.0, %v7153_v43 }
 0x6d9   : > { %v7157_v18 = vpop.eup %7156  ;;  %v2671_v11 = vadd.f32 1.0, %v7155_v54 }
 0x6da   : > { %v7159_v55 = vpop.eup %7158  ;;  %7172 = vrcp.f32 %v2670_v26 }
 0x6db   : > { %v7161_v13 = vpop.eup %7160  ;;  %7174 = vrcp.f32 %v2671_v11 }
 0x6dc   : > { %v7163_v38 = vpop.eup %7162  ;;  %v2672_v52 = vadd.f32 1.0, %v7161_v13 }
 0x6de   : > { %7176 = vrcp.f32 %v2672_v52 }
 0x71e   : > { %v2724_v6 = vpop.permute.xlu0 %2723 }
 0x71f   : > { %v2722_v20 = vpop.permute.xlu1 %2721  ;;  %v2770_v12 = vmul.f32 %v7135_v25, %v2724_v6  ;;  %v7165_v6 = vpop.eup %7164 }
 0x720   : > { %v2769_v7 = vmul.f32 %v7133_v14, %v2722_v20  ;;  %v7167_v14 = vpop.eup %7166 }
 0x722   : > { %6541 = vmatprep.mubr.msk.f32.mxu0 %vm1204_vm9, %v2769_v7  ;;  %v7169_v7 = vpop.eup %7168 }
 0x723   : > { %6542 = vmatmul.mubr.msk.f32.vlgmr.msra.gmra.mrb[34].mxu0 %vm1204_vm9, %v2770_v12  ;;  %v2726_v8 = vpop.permute.xlu1 %2725  ;;  %v7171_v3 = vpop.eup %7170 }
 0x724   : > { %v2771_v17 = vmul.f32 %v7141_v30, %v2726_v8  ;;  %v7173_v8 = vpop.eup %7172 }
 0x726   : > { %6544 = vmatprep.mubr.msk.f32.mxu0 %vm1204_vm9, %v2771_v17 }
 0x727   : > { %v2728_v4 = vpop.permute.xlu1 %2727  ;;  %v2730_v42 = vpop.permute.xlu0 %2729 }
 0x728   : > { %v2772_v21 = vmul.f32 %v7143_v63, %v2728_v4  ;;  %v2773_v32 = vmul.f32 %v7149_v46, %v2730_v42  ;;  %v7175_v63 = vpop.eup %7174 }
 0x729   : > { %v7177_v50 = vpop.eup %7176 }
 0x72a   : > { %6545 = vmatmul.mubr.msk.f32.gmra.mrb[36].mxu0 %vm1204_vm9, %v2772_v21 }
 0x72b   : > { %v2732_v62 = vpop.permute.xlu1 %2731  ;;  %6547 = vmatprep.mubr.msk.f32.mxu0 %vm1204_vm9, %v2773_v32  ;;  %v2734_v35 = vpop.permute.xlu0 %2733 }
 0x72c   : > { %v2774_v41 = vmul.f32 %v7151_v48, %v2732_v62  ;;  %v2775_v56 = vmul.f32 %v7157_v18, %v2734_v35 }
 0x72e   : > { %6548 = vmatmul.mubr.msk.f32.gmra.mrb[38].mxu0 %vm1204_vm9, %v2774_v41 }
 0x72f   : > { %v2736_v9 = vpop.permute.xlu1 %2735  ;;  %6550 = vmatprep.mubr.msk.f32.mxu0 %vm1204_vm9, %v2775_v56  ;;  %v2738_v10 = vpop.permute.xlu0 %2737 }
 0x730   : > { %v2776_v29 = vmul.f32 %v7159_v55, %v2736_v9  ;;  %v2777_v15 = vmul.f32 %v7163_v38, %v2738_v10 }
 0x732   : > { %6551 = vmatmul.mubr.msk.f32.gmra.mrb[40].mxu0 %vm1204_vm9, %v2776_v29 }
 0x733   : > { %v2740_v45 = vpop.permute.xlu1 %2739  ;;  %6553 = vmatprep.mubr.msk.f32.mxu0 %vm1204_vm9, %v2777_v15  ;;  %v2742_v20 = vpop.permute.xlu0 %2741 }
 0x734   : > { %v2778_v25 = vmul.f32 %v7165_v6, %v2740_v45  ;;  %v2779_v24 = vmul.f32 %v7167_v14, %v2742_v20 }
 0x736   : > { %6554 = vmatmul.mubr.msk.f32.gmra.mrb[42].mxu0 %vm1204_vm9, %v2778_v25 }
 0x737   : > { %v2744_v28 = vpop.permute.xlu1 %2743  ;;  %6556 = vmatprep.mubr.msk.f32.mxu0 %vm1204_vm9, %v2779_v24  ;;  %v2746_v12 = vpop.permute.xlu0 %2745 }
 0x738   : > { %v2780_v33 = vmul.f32 %v7169_v7, %v2744_v28  ;;  %v2781_v30 = vmul.f32 %v7171_v3, %v2746_v12 }
 0x73a   : > { %6557 = vmatmul.mubr.msk.f32.gmra.mrb[44].mxu0 %vm1204_vm9, %v2780_v33 }
 0x73b   : > { %v2748_v19 = vpop.permute.xlu1 %2747  ;;  %6559 = vmatprep.mubr.msk.f32.mxu0 %vm1204_vm9, %v2781_v30  ;;  %v2750_v17 = vpop.permute.xlu0 %2749  ;;  %v3260_v30 = vld [vmem:[#allocation7 + $0x20] sm:$0xff] }
 0x73c   : > { %v2782_v5 = vmul.f32 %v7173_v8, %v2748_v19  ;;  %v2783_v37 = vmul.f32 %v7175_v63, %v2750_v17  ;;  %v3261_v8 = vld [vmem:[#allocation7 + $0x28] sm:$0xff] }
 0x73d   : > { %v6863_v63 = vpack.c.bf16 %v3261_v8, %v3260_v30 }
 0x73e   : > { %6560 = vmatmul.mubr.msk.f32.gmra.mrb[46].mxu0 %vm1204_vm9, %v2782_v5 }
 0x73f   : > { %v2752_v46 = vpop.permute.xlu1 %2751  ;;  %6562 = vmatprep.mubr.msk.f32.mxu0 %vm1204_vm9, %v2783_v37  ;;  %6864 = vmatprep.subr.bf16.mxu1 %v6863_v63 }
 0x740   : > { %v2784_v4 = vmul.f32 %v7177_v50, %v2752_v46  ;;  %6866 = vmatpush3.bf16.msra.mxu1 %v6863_v63 }
 0x742   : > { %6563 = vmatmul.mubr.msk.f32.gmra.mrb[48].mxu0 %vm1204_vm9, %v2784_v4 }
 0x7f6   : > { %v6543_v42 = vpop.f32.mrb[34].mxu0 }
 0x7f7   : > { %v8479_v48 = vadd.f32 %v6543_v42, %v8280_v36  ;;  %v2908_v23 = vpop.f32.mrb[35].mxu0 }
 0x7f8   : > { %v8482_v21 = vadd.f32 %v2908_v23, %v8283_v22 }
 0x7f9   : > { %v3010_v32 = vsel %vm546_vm1, %v8479_v48, 0.0 }
 0x7fa   : > { %3011 = vadd.xlane.f32.xlu1 %v3010_v32  ;;  %v3007_v43 = vsel %vm546_vm1, %v8482_v21, 0.0 }
 0x7fb   : > { %3008 = vadd.xlane.f32.xlu0 %v3007_v43 }
 0x7fd   : > { %v6546_v40 = vpop.f32.mrb[36].mxu0 }
 0x7fe   : > { %v2918_v54 = vpop.f32.mrb[37].mxu0  ;;  %v8492_v36 = vadd.f32 %v6546_v40, %v8273_v31 }
 0x7ff   : > { %v8489_v18 = vadd.f32 %v2918_v54, %v8276_v34 }
 0x800   : > { %v3016_v31 = vsel %vm546_vm1, %v8492_v36, 0.0 }
 0x801   : > { %v6549_v62 = vpop.f32.mrb[38].mxu0  ;;  %v3013_v22 = vsel %vm546_vm1, %v8489_v18, 0.0 }
 0x802   : > { %v2928_v35 = vpop.f32.mrb[39].mxu0  ;;  %3014 = vadd.xlane.f32.xlu0 %v3013_v22  ;;  %v8500_v41 = vadd.f32 %v6549_v62, %v8287_v51 }
 0x803   : > { %v8497_v26 = vadd.f32 %v2928_v35, %v8294_v44 }
 0x804   : > { %v3022_v38 = vsel %vm546_vm1, %v8500_v41, 0.0 }
 0x805   : > { %v6552_v56 = vpop.f32.mrb[40].mxu0  ;;  %v3019_v34 = vsel %vm546_vm1, %v8497_v26, 0.0 }
 0x806   : > { %v2938_v55 = vpop.f32.mrb[41].mxu0  ;;  %3020 = vadd.xlane.f32.xlu1 %v3019_v34  ;;  %3017 = vadd.xlane.f32.xlu0 %v3016_v31  ;;  %v8510_v13 = vadd.f32 %v6552_v56, %v8307_v53 }
 0x807   : > { %v8507_v11 = vadd.f32 %v2938_v55, %v8310_v58 }
 0x808   : > { %v3028_v15 = vsel %vm546_vm1, %v8510_v13, 0.0 }
 0x809   : > { %v6555_v44 = vpop.f32.mrb[42].mxu0  ;;  %v3025_v51 = vsel %vm546_vm1, %v8507_v11, 0.0 }
 0x80a   : > { %v2948_v9 = vpop.f32.mrb[43].mxu0  ;;  %3026 = vadd.xlane.f32.xlu1 %v3025_v51  ;;  %3023 = vadd.xlane.f32.xlu0 %v3022_v38  ;;  %v8520_v29 = vadd.f32 %v6555_v44, %v8319_v61 }
 0x80b   : > { %v8517_v10 = vadd.f32 %v2948_v9, %v8322_v2 }
 0x80c   : > { %v3034_v45 = vsel %vm546_vm1, %v8520_v29, 0.0 }
 0x80d   : > { %v6558_v58 = vpop.f32.mrb[44].mxu0  ;;  %v3031_v53 = vsel %vm546_vm1, %v8517_v10, 0.0 }
 0x80e   : > { %v2958_v52 = vpop.f32.mrb[45].mxu0  ;;  %3032 = vadd.xlane.f32.xlu1 %v3031_v53  ;;  %3029 = vadd.xlane.f32.xlu0 %v3028_v15  ;;  %v8530_v14 = vadd.f32 %v6558_v58, %v8331_v16 }
 0x80f   : > { %v8527_v6 = vadd.f32 %v2958_v52, %v8334_v27 }
 0x810   : > { %v3040_v7 = vsel %vm546_vm1, %v8530_v14, 0.0 }
 0x811   : > { %v6561_v2 = vpop.f32.mrb[46].mxu0  ;;  %v3037_v61 = vsel %vm546_vm1, %v8527_v6, 0.0 }
 0x812   : > { %v2968_v20 = vpop.f32.mrb[47].mxu0  ;;  %3038 = vadd.xlane.f32.xlu1 %v3037_v61  ;;  %3035 = vadd.xlane.f32.xlu0 %v3034_v45  ;;  %v8540_v24 = vadd.f32 %v6561_v2, %v8343_v57 }
 0x813   : > { %v8537_v25 = vadd.f32 %v2968_v20, %v8346_v49 }
 0x814   : > { %v3046_v57 = vsel %vm546_vm1, %v8540_v24, 0.0 }
 0x815   : > { %v6564_v27 = vpop.f32.mrb[48].mxu0  ;;  %v3043_v16 = vsel %vm546_vm1, %v8537_v25, 0.0 }
 0x816   : > { %3044 = vadd.xlane.f32.xlu1 %v3043_v16  ;;  %3041 = vadd.xlane.f32.xlu0 %v3040_v7  ;;  %v2978_v3 = vpop.f32.mrb[49].mxu0  ;;  %v8550_v12 = vadd.f32 %v6564_v27, %v8355_v59 }
 0x817   : > { %v8547_v28 = vadd.f32 %v2978_v3, %v8358_v60 }
 0x818   : > { %v3052_v33 = vsel %vm546_vm1, %v8550_v12, 0.0 }
 0x819   : > { %v3049_v49 = vsel %vm546_vm1, %v8547_v28, 0.0 }
 0x81a   : > { %3047 = vadd.xlane.f32.xlu0 %v3046_v57  ;;  %3050 = vadd.xlane.f32.xlu1 %v3049_v49 }
 0x81e   : > { %3053 = vadd.xlane.f32.xlu0 %v3052_v33 }
 0x887   : > { %v3012_v60 = vpop.xlane.xlu1 %3011 }
 0x888   : > { %v3056_v59 = vmul.f32 0.03125, %v3012_v60  ;;  %v3009_v19 = vpop.xlane.xlu0 %3008 }
 0x889   : > { %v3055_v17 = vmul.f32 0.03125, %v3009_v19 }
 0x88a   : > { %v8559_v5 = vsub.f32 %v8479_v48, %v3056_v59 }
 0x88b   : > { %v8562_v37 = vsub.f32 %v8482_v21, %v3055_v17 }
 0x88c   : > { %v3088_v50 = vmul.f32 %v8559_v5, %v8559_v5 }
 0x88d   : > { %v3087_v46 = vmul.f32 %v8562_v37, %v8562_v37 }
 0x88e   : > { %v3106_v4 = vsel %vm546_vm1, %v3088_v50, 0.0 }
 0x88f   : > { %v3015_v42 = vpop.xlane.xlu0 %3014  ;;  %3107 = vadd.xlane.f32.xlu0 %v3106_v4  ;;  %v3103_v23 = vsel %vm546_vm1, %v3087_v46, 0.0 }
 0x890   : > { %v3057_v32 = vmul.f32 0.03125, %v3015_v42  ;;  %3104 = vadd.xlane.f32.xlu1 %v3103_v23 }
 0x892   : > { %v8571_v43 = vsub.f32 %v8489_v18, %v3057_v32 }
 0x893   : > { %v3021_v40 = vpop.xlane.xlu1 %3020  ;;  %v3018_v54 = vpop.xlane.xlu0 %3017 }
 0x894   : > { %v3059_v62 = vmul.f32 0.03125, %v3021_v40  ;;  %v3058_v22 = vmul.f32 0.03125, %v3018_v54  ;;  %v3089_v35 = vmul.f32 %v8571_v43, %v8571_v43 }
 0x896   : > { %v8576_v56 = vsub.f32 %v8497_v26, %v3059_v62  ;;  %v8579_v34 = vsub.f32 %v8492_v36, %v3058_v22  ;;  %v3109_v31 = vsel %vm546_vm1, %v3089_v35, 0.0 }
 0x897   : > { %v3027_v55 = vpop.xlane.xlu1 %3026  ;;  %v3024_v44 = vpop.xlane.xlu0 %3023  ;;  %3110 = vadd.xlane.f32.xlu1 %v3109_v31 }
 0x898   : > { %v3061_v51 = vmul.f32 0.03125, %v3027_v55  ;;  %v3060_v38 = vmul.f32 0.03125, %v3024_v44  ;;  %v3090_v9 = vmul.f32 %v8579_v34, %v8579_v34  ;;  %v3091_v58 = vmul.f32 %v8576_v56, %v8576_v56 }
 0x89a   : > { %v8587_v53 = vsub.f32 %v8507_v11, %v3061_v51  ;;  %v8590_v15 = vsub.f32 %v8500_v41, %v3060_v38  ;;  %v3112_v52 = vsel %vm546_vm1, %v3090_v9, 0.0  ;;  %v3115_v2 = vsel %vm546_vm1, %v3091_v58, 0.0 }
 0x89b   : > { %v3033_v61 = vpop.xlane.xlu1 %3032  ;;  %v3030_v45 = vpop.xlane.xlu0 %3029  ;;  %3113 = vadd.xlane.f32.xlu0 %v3112_v52  ;;  %3116 = vadd.xlane.f32.xlu1 %v3115_v2 }
 0x89c   : > { %v3063_v20 = vmul.f32 0.03125, %v3033_v61  ;;  %v3062_v27 = vmul.f32 0.03125, %v3030_v45  ;;  %v3092_v16 = vmul.f32 %v8590_v15, %v8590_v15  ;;  %v3093_v7 = vmul.f32 %v8587_v53, %v8587_v53 }
 0x89e   : > { %v8599_v3 = vsub.f32 %v8517_v10, %v3063_v20  ;;  %v8602_v57 = vsub.f32 %v8510_v13, %v3062_v27  ;;  %v3118_v49 = vsel %vm546_vm1, %v3092_v16, 0.0  ;;  %v3121_v33 = vsel %vm546_vm1, %v3093_v7, 0.0 }
 0x89f   : > { %v3039_v30 = vpop.xlane.xlu1 %3038  ;;  %v3036_v8 = vpop.xlane.xlu0 %3035  ;;  %3119 = vadd.xlane.f32.xlu0 %v3118_v49  ;;  %3122 = vadd.xlane.f32.xlu1 %v3121_v33 }
 0x8a0   : > { %v3065_v63 = vmul.f32 0.03125, %v3039_v30  ;;  %v3064_v60 = vmul.f32 0.03125, %v3036_v8  ;;  %v3094_v59 = vmul.f32 %v8602_v57, %v8602_v57  ;;  %v3095_v19 = vmul.f32 %v8599_v3, %v8599_v3 }
 0x8a2   : > { %v8611_v17 = vsub.f32 %v8527_v6, %v3065_v63  ;;  %v8614_v50 = vsub.f32 %v8520_v29, %v3064_v60  ;;  %v3124_v46 = vsel %vm546_vm1, %v3094_v59, 0.0  ;;  %v3127_v4 = vsel %vm546_vm1, %v3095_v19, 0.0  ;;  %v3262_v60 = vld [vmem:[#allocation7 + $0x30] sm:$0xff]  ;;  %v3263_v59 = vld [vmem:[#allocation7 + $0x38] sm:$0xff] }
 0x8a3   : > { %v3045_v42 = vpop.xlane.xlu1 %3044  ;;  %v3042_v23 = vpop.xlane.xlu0 %3041  ;;  %3125 = vadd.xlane.f32.xlu0 %v3124_v46  ;;  %3128 = vadd.xlane.f32.xlu1 %v3127_v4  ;;  %v6867_v19 = vpack.c.bf16 %v3263_v59, %v3262_v60  ;;  %v3514_v4 = vld [vmem:[#allocation8 + $0x20] sm:$0xff] }
 0x8a4   : > { %v3067_v32 = vmul.f32 0.03125, %v3045_v42  ;;  %v3066_v40 = vmul.f32 0.03125, %v3042_v23  ;;  %v3096_v54 = vmul.f32 %v8614_v50, %v8614_v50  ;;  %v3097_v62 = vmul.f32 %v8611_v17, %v8611_v17  ;;  %v3515_v42 = vld [vmem:[#allocation8 + $0x28] sm:$0xff]  ;;  %v3516_v23 = vld [vmem:[#allocation8 + $0x30] sm:$0xff] }
 0x8a5   : > { %6868 = vmatprep.subr.bf16.mxu1 %v6867_v19 }
 0x8a6   : > { %v8623_v22 = vsub.f32 %v8537_v25, %v3067_v32  ;;  %v8626_v35 = vsub.f32 %v8530_v14, %v3066_v40  ;;  %v3130_v31 = vsel %vm546_vm1, %v3096_v54, 0.0  ;;  %v3133_v55 = vsel %vm546_vm1, %v3097_v62, 0.0  ;;  %6870 = vmatpush3.bf16.msra.mxu1 %v6867_v19  ;;  %v3517_v40 = vld [vmem:[#allocation8 + $0x38] sm:$0xff] }
 0x8a7   : > { %v3048_v44 = vpop.xlane.xlu0 %3047  ;;  %3131 = vadd.xlane.f32.xlu0 %v3130_v31  ;;  %3134 = vadd.xlane.f32.xlu1 %v3133_v55  ;;  %v3051_v51 = vpop.xlane.xlu1 %3050  ;;  %v6871_v32 = vpack.c.bf16 %v3515_v42, %v3514_v4  ;;  %v6875_v54 = vpack.c.bf16 %v3517_v40, %v3516_v23  ;;  %v8665_v23 = vld [vmem:[%s9421_s5 + $0x1] ss:$0 sm:$0xff] }
 0x8a8   : > { %v3068_v38 = vmul.f32 0.03125, %v3048_v44  ;;  %v3069_v9 = vmul.f32 0.03125, %v3051_v51  ;;  %v3098_v58 = vmul.f32 %v8626_v35, %v8626_v35  ;;  %v3099_v52 = vmul.f32 %v8623_v22, %v8623_v22  ;;  %6879 = vmatprep.subr.bf16.mxu1 %v7502_v0 }
 0x8a9   : > { %6872 = vmatprep.subr.bf16.mxu0 %v6871_v32 }
 0x8aa   : > { %v8635_v2 = vsub.f32 %v8540_v24, %v3068_v38  ;;  %v8638_v61 = vsub.f32 %v8547_v28, %v3069_v9  ;;  %v3136_v45 = vsel %vm546_vm1, %v3098_v58, 0.0  ;;  %v3139_v20 = vsel %vm546_vm1, %v3099_v52, 0.0  ;;  %6874 = vmatpush3.bf16.msra.mxu0 %v6871_v32 }
 0x8ab   : > { %3137 = vadd.xlane.f32.xlu0 %v3136_v45  ;;  %v3054_v27 = vpop.xlane.xlu0 %3053  ;;  %3140 = vadd.xlane.f32.xlu1 %v3139_v20 }
 0x8ac   : > { %v3070_v16 = vmul.f32 0.03125, %v3054_v27  ;;  %v3100_v7 = vmul.f32 %v8635_v2, %v8635_v2  ;;  %v3101_v49 = vmul.f32 %v8638_v61, %v8638_v61  ;;  %6876 = vmatprep.subr.bf16.mxu0 %v6875_v54 }
 0x8ae   : > { %v8647_v33 = vsub.f32 %v8550_v12, %v3070_v16  ;;  %v3142_v30 = vsel %vm546_vm1, %v3100_v7, 0.0  ;;  %v3145_v8 = vsel %vm546_vm1, %v3101_v49, 0.0  ;;  %6878 = vmatpush3.bf16.msra.mxu0 %v6875_v54  ;;  %v8658_v49 = vld [vmem:[%s9420_s4 + $0x1] ss:$0 sm:$0xff] }
 0x8af   : > { %3143 = vadd.xlane.f32.xlu0 %v3142_v30  ;;  %3146 = vadd.xlane.f32.xlu1 %v3145_v8 }
 0x8b0   : > { %v3102_v63 = vmul.f32 %v8647_v33, %v8647_v33 }
 0x8b2   : > { %v3148_v46 = vsel %vm546_vm1, %v3102_v63, 0.0 }
 0x8b3   : > { %3149 = vadd.xlane.f32.xlu0 %v3148_v46 }
 0x91c   : > { %v3108_v62 = vpop.xlane.xlu0 %3107 }
 0x91d   : > { %v3152_v31 = vmul.f32 0.03125, %v3108_v62  ;;  %v3105_v55 = vpop.xlane.xlu1 %3104 }
 0x91e   : > { %v3151_v44 = vmul.f32 0.03125, %v3105_v55 }
 0x91f   : > { %v3168_v51 = vadd.f32 1e-05, %v3152_v31 }
 0x920   : > { %v3167_v38 = vadd.f32 1e-05, %v3151_v44 }
 0x921   : > { %7178 = vrsqrt.f32 %v3168_v51 }
 0x922   : > { %7180 = vrsqrt.f32 %v3167_v38 }
 0x924   : > { %v3111_v9 = vpop.xlane.xlu1 %3110 }
 0x925   : > { %v3153_v58 = vmul.f32 0.03125, %v3111_v9 }
 0x927   : > { %v3169_v52 = vadd.f32 1e-05, %v3153_v58 }
 0x928   : > { %v3114_v45 = vpop.xlane.xlu0 %3113  ;;  %v3117_v20 = vpop.xlane.xlu1 %3116 }
 0x929   : > { %7182 = vrsqrt.f32 %v3169_v52  ;;  %v3154_v27 = vmul.f32 0.03125, %v3114_v45  ;;  %v3155_v16 = vmul.f32 0.03125, %v3117_v20 }
 0x92b   : > { %v7179_v7 = vpop.eup %7178  ;;  %v3170_v30 = vadd.f32 1e-05, %v3154_v27  ;;  %v3171_v8 = vadd.f32 1e-05, %v3155_v16 }
 0x92c   : > { %v7181_v63 = vpop.eup %7180  ;;  %v3200_v60 = vmul.f32 %v7179_v7, %v8559_v5  ;;  %v3120_v59 = vpop.xlane.xlu0 %3119 }
 0x92d   : > { %v3123_v19 = vpop.xlane.xlu1 %3122  ;;  %7184 = vrsqrt.f32 %v3170_v30  ;;  %v3156_v46 = vmul.f32 0.03125, %v3120_v59  ;;  %v3199_v42 = vmul.f32 %v7181_v63, %v8562_v37 }
 0x92e   : > { %v3157_v4 = vmul.f32 0.03125, %v3123_v19  ;;  %v3222_v32 = vmul.f32 %v8658_v49, %v3200_v60  ;;  %7186 = vrsqrt.f32 %v3171_v8 }
 0x92f   : > { %v3172_v40 = vadd.f32 1e-05, %v3156_v46  ;;  %v3221_v62 = vmul.f32 %v8658_v49, %v3199_v42 }
 0x930   : > { %v3173_v54 = vadd.f32 1e-05, %v3157_v4  ;;  %v3126_v5 = vpop.xlane.xlu0 %3125  ;;  %v3244_v37 = vadd.f32 %v8665_v23, %v3222_v32 }
 0x931   : > { %v3129_v31 = vpop.xlane.xlu1 %3128  ;;  %7188 = vrsqrt.f32 %v3172_v40  ;;  %v3158_v55 = vmul.f32 0.03125, %v3126_v5  ;;  %v3243_v51 = vadd.f32 %v8665_v23, %v3221_v62 }
 0x932   : > { %v3159_v44 = vmul.f32 0.03125, %v3129_v31  ;;  %7190 = vrsqrt.f32 %v3173_v54 }
 0x933   : > { %v7183_v38 = vpop.eup %7182  ;;  %v3174_v9 = vadd.f32 1e-05, %v3158_v55  ;;  %6573 = vmatprep.mubr.msk.f32.mxu1 %vm546_vm1, %v3243_v51 }
 0x934   : > { %v3175_v58 = vadd.f32 1e-05, %v3159_v44  ;;  %v3132_v52 = vpop.xlane.xlu0 %3131  ;;  %6574 = vmatmul.mubr.msk.f32.vlgmr.msra.gmra.mrb[50].mxu1 %vm546_vm1, %v3244_v37  ;;  %v3201_v20 = vmul.f32 %v7183_v38, %v8571_v43 }
 0x935   : > { %v3135_v45 = vpop.xlane.xlu1 %3134  ;;  %7192 = vrsqrt.f32 %v3174_v9  ;;  %v3160_v27 = vmul.f32 0.03125, %v3132_v52 }
 0x936   : > { %v3161_v16 = vmul.f32 0.03125, %v3135_v45  ;;  %7194 = vrsqrt.f32 %v3175_v58  ;;  %v3223_v7 = vmul.f32 %v8658_v49, %v3201_v20 }
 0x937   : > { %v7185_v30 = vpop.eup %7184  ;;  %v3176_v8 = vadd.f32 1e-05, %v3160_v27 }
 0x938   : > { %v3177_v63 = vadd.f32 1e-05, %v3161_v16  ;;  %v7187_v60 = vpop.eup %7186  ;;  %v3138_v59 = vpop.xlane.xlu0 %3137  ;;  %v3245_v46 = vadd.f32 %v8665_v23, %v3223_v7  ;;  %v3202_v4 = vmul.f32 %v7185_v30, %v8579_v34 }
 0x939   : > { %v3141_v19 = vpop.xlane.xlu1 %3140  ;;  %7196 = vrsqrt.f32 %v3176_v8  ;;  %v3162_v42 = vmul.f32 0.03125, %v3138_v59  ;;  %v3203_v43 = vmul.f32 %v7187_v60, %v8576_v56 }
 0x93a   : > { %v3163_v32 = vmul.f32 0.03125, %v3141_v19  ;;  %7198 = vrsqrt.f32 %v3177_v63  ;;  %6576 = vmatprep.mubr.msk.f32.mxu1 %vm546_vm1, %v3245_v46  ;;  %v3224_v40 = vmul.f32 %v8658_v49, %v3202_v4 }
 0x93b   : > { %v7189_v54 = vpop.eup %7188  ;;  %v3178_v62 = vadd.f32 1e-05, %v3162_v42  ;;  %v3225_v31 = vmul.f32 %v8658_v49, %v3203_v43 }
 0x93c   : > { %v3179_v5 = vadd.f32 1e-05, %v3163_v32  ;;  %v7191_v55 = vpop.eup %7190  ;;  %v3144_v44 = vpop.xlane.xlu0 %3143  ;;  %v3246_v34 = vadd.f32 %v8665_v23, %v3224_v40  ;;  %v3204_v37 = vmul.f32 %v7189_v54, %v8590_v15 }
 0x93d   : > { %v3147_v51 = vpop.xlane.xlu1 %3146  ;;  %7200 = vrsqrt.f32 %v3178_v62  ;;  %v3164_v38 = vmul.f32 0.03125, %v3144_v44  ;;  %v3247_v9 = vadd.f32 %v8665_v23, %v3225_v31  ;;  %v3205_v52 = vmul.f32 %v7191_v55, %v8587_v53 }
 0x93e   : > { %v3165_v56 = vmul.f32 0.03125, %v3147_v51  ;;  %7202 = vrsqrt.f32 %v3179_v5  ;;  %6577 = vmatmul.mubr.msk.f32.gmra.mrb[52].mxu1 %vm546_vm1, %v3246_v34  ;;  %v3226_v58 = vmul.f32 %v8658_v49, %v3204_v37 }
 0x93f   : > { %v7193_v45 = vpop.eup %7192  ;;  %v3180_v20 = vadd.f32 1e-05, %v3164_v38  ;;  %6579 = vmatprep.mubr.msk.f32.mxu1 %vm546_vm1, %v3247_v9  ;;  %v3227_v30 = vmul.f32 %v8658_v49, %v3205_v52 }
 0x940   : > { %v3181_v27 = vadd.f32 1e-05, %v3165_v56  ;;  %v7195_v16 = vpop.eup %7194  ;;  %v3150_v7 = vpop.xlane.xlu0 %3149  ;;  %v3248_v15 = vadd.f32 %v8665_v23, %v3226_v58  ;;  %v3206_v8 = vmul.f32 %v7193_v45, %v8602_v57 }
 0x941   : > { %7204 = vrsqrt.f32 %v3180_v20  ;;  %v3166_v63 = vmul.f32 0.03125, %v3150_v7  ;;  %v3207_v60 = vmul.f32 %v7195_v16, %v8599_v3  ;;  %v3249_v53 = vadd.f32 %v8665_v23, %v3227_v30  ;;  %v3900_v16 = vld [vmem:[#allocation2 + $0x40] sm:$0xff]  ;;  %v3901_v7 = vld [vmem:[#allocation2 + $0x48] sm:$0xff] }
 0x942   : > { %7206 = vrsqrt.f32 %v3181_v27  ;;  %6580 = vmatmul.mubr.msk.f32.gmra.mrb[54].mxu1 %vm546_vm1, %v3248_v15  ;;  %v3228_v59 = vmul.f32 %v8658_v49, %v3206_v8  ;;  %v6885_v15 = vpack.c.bf16 %v3901_v7, %v3900_v16 }
 0x943   : > { %v7197_v19 = vpop.eup %7196  ;;  %v3182_v46 = vadd.f32 1e-05, %v3166_v63  ;;  %v3229_v4 = vmul.f32 %v8658_v49, %v3207_v60  ;;  %6582 = vmatprep.mubr.msk.f32.mxu1 %vm546_vm1, %v3249_v53  ;;  %v3902_v60 = vld [vmem:[#allocation2 + $0x50] sm:$0xff]  ;;  %v3903_v53 = vld [vmem:[#allocation2 + $0x58] sm:$0xff] }
 0x944   : > { %v7199_v42 = vpop.eup %7198  ;;  %v3250_v57 = vadd.f32 %v8665_v23, %v3228_v59  ;;  %v3208_v32 = vmul.f32 %v7197_v19, %v8614_v50  ;;  %6886 = vmatprep.subr.bf16.mxu0 %v6885_v15 }
 0x945   : > { %7208 = vrsqrt.f32 %v3182_v46  ;;  %v3251_v3 = vadd.f32 %v8665_v23, %v3229_v4  ;;  %v3209_v43 = vmul.f32 %v7199_v42, %v8611_v17  ;;  %v6889_v46 = vpack.c.bf16 %v3903_v53, %v3902_v60 }
 0x946   : > { %6583 = vmatmul.mubr.msk.f32.gmra.mrb[56].mxu1 %vm546_vm1, %v3250_v57  ;;  %v3230_v40 = vmul.f32 %v8658_v49, %v3208_v32 }
 0x947   : > { %v7201_v54 = vpop.eup %7200  ;;  %6585 = vmatprep.mubr.msk.f32.mxu1 %vm546_vm1, %v3251_v3  ;;  %v3231_v62 = vmul.f32 %v8658_v49, %v3209_v43 }
 0x948   : > { %v7203_v5 = vpop.eup %7202  ;;  %v3252_v31 = vadd.f32 %v8665_v23, %v3230_v40  ;;  %v3210_v55 = vmul.f32 %v7201_v54, %v8626_v35 }
 0x949   : > { %v3253_v50 = vadd.f32 %v8665_v23, %v3231_v62  ;;  %v3211_v44 = vmul.f32 %v7203_v5, %v8623_v22 }
 0x94a   : > { %6586 = vmatmul.mubr.msk.f32.gmra.mrb[58].mxu1 %vm546_vm1, %v3252_v31  ;;  %v3232_v17 = vmul.f32 %v8658_v49, %v3210_v55 }
 0x94b   : > { %v7205_v51 = vpop.eup %7204  ;;  %6588 = vmatprep.mubr.msk.f32.mxu1 %vm546_vm1, %v3253_v50  ;;  %v3233_v34 = vmul.f32 %v8658_v49, %v3211_v44 }
 0x94c   : > { %v7207_v37 = vpop.eup %7206  ;;  %v3254_v38 = vadd.f32 %v8665_v23, %v3232_v17  ;;  %v3212_v56 = vmul.f32 %v7205_v51, %v8635_v2 }
 0x94d   : > { %v3255_v35 = vadd.f32 %v8665_v23, %v3233_v34  ;;  %v3213_v9 = vmul.f32 %v7207_v37, %v8638_v61 }
 0x94e   : > { %6589 = vmatmul.mubr.msk.f32.gmra.mrb[60].mxu1 %vm546_vm1, %v3254_v38  ;;  %v3234_v22 = vmul.f32 %v8658_v49, %v3212_v56 }
 0x94f   : > { %v7209_v58 = vpop.eup %7208  ;;  %6591 = vmatprep.mubr.msk.f32.mxu1 %vm546_vm1, %v3255_v35  ;;  %v3235_v52 = vmul.f32 %v8658_v49, %v3213_v9 }
 0x950   : > { %v3256_v45 = vadd.f32 %v8665_v23, %v3234_v22  ;;  %v3214_v20 = vmul.f32 %v7209_v58, %v8647_v33  ;;  %v8734_v33 = vld [vmem:[%s9423_s7 + $0x1] ss:$0 sm:$0xff] }
 0x951   : > { %v3257_v27 = vadd.f32 %v8665_v23, %v3235_v52 }
 0x952   : > { %6592 = vmatmul.mubr.msk.f32.gmra.mrb[62].mxu1 %vm546_vm1, %v3256_v45  ;;  %v3236_v2 = vmul.f32 %v8658_v49, %v3214_v20 }
 0x953   : > { %6594 = vmatprep.mubr.msk.f32.mxu1 %vm546_vm1, %v3257_v27 }
 0x954   : > { %v3258_v61 = vadd.f32 %v8665_v23, %v3236_v2 }
 0x956   : > { %6595 = vmatmul.mubr.msk.f32.gmra.mrb[64].mxu1 %vm546_vm1, %v3258_v61 }
 0x957   : > { %6637 = vmatprep.mubr.msk.f32.mxu1 %vm7503_vm0, %v7504_v1 }
 0xa07   : > { %v6575_v30 = vpop.f32.mrb[50].mxu1 }
 0xa08   : > { %v3392_v49 = vadd.f32 %v6575_v30, %v8734_v33  ;;  %v3386_v8 = vpop.f32.mrb[51].mxu1 }
 0xa09   : > { %v3387_v23 = vadd.f32 %v8734_v33, %v3386_v8 }
 0xa0a   : > { %v3482_v63 = vmul.f32 0.01, %v3392_v49  ;;  %vm3466_vm14 = vcmp.ge.f32.partialorder %v3392_v49, 0.0 }
 0xa0b   : > { %vm3465_vm15 = vcmp.ge.f32.partialorder %v3387_v23, 0.0  ;;  %v3481_v59 = vmul.f32 0.01, %v3387_v23 }
 0xa0c   : > { %v3498_v4 = vsel %vm3466_vm14, %v3392_v49, %v3482_v63 }
 0xa0d   : > { %v3497_v19 = vsel %vm3465_vm15, %v3387_v23, %v3481_v59 }
 0xa0e   : > { %6605 = vmatprep.mubr.msk.f32.mxu0 %vm546_vm1, %v3497_v19 }
 0xa0f   : > { %6606 = vmatmul.mubr.msk.f32.vlgmr.msra.gmra.mrb[50].mxu0 %vm546_vm1, %v3498_v4 }
 0xa10   : > { %6888 = vmatpush3.bf16.msra.mxu0 %v6885_v15 }
 0xa11   : > { %v6578_v42 = vpop.f32.mrb[52].mxu1  ;;  %6890 = vmatprep.subr.bf16.mxu0 %v6889_v46 }
 0xa12   : > { %v3402_v57 = vadd.f32 %v6578_v42, %v8734_v33  ;;  %v3396_v32 = vpop.f32.mrb[53].mxu1 }
 0xa13   : > { %v3397_v3 = vadd.f32 %v8734_v33, %v3396_v32 }
 0xa14   : > { %v3484_v43 = vmul.f32 0.01, %v3402_v57  ;;  %6892 = vmatpush3.bf16.msra.mxu0 %v6889_v46  ;;  %vm3468_vm10 = vcmp.ge.f32.partialorder %v3402_v57, 0.0 }
 0xa15   : > { %vm3467_vm11 = vcmp.ge.f32.partialorder %v3397_v3, 0.0  ;;  %v3483_v40 = vmul.f32 0.01, %v3397_v3  ;;  %v6581_v54 = vpop.f32.mrb[54].mxu1 }
 0xa16   : > { %v3412_v62 = vadd.f32 %v6581_v54, %v8734_v33  ;;  %v3406_v5 = vpop.f32.mrb[55].mxu1  ;;  %v3500_v44 = vsel %vm3468_vm10, %v3402_v57, %v3484_v43 }
 0xa17   : > { %v3407_v31 = vadd.f32 %v8734_v33, %v3406_v5  ;;  %v3499_v55 = vsel %vm3467_vm11, %v3397_v3, %v3483_v40 }
 0xa18   : > { %v3486_v50 = vmul.f32 0.01, %v3412_v62  ;;  %6608 = vmatprep.mubr.msk.f32.mxu0 %vm546_vm1, %v3499_v55  ;;  %vm3470_vm12 = vcmp.ge.f32.partialorder %v3412_v62, 0.0 }
 0xa19   : > { %vm3469_vm13 = vcmp.ge.f32.partialorder %v3407_v31, 0.0  ;;  %v3485_v17 = vmul.f32 0.01, %v3407_v31  ;;  %v6584_v51 = vpop.f32.mrb[56].mxu1  ;;  %6609 = vmatmul.mubr.msk.f32.gmra.mrb[52].mxu0 %vm546_vm1, %v3500_v44 }
 0xa1a   : > { %v3422_v34 = vadd.f32 %v6584_v51, %v8734_v33  ;;  %v3416_v37 = vpop.f32.mrb[57].mxu1  ;;  %v3502_v9 = vsel %vm3470_vm12, %v3412_v62, %v3486_v50  ;;  %v3809_v51 = vld [vmem:[#allocation5 + $0x48] sm:$0xff] }
 0xa1b   : > { %v3417_v38 = vadd.f32 %v8734_v33, %v3416_v37  ;;  %v3501_v56 = vsel %vm3469_vm13, %v3407_v31, %v3485_v17  ;;  %v3808_v17 = vld [vmem:[#allocation5 + $0x40] sm:$0xff]  ;;  %v3811_v37 = vld [vmem:[#allocation5 + $0x58] sm:$0xff] }
 0xa1c   : > { %v3488_v35 = vmul.f32 0.01, %v3422_v34  ;;  %6611 = vmatprep.mubr.msk.f32.mxu0 %vm546_vm1, %v3501_v56  ;;  %vm3472_vm14 = vcmp.ge.f32.partialorder %v3422_v34, 0.0  ;;  %v8772_v56 = vld [vmem:[%s9425_s9 + $0x1] ss:$0 sm:$0xff] }
 0xa1d   : > { %vm3471_vm15 = vcmp.ge.f32.partialorder %v3417_v38, 0.0  ;;  %v3487_v22 = vmul.f32 0.01, %v3417_v38  ;;  %v6587_v58 = vpop.f32.mrb[58].mxu1  ;;  %6612 = vmatmul.mubr.msk.f32.gmra.mrb[54].mxu0 %vm546_vm1, %v3502_v9 }
 0xa1e   : > { %v3432_v52 = vadd.f32 %v6587_v58, %v8734_v33  ;;  %v3426_v45 = vpop.f32.mrb[59].mxu1  ;;  %v3504_v61 = vsel %vm3472_vm14, %v3422_v34, %v3488_v35  ;;  %v3810_v34 = vld [vmem:[#allocation5 + $0x50] sm:$0xff] }
 0xa1f   : > { %v3427_v20 = vadd.f32 %v8734_v33, %v3426_v45  ;;  %v3503_v27 = vsel %vm3471_vm15, %v3417_v38, %v3487_v22  ;;  %v6883_v38 = vpack.c.bf16 %v3811_v37, %v3810_v34 }
 0xa20   : > { %v3490_v2 = vmul.f32 0.01, %v3432_v52  ;;  %6614 = vmatprep.mubr.msk.f32.mxu0 %vm546_vm1, %v3503_v27  ;;  %vm3474_vm10 = vcmp.ge.f32.partialorder %v3432_v52, 0.0 }
 0xa21   : > { %vm3473_vm11 = vcmp.ge.f32.partialorder %v3427_v20, 0.0  ;;  %v3489_v16 = vmul.f32 0.01, %v3427_v20  ;;  %v6590_v7 = vpop.f32.mrb[60].mxu1  ;;  %6615 = vmatmul.mubr.msk.f32.gmra.mrb[56].mxu0 %vm546_vm1, %v3504_v61 }
 0xa22   : > { %v3442_v15 = vadd.f32 %v6590_v7, %v8734_v33  ;;  %v3436_v30 = vpop.f32.mrb[61].mxu1  ;;  %v3506_v63 = vsel %vm3474_vm10, %v3432_v52, %v3490_v2 }
 0xa23   : > { %v3437_v49 = vadd.f32 %v8734_v33, %v3436_v30  ;;  %v3505_v8 = vsel %vm3473_vm11, %v3427_v20, %v3489_v16 }
 0xa24   : > { %v3492_v23 = vmul.f32 0.01, %v3442_v15  ;;  %6617 = vmatprep.mubr.msk.f32.mxu0 %vm546_vm1, %v3505_v8  ;;  %vm3476_vm12 = vcmp.ge.f32.partialorder %v3442_v15, 0.0 }
 0xa25   : > { %vm3475_vm13 = vcmp.ge.f32.partialorder %v3437_v49, 0.0  ;;  %v3491_v60 = vmul.f32 0.01, %v3437_v49  ;;  %v6593_v53 = vpop.f32.mrb[62].mxu1  ;;  %6618 = vmatmul.mubr.msk.f32.gmra.mrb[58].mxu0 %vm546_vm1, %v3506_v63 }
 0xa26   : > { %v3452_v59 = vadd.f32 %v6593_v53, %v8734_v33  ;;  %v3446_v19 = vpop.f32.mrb[63].mxu1  ;;  %v3508_v57 = vsel %vm3476_vm12, %v3442_v15, %v3492_v23 }
 0xa27   : > { %v3447_v46 = vadd.f32 %v8734_v33, %v3446_v19  ;;  %v3507_v4 = vsel %vm3475_vm13, %v3437_v49, %v3491_v60 }
 0xa28   : > { %v3494_v42 = vmul.f32 0.01, %v3452_v59  ;;  %6620 = vmatprep.mubr.msk.f32.mxu0 %vm546_vm1, %v3507_v4  ;;  %vm3478_vm14 = vcmp.ge.f32.partialorder %v3452_v59, 0.0 }
 0xa29   : > { %vm3477_vm15 = vcmp.ge.f32.partialorder %v3447_v46, 0.0  ;;  %v3493_v32 = vmul.f32 0.01, %v3447_v46  ;;  %v6596_v3 = vpop.f32.mrb[64].mxu1  ;;  %6621 = vmatmul.mubr.msk.f32.gmra.mrb[60].mxu0 %vm546_vm1, %v3508_v57 }
 0xa2a   : > { %v3462_v43 = vadd.f32 %v6596_v3, %v8734_v33  ;;  %v3456_v40 = vpop.f32.mrb[65].mxu1  ;;  %v3510_v31 = vsel %vm3478_vm14, %v3452_v59, %v3494_v42 }
 0xa2b   : > { %v3457_v54 = vadd.f32 %v8734_v33, %v3456_v40  ;;  %v3509_v62 = vsel %vm3477_vm15, %v3447_v46, %v3493_v32  ;;  %v6880_v33 = vpack.c.bf16 %v3809_v51, %v3808_v17 }
 0xa2c   : > { %v3496_v5 = vmul.f32 0.01, %v3462_v43  ;;  %6623 = vmatprep.mubr.msk.f32.mxu0 %vm546_vm1, %v3509_v62  ;;  %vm3480_vm10 = vcmp.ge.f32.partialorder %v3462_v43, 0.0 }
 0xa2d   : > { %vm3479_vm11 = vcmp.ge.f32.partialorder %v3457_v54, 0.0  ;;  %v3495_v55 = vmul.f32 0.01, %v3457_v54  ;;  %6624 = vmatmul.mubr.msk.f32.gmra.mrb[62].mxu0 %vm546_vm1, %v3510_v31  ;;  %6881 = vmatpush3.bf16.msra.mxu1 %v6880_v33 }
 0xa2e   : > { %v3512_v44 = vsel %vm3480_vm10, %v3462_v43, %v3496_v5  ;;  %6882 = vmatprep.subr.bf16.mxu1 %v7502_v0 }
 0xa2f   : > { %v3511_v50 = vsel %vm3479_vm11, %v3457_v54, %v3495_v55 }
 0xa30   : > { %6626 = vmatprep.mubr.msk.f32.mxu0 %vm546_vm1, %v3511_v50 }
 0xa31   : > { %6627 = vmatmul.mubr.msk.f32.gmra.mrb[64].mxu0 %vm546_vm1, %v3512_v44  ;;  %6884 = vmatpush3.bf16.msra.mxu1 %v6883_v38 }
 0xae2   : > { %v6607_v35 = vpop.f32.mrb[50].mxu0 }
 0xae3   : > { %v3646_v9 = vadd.f32 %v6607_v35, %v8772_v56  ;;  %v3640_v22 = vpop.f32.mrb[51].mxu0 }
 0xae4   : > { %v3641_v58 = vadd.f32 %v8772_v56, %v3640_v22 }
 0xae5   : > { %v8780_v45 = vadd.f32 %v3646_v9, %v8479_v48 }
 0xae6   : > { %v8777_v52 = vadd.f32 %v3641_v58, %v8482_v21 }
 0xae7   : > { %v3736_v53 = vsel %vm546_vm1, %v8780_v45, -inf }
 0xae8   : > { %6648 = vmatprep.mubr.msk.f32.mxu0 %vm546_vm1, %v8777_v52  ;;  %v3735_v59 = vsel %vm546_vm1, %v8777_v52, -inf }
 0xae9   : > { %6649 = vmatmul.mubr.msk.f32.vlgmr.msra.gmra.mrb[66].mxu0 %vm546_vm1, %v8780_v45  ;;  %v3737_v3 = vmax.f32 %v3735_v59, %v3736_v53 }
 0xaeb   : > { %v3738_v17 = vrot.slane %v3737_v3, 4 }
 0xaec   : > { %v6610_v20 = vpop.f32.mrb[52].mxu0 }
 0xaed   : > { %v3656_v27 = vadd.f32 %v6610_v20, %v8772_v56  ;;  %v3650_v2 = vpop.f32.mrb[53].mxu0 }
 0xaee   : > { %v3651_v61 = vadd.f32 %v8772_v56, %v3650_v2 }
 0xaef   : > { %v8789_v16 = vadd.f32 %v3656_v27, %v8492_v36  ;;  %v3739_v27 = vmax.f32 %v3737_v3, %v3738_v17 }
 0xaf0   : > { %v8792_v21 = vadd.f32 %v3651_v61, %v8489_v18  ;;  %v6613_v48 = vpop.f32.mrb[54].mxu0 }
 0xaf1   : > { %v3666_v7 = vadd.f32 %v6613_v48, %v8772_v56  ;;  %v3660_v15 = vpop.f32.mrb[55].mxu0  ;;  %v3745_v36 = vsel %vm546_vm1, %v8789_v16, -inf  ;;  %v3740_v53 = vrot.slane %v3739_v27, 2 }
 0xaf2   : > { %v3661_v30 = vadd.f32 %v8772_v56, %v3660_v15  ;;  %6651 = vmatprep.mubr.msk.f32.mxu0 %vm546_vm1, %v8792_v21  ;;  %v3744_v18 = vsel %vm546_vm1, %v8792_v21, -inf }
 0xaf3   : > { %v8799_v49 = vadd.f32 %v3666_v7, %v8500_v41  ;;  %6652 = vmatmul.mubr.msk.f32.gmra.mrb[68].mxu0 %vm546_vm1, %v8789_v16 }
 0xaf4   : > { %v8808_v8 = vadd.f32 %v3661_v30, %v8497_v26  ;;  %v6616_v23 = vpop.f32.mrb[56].mxu0  ;;  %v3746_v26 = vmax.f32 %v3744_v18, %v3745_v36 }
 0xaf5   : > { %v3754_v63 = vsel %vm546_vm1, %v8799_v49, -inf  ;;  %v3676_v60 = vadd.f32 %v6616_v23, %v8772_v56  ;;  %v3670_v41 = vpop.f32.mrb[57].mxu0 }
 0xaf6   : > { %v3753_v19 = vsel %vm546_vm1, %v8808_v8, -inf  ;;  %v3671_v46 = vadd.f32 %v8772_v56, %v3670_v41  ;;  %6654 = vmatprep.mubr.msk.f32.mxu0 %vm546_vm1, %v8808_v8  ;;  %v3747_v5 = vrot.slane %v3746_v26, 4 }
 0xaf7   : > { %v8823_v4 = vadd.f32 %v3676_v60, %v8510_v13  ;;  %6655 = vmatmul.mubr.msk.f32.gmra.mrb[70].mxu0 %vm546_vm1, %v8799_v49  ;;  %v3755_v42 = vmax.f32 %v3753_v19, %v3754_v63 }
 0xaf8   : > { %v8828_v57 = vadd.f32 %v3671_v46, %v8507_v11  ;;  %v6619_v32 = vpop.f32.mrb[58].mxu0  ;;  %v3748_v35 = vmax.f32 %v3746_v26, %v3747_v5  ;;  %v3741_v5 = vmax.f32 %v3739_v27, %v3740_v53 }
 0xaf9   : > { %v3763_v43 = vsel %vm546_vm1, %v8823_v4, -inf  ;;  %v3686_v40 = vadd.f32 %v6619_v32, %v8772_v56  ;;  %v3680_v54 = vpop.f32.mrb[59].mxu0  ;;  %v3756_v55 = vrot.slane %v3755_v42, 4 }
 0xafa   : > { %v3762_v62 = vsel %vm546_vm1, %v8828_v57, -inf  ;;  %v3681_v13 = vadd.f32 %v8772_v56, %v3680_v54  ;;  %6657 = vmatprep.mubr.msk.f32.mxu0 %vm546_vm1, %v8828_v57 }
 0xafb   : > { %v3764_v31 = vmax.f32 %v3762_v62, %v3763_v43  ;;  %v8839_v11 = vadd.f32 %v3686_v40, %v8520_v29  ;;  %6658 = vmatmul.mubr.msk.f32.gmra.mrb[72].mxu0 %vm546_vm1, %v8823_v4  ;;  %v3757_v9 = vmax.f32 %v3755_v42, %v3756_v55 }
 0xafc   : > { %v8844_v50 = vadd.f32 %v3681_v13, %v8517_v10  ;;  %v6622_v44 = vpop.f32.mrb[60].mxu0 }
 0xafd   : > { %v3765_v51 = vrot.slane %v3764_v31, 4  ;;  %v3772_v34 = vsel %vm546_vm1, %v8839_v11, -inf  ;;  %v3690_v33 = vpop.f32.mrb[61].mxu0  ;;  %v3696_v29 = vadd.f32 %v6622_v44, %v8772_v56  ;;  %v3758_v23 = vrot.slane %v3757_v9, 2 }
 0xafe   : > { %v3771_v37 = vsel %vm546_vm1, %v8844_v50, -inf  ;;  %v3691_v38 = vadd.f32 %v8772_v56, %v3690_v33  ;;  %6660 = vmatprep.mubr.msk.f32.mxu0 %vm546_vm1, %v8844_v50 }
 0xaff   : > { %v3773_v10 = vmax.f32 %v3771_v37, %v3772_v34  ;;  %6661 = vmatmul.mubr.msk.f32.gmra.mrb[74].mxu0 %vm546_vm1, %v8839_v11  ;;  %v8857_v22 = vadd.f32 %v3696_v29, %v8530_v14  ;;  %v3766_v2 = vmax.f32 %v3764_v31, %v3765_v51  ;;  %v3759_v54 = vmax.f32 %v3757_v9, %v3758_v23 }
 0xb00   : > { %v8860_v58 = vadd.f32 %v3691_v38, %v8527_v6  ;;  %v6625_v20 = vpop.f32.mrb[62].mxu0  ;;  %v3749_v6 = vrot.slane %v3748_v35, 2  ;;  %v3742_v29 = vrot.slane %v3741_v5, 1 }
 0xb01   : > { %v3774_v61 = vrot.slane %v3773_v10, 4  ;;  %v3700_v48 = vpop.f32.mrb[63].mxu0  ;;  %v3781_v7 = vsel %vm546_vm1, %v8857_v22, -inf  ;;  %v3706_v30 = vadd.f32 %v6625_v20, %v8772_v56  ;;  %v3767_v59 = vrot.slane %v3766_v2, 2 }
 0xb02   : > { %v3780_v15 = vsel %vm546_vm1, %v8860_v58, -inf  ;;  %v3701_v36 = vadd.f32 %v8772_v56, %v3700_v48  ;;  %6663 = vmatprep.mubr.msk.f32.mxu0 %vm546_vm1, %v8860_v58 }
 0xb03   : > { %v3775_v14 = vmax.f32 %v3773_v10, %v3774_v61  ;;  %v3782_v18 = vmax.f32 %v3780_v15, %v3781_v7  ;;  %6664 = vmatmul.mubr.msk.f32.gmra.mrb[76].mxu0 %vm546_vm1, %v8857_v22  ;;  %v8873_v63 = vadd.f32 %v3706_v30, %v8540_v24  ;;  %v3768_v31 = vmax.f32 %v3766_v2, %v3767_v59 }
 0xb04   : > { %v8876_v60 = vadd.f32 %v3701_v36, %v8537_v25  ;;  %v6628_v41 = vpop.f32.mrb[64].mxu0  ;;  %v3750_v25 = vmax.f32 %v3748_v35, %v3749_v6  ;;  %v3743_v7 = vmax.f32 %v3741_v5, %v3742_v29 }
 0xb05   : > { %v3776_v19 = vrot.slane %v3775_v14, 2  ;;  %v3783_v46 = vrot.slane %v3782_v18, 4  ;;  %v3710_v26 = vpop.f32.mrb[65].mxu0  ;;  %v3790_v42 = vsel %vm546_vm1, %v8873_v63, -inf  ;;  %v3716_v3 = vadd.f32 %v6628_v41, %v8772_v56 }
 0xb06   : > { %v3789_v32 = vsel %vm546_vm1, %v8876_v60, -inf  ;;  %v3711_v24 = vadd.f32 %v8772_v56, %v3710_v26  ;;  %6666 = vmatprep.mubr.msk.f32.mxu0 %vm546_vm1, %v8876_v60  ;;  %v3751_v34 = vrot.slane %v3750_v25, 1  ;;  %v3769_v38 = vrot.slane %v3768_v31, 1 }
 0xb07   : > { %v3784_v43 = vmax.f32 %v3782_v18, %v3783_v46  ;;  %v3791_v40 = vmax.f32 %v3789_v32, %v3790_v42  ;;  %6667 = vmatmul.mubr.msk.f32.gmra.mrb[78].mxu0 %vm546_vm1, %v8873_v63  ;;  %v8889_v62 = vadd.f32 %v3716_v3, %v8550_v12  ;;  %v3777_v44 = vmax.f32 %v3775_v14, %v3776_v19 }
 0xb08   : > { %v8892_v13 = vadd.f32 %v3711_v24, %v8547_v28  ;;  %v3760_v28 = vrot.slane %v3759_v54, 1  ;;  %v3752_v20 = vmax.f32 %v3750_v25, %v3751_v34  ;;  %v3770_v15 = vmax.f32 %v3768_v31, %v3769_v38  ;;  %v5990_v24 = vld [vmem:[%s9419_s3 + $0x80] sm:$0xff]  ;;  %v5991_v25 = vld [vmem:[%s9419_s3 + $0x88] sm:$0xff] }
 0xb09   : > { %v3785_v55 = vrot.slane %v3784_v43, 2  ;;  %v3792_v56 = vrot.slane %v3791_v40, 4  ;;  %v3799_v17 = vsel %vm546_vm1, %v8889_v62, -inf  ;;  %v3778_v9 = vrot.slane %v3777_v44, 1  ;;  %v5994_v31 = vld [vmem:[%s9419_s3 + $0xa0] sm:$0xff] }
 0xb0a   : > { %v3798_v51 = vsel %vm546_vm1, %v8892_v13, -inf  ;;  %6669 = vmatprep.mubr.msk.f32.mxu0 %vm546_vm1, %v8892_v13  ;;  %v3761_v48 = vmax.f32 %v3759_v54, %v3760_v28  ;;  %v3820_v14 = vsel %vm631_vm2, %v3752_v20, %v3743_v7  ;;  %v5993_v54 = vld [vmem:[%s9419_s3 + $0x98] sm:$0xff] }
 0xb0b   : > { %v3786_v12 = vmax.f32 %v3784_v43, %v3785_v55  ;;  %v3793_v33 = vmax.f32 %v3791_v40, %v3792_v56  ;;  %v3800_v37 = vmax.f32 %v3798_v51, %v3799_v17  ;;  %6670 = vmatmul.mubr.msk.f32.gmra.mrb[80].mxu0 %vm546_vm1, %v8889_v62  ;;  %v3779_v6 = vmax.f32 %v3777_v44, %v3778_v9  ;;  %v5992_v43 = vld [vmem:[%s9419_s3 + $0x90] sm:$0xff]  ;;  %v5995_v55 = vld [vmem:[%s9419_s3 + $0xa8] sm:$0xff]  ;;  %v5997_v17 = vld [vmem:[%s9419_s3 + $0xb8] sm:$0xff] }
 0xb0c   : > { %v3821_v41 = vsel %vm633_vm3, %v3761_v48, %v3820_v14  ;;  %v6893_v40 = vpack.c.bf16 %v5991_v25, %v5990_v24  ;;  %v6897_v5 = vpack.c.bf16 %v5993_v54, %v5992_v43  ;;  %v6901_v56 = vpack.c.bf16 %v5995_v55, %v5994_v31  ;;  %v5996_v44 = vld [vmem:[%s9419_s3 + $0xb0] sm:$0xff] }
 0xb0d   : > { %v3794_v35 = vrot.slane %v3793_v33, 2  ;;  %v3801_v10 = vrot.slane %v3800_v37, 4  ;;  %v3787_v27 = vrot.slane %v3786_v12, 1  ;;  %v3822_v19 = vsel %vm635_vm4, %v3770_v15, %v3821_v41 }
 0xb0e   : > { %v3823_v46 = vsel %vm637_vm5, %v3779_v6, %v3822_v19  ;;  %6894 = vmatprep.subr.bf16.mxu1 %v6893_v40  ;;  %v6905_v51 = vpack.c.bf16 %v5997_v17, %v5996_v44 }
 0xb0f   : > { %v3795_v2 = vmax.f32 %v3793_v33, %v3794_v35  ;;  %v3802_v61 = vmax.f32 %v3800_v37, %v3801_v10  ;;  %v3788_v18 = vmax.f32 %v3786_v12, %v3787_v27 }
 0xb11   : > { %v3796_v30 = vrot.slane %v3795_v2, 1  ;;  %v3803_v36 = vrot.slane %v3802_v61, 2  ;;  %v3824_v42 = vsel %vm639_vm6, %v3788_v18, %v3823_v46 }
 0xb13   : > { %v3804_v23 = vmax.f32 %v3802_v61, %v3803_v36  ;;  %v3797_v53 = vmax.f32 %v3795_v2, %v3796_v30 }
 0xb15   : > { %v3805_v59 = vrot.slane %v3804_v23, 1  ;;  %v3825_v32 = vsel %vm641_vm7, %v3797_v53, %v3824_v42 }
 0xb17   : > { %v3806_v26 = vmax.f32 %v3804_v23, %v3805_v59 }
 0xb19   : > { %v3826_v3 = vsel %vm643_vm8, %v3806_v26, %v3825_v32 }
 0xb1a   : > { %6638 = vmatmul.mubr.msk.f32.vlgmr.msra.gmra.mrb[66].mxu1 %vm546_vm1, %v3826_v3 }
 0xb1b   : > { %6896 = vmatpush3.bf16.msra.mxu1 %v6893_v40 }
 0xb1c   : > { %6898 = vmatprep.subr.bf16.mxu1 %v6897_v5 }
 0xb1f   : > { %6900 = vmatpush3.bf16.msra.mxu1 %v6897_v5 }
 0xb20   : > { %6902 = vmatprep.subr.bf16.mxu1 %v6901_v56 }
 0xb23   : > { %6904 = vmatpush3.bf16.msra.mxu1 %v6901_v56 }
 0xb24   : > { %6906 = vmatprep.subr.bf16.mxu1 %v6905_v51 }
 0xb27   : > { %6908 = vmatpush3.bf16.msra.mxu1 %v6905_v51 }
 0xbbc   : > { %v6650_v34 = vpop.f32.mrb[66].mxu0 }
 0xbbd   : > { %4317 = vrot.lane.b32.xlu0 %v6650_v34, %s7505_s19  ;;  %v4018_v12 = vpop.f32.mrb[67].mxu0 }
 0xbbe   : > { %4315 = vrot.lane.b32.xlu1 %v4018_v12, %s7505_s19 }
 0xbc6   : > { %v6653_v33 = vpop.f32.mrb[68].mxu0 }
 0xbc7   : > { %v4028_v37 = vpop.f32.mrb[69].mxu0 }
 0xbc8   : > { %4319 = vrot.lane.b32.xlu1 %v4028_v37, %s7505_s19 }
 0xbca   : > { %v6656_v28 = vpop.f32.mrb[70].mxu0 }
 0xbcb   : > { %v4038_v29 = vpop.f32.mrb[71].mxu0 }
 0xbcc   : > { %4321 = vrot.lane.b32.xlu1 %v6653_v33, %s7505_s19  ;;  %4323 = vrot.lane.b32.xlu0 %v4038_v29, %s7505_s19 }
 0xbce   : > { %v6659_v38 = vpop.f32.mrb[72].mxu0 }
 0xbcf   : > { %v4048_v35 = vpop.f32.mrb[73].mxu0 }
 0xbd0   : > { %4325 = vrot.lane.b32.xlu1 %v6656_v28, %s7505_s19  ;;  %4327 = vrot.lane.b32.xlu0 %v4048_v35, %s7505_s19 }
 0xbd2   : > { %v6662_v10 = vpop.f32.mrb[74].mxu0 }
 0xbd3   : > { %v4058_v9 = vpop.f32.mrb[75].mxu0 }
 0xbd4   : > { %4329 = vrot.lane.b32.xlu1 %v6659_v38, %s7505_s19  ;;  %4331 = vrot.lane.b32.xlu0 %v4058_v9, %s7505_s19 }
 0xbd6   : > { %v6665_v20 = vpop.f32.mrb[76].mxu0 }
 0xbd7   : > { %v4068_v27 = vpop.f32.mrb[77].mxu0 }
 0xbd8   : > { %4333 = vrot.lane.b32.xlu1 %v6662_v10, %s7505_s19  ;;  %4335 = vrot.lane.b32.xlu0 %v4068_v27, %s7505_s19 }
 0xbda   : > { %v6668_v2 = vpop.f32.mrb[78].mxu0 }
 0xbdb   : > { %v4078_v61 = vpop.f32.mrb[79].mxu0 }
 0xbdc   : > { %4337 = vrot.lane.b32.xlu1 %v6665_v20, %s7505_s19  ;;  %4339 = vrot.lane.b32.xlu0 %v4078_v61, %s7505_s19 }
 0xbde   : > { %v6671_v48 = vpop.f32.mrb[80].mxu0 }
 0xbdf   : > { %v4088_v7 = vpop.f32.mrb[81].mxu0 }
 0xbe0   : > { %4341 = vrot.lane.b32.xlu1 %v6668_v2, %s7505_s19  ;;  %4343 = vrot.lane.b32.xlu0 %v4088_v7, %s7505_s19 }
 0xbe4   : > { %4345 = vrot.lane.b32.xlu1 %v6671_v48, %s7505_s19  ;;  %s5646_s19 = scalar_lea.sflag [#allocation4], %s520_s24 }
 0xbed   : > { %v3895_v15 = vpop.f32.mrb[66].mxu1 }
 0xbee   : > { %v4098_v30 = vcombine.high %v3895_v15, %v3895_v15  ;;  %v4105_v36 = vrot.slane %v3895_v15, %v7926_v39  ;;  %v6639_v6 = vpop.f32.mrb[67].mxu1 }
 0xbf0   : > { %v4112_v14 = vrot.slane %v4098_v30, %v7926_v39  ;;  %v4113_v18 = vcombine.high %v4105_v36, %v4105_v36  ;;  %v4121_v23 = vrot.slane %v4105_v36, %v7926_v39 }
 0xbf2   : > { %v4114_v41 = vcombine.high %v4112_v14, %v4112_v14  ;;  %v4128_v53 = vrot.slane %v4112_v14, %v7926_v39  ;;  %v4135_v59 = vrot.slane %v4113_v18, %v7926_v39  ;;  %v4143_v19 = vcombine.high %v4121_v23, %v4121_v23 }
 0xbf3   : > { %v4150_v46 = vrot.slane %v4121_v23, %v7931_v47 }
 0xbf4   : > { %v4142_v26 = vrot.slane %v4114_v41, %v7926_v39  ;;  %v4144_v42 = vcombine.high %v4128_v53, %v4128_v53  ;;  %v4145_v32 = vcombine.high %v4135_v59, %v4135_v59  ;;  %v4154_v3 = vrot.slane %v4135_v59, %v7931_v47 }
 0xbf5   : > { %v4158_v24 = vrot.slane %v4143_v19, %v7931_v47  ;;  %v4166_v25 = vrot.slane %v4128_v53, %v7931_v47  ;;  %v4187_v43 = vmul.f32 %v4150_v46, %v4018_v12  ;;  %v4188_v40 = vmul.f32 %v6650_v34, %v4150_v46 }
 0xbf6   : > { %v4146_v54 = vcombine.high %v4142_v26, %v4142_v26  ;;  %v4162_v5 = vrot.slane %v4145_v32, %v7931_v47  ;;  %v4170_v31 = vrot.slane %v4142_v26, %v7931_v47  ;;  %v4174_v55 = vrot.slane %v4144_v42, %v7931_v47 }
 0xbf7   : > { %v4189_v56 = vmul.f32 %v4154_v3, %v4028_v37  ;;  %v4190_v44 = vmul.f32 %v6653_v33, %v4154_v3  ;;  %v4191_v39 = vmul.f32 %v4158_v24, %v4038_v29  ;;  %v4192_v17 = vmul.f32 %v6656_v28, %v4158_v24 }
 0xbf8   : > { %v4178_v51 = vrot.slane %v4146_v54, %v7931_v47  ;;  %v4193_v15 = vmul.f32 %v4162_v5, %v4048_v35  ;;  %v4194_v30 = vmul.f32 %v6659_v38, %v4162_v5  ;;  %v4195_v36 = vmul.f32 %v4166_v25, %v4058_v9 }
 0xbf9   : > { %v4196_v6 = vmul.f32 %v6662_v10, %v4166_v25  ;;  %v4197_v14 = vmul.f32 %v4170_v31, %v4068_v27  ;;  %v4198_v12 = vmul.f32 %v6665_v20, %v4170_v31  ;;  %v4199_v34 = vmul.f32 %v4174_v55, %v4078_v61 }
 0xbfa   : > { %v4200_v18 = vmul.f32 %v6668_v2, %v4174_v55  ;;  %v4201_v23 = vmul.f32 %v4178_v51, %v4088_v7  ;;  %v4202_v41 = vmul.f32 %v6671_v48, %v4178_v51  ;;  %v5974_v53 = vmul.f32 -1.442695, %v4187_v43 }
 0xbfb   : > { %v5975_v59 = vmul.f32 -1.442695, %v4188_v40  ;;  %v5976_v37 = vmul.f32 -1.442695, %v4189_v56  ;;  %v5977_v33 = vmul.f32 -1.442695, %v4190_v44 }
 0xbfc   : > { %7210 = vpow2.f32 %v5974_v53  ;;  %v5978_v28 = vmul.f32 -1.442695, %v4191_v39  ;;  %v5979_v35 = vmul.f32 -1.442695, %v4192_v17  ;;  %v5980_v38 = vmul.f32 -1.442695, %v4193_v15 }
 0xbfd   : > { %7212 = vpow2.f32 %v5975_v59  ;;  %v5981_v20 = vmul.f32 -1.442695, %v4194_v30  ;;  %v5982_v27 = vmul.f32 -1.442695, %v4195_v36  ;;  %v5983_v61 = vmul.f32 -1.442695, %v4196_v6 }
 0xbfe   : > { %7214 = vpow2.f32 %v5976_v37  ;;  %v5984_v48 = vmul.f32 -1.442695, %v4197_v14  ;;  %v5985_v26 = vmul.f32 -1.442695, %v4198_v12  ;;  %v5986_v32 = vmul.f32 -1.442695, %v4199_v34 }
 0xbff   : > { %7216 = vpow2.f32 %v5977_v33  ;;  %v5987_v31 = vmul.f32 -1.442695, %v4200_v18  ;;  %v5988_v17 = vmul.f32 -1.442695, %v4201_v23  ;;  %v5989_v36 = vmul.f32 -1.442695, %v4202_v41 }
 0xc00   : > { %7218 = vpow2.f32 %v5978_v28 }
 0xc01   : > { %7220 = vpow2.f32 %v5979_v35 }
 0xc02   : > { %7222 = vpow2.f32 %v5980_v38 }
 0xc06   : > { %v7211_v29 = vpop.eup %7210 }
 0xc07   : > { %v7213_v47 = vpop.eup %7212  ;;  %v4251_v10 = vadd.f32 1.0, %v7211_v29 }
 0xc08   : > { %v4252_v9 = vadd.f32 1.0, %v7213_v47  ;;  %v7215_v2 = vpop.eup %7214 }
 0xc09   : > { %7224 = vrcp.f32 %v4251_v10  ;;  %v7217_v7 = vpop.eup %7216  ;;  %v4253_v19 = vadd.f32 1.0, %v7215_v2 }
 0xc0a   : > { %7226 = vrcp.f32 %v4252_v9  ;;  %v7219_v46 = vpop.eup %7218  ;;  %v4254_v25 = vadd.f32 1.0, %v7217_v7 }
 0xc0b   : > { %7228 = vpow2.f32 %v5981_v20  ;;  %v7221_v42 = vpop.eup %7220  ;;  %v4255_v54 = vadd.f32 1.0, %v7219_v46 }
 0xc0c   : > { %7230 = vpow2.f32 %v5982_v27  ;;  %v7223_v3 = vpop.eup %7222  ;;  %v4256_v44 = vadd.f32 1.0, %v7221_v42 }
 0xc0d   : > { %7232 = vpow2.f32 %v5983_v61  ;;  %v4257_v51 = vadd.f32 1.0, %v7223_v3 }
 0xc0e   : > { %7234 = vpow2.f32 %v5984_v48 }
 0xc0f   : > { %7236 = vrcp.f32 %v4253_v19 }
 0xc10   : > { %7238 = vpow2.f32 %v5985_v26 }
 0xc11   : > { %7240 = vpow2.f32 %v5986_v32 }
 0xc12   : > { %7242 = vrcp.f32 %v4254_v25 }
 0xc13   : > { %v7225_v43 = vpop.eup %7224  ;;  %7244 = vrcp.f32 %v4255_v54 }
 0xc14   : > { %v7227_v5 = vpop.eup %7226  ;;  %7246 = vpow2.f32 %v5987_v31 }
 0xc15   : > { %v7229_v39 = vpop.eup %7228  ;;  %7248 = vrcp.f32 %v4256_v44 }
 0xc16   : > { %v7231_v15 = vpop.eup %7230  ;;  %v4258_v30 = vadd.f32 1.0, %v7229_v39  ;;  %7250 = vpow2.f32 %v5988_v17 }
 0xc17   : > { %v7233_v6 = vpop.eup %7232  ;;  %7252 = vrcp.f32 %v4257_v51  ;;  %v4259_v14 = vadd.f32 1.0, %v7231_v15 }
 0xc18   : > { %v7235_v12 = vpop.eup %7234  ;;  %7254 = vrcp.f32 %v4258_v30  ;;  %v4260_v59 = vadd.f32 1.0, %v7233_v6 }
 0xc19   : > { %v7237_v34 = vpop.eup %7236  ;;  %7256 = vpow2.f32 %v5989_v36  ;;  %v4261_v33 = vadd.f32 1.0, %v7235_v12 }
 0xc1a   : > { %v7239_v23 = vpop.eup %7238  ;;  %7258 = vrcp.f32 %v4259_v14 }
 0xc1b   : > { %v7241_v37 = vpop.eup %7240  ;;  %7260 = vrcp.f32 %v4260_v59  ;;  %v4262_v9 = vadd.f32 1.0, %v7239_v23 }
 0xc1c   : > { %v7243_v29 = vpop.eup %7242  ;;  %7262 = vrcp.f32 %v4261_v33  ;;  %v4263_v27 = vadd.f32 1.0, %v7241_v37 }
 0xc1d   : > { %v7245_v28 = vpop.eup %7244  ;;  %7264 = vrcp.f32 %v4262_v9 }
 0xc1e   : > { %v7247_v35 = vpop.eup %7246  ;;  %7266 = vrcp.f32 %v4263_v27 }
 0xc1f   : > { %v7249_v20 = vpop.eup %7248  ;;  %v4264_v26 = vadd.f32 1.0, %v7247_v35 }
 0xc20   : > { %v7251_v2 = vpop.eup %7250 }
 0xc21   : > { %v7253_v61 = vpop.eup %7252  ;;  %v4265_v32 = vadd.f32 1.0, %v7251_v2  ;;  %7268 = vrcp.f32 %v4264_v26 }
 0xc22   : > { %v7255_v42 = vpop.eup %7254 }
 0xc23   : > { %v7257_v3 = vpop.eup %7256  ;;  %7270 = vrcp.f32 %v4265_v32 }
 0xc2f   : > { %v4318_v24 = vpop.permute.xlu0 %4317 }
 0xc30   : > { %v4316_v40 = vpop.permute.xlu1 %4315  ;;  %v4364_v56 = vmul.f32 %v7227_v5, %v4318_v24  ;;  %v7259_v24 = vpop.eup %7258  ;;  %v4266_v5 = vadd.f32 1.0, %v7257_v3 }
 0xc31   : > { %v4363_v55 = vmul.f32 %v7225_v43, %v4316_v40  ;;  %v7261_v31 = vpop.eup %7260 }
 0xc32   : > { %7272 = vrcp.f32 %v4266_v5 }
 0xc33   : > { %6688 = vmatprep.mubr.msk.f32.mxu1 %vm1204_vm9, %v4363_v55  ;;  %v7263_v55 = vpop.eup %7262 }
 0xc34   : > { %6689 = vmatmul.mubr.msk.f32.vlgmr.msra.gmra.mrb[68].mxu1 %vm1204_vm9, %v4364_v56  ;;  %v7265_v51 = vpop.eup %7264 }
 0xc35   : > { %v7267_v15 = vpop.eup %7266 }
 0xc36   : > { %v7269_v12 = vpop.eup %7268 }
 0xc3a   : > { %v4320_v18 = vpop.permute.xlu1 %4319 }
 0xc3b   : > { %v4365_v53 = vmul.f32 %v7237_v34, %v4320_v18  ;;  %v7271_v34 = vpop.eup %7270 }
 0xc3c   : > { %v7273_v37 = vpop.eup %7272 }
 0xc3d   : > { %6691 = vmatprep.mubr.msk.f32.mxu1 %vm1204_vm9, %v4365_v53 }
 0xc3e   : > { %v4322_v41 = vpop.permute.xlu1 %4321  ;;  %v4324_v47 = vpop.permute.xlu0 %4323 }
 0xc3f   : > { %v4366_v38 = vmul.f32 %v7243_v29, %v4322_v41  ;;  %v4367_v10 = vmul.f32 %v7245_v28, %v4324_v47 }
 0xc41   : > { %6692 = vmatmul.mubr.msk.f32.gmra.mrb[70].mxu1 %vm1204_vm9, %v4366_v38 }
 0xc42   : > { %v4326_v48 = vpop.permute.xlu1 %4325  ;;  %v4328_v7 = vpop.permute.xlu0 %4327  ;;  %6694 = vmatprep.mubr.msk.f32.mxu1 %vm1204_vm9, %v4367_v10 }
 0xc43   : > { %v4368_v19 = vmul.f32 %v7249_v20, %v4326_v48  ;;  %v4369_v46 = vmul.f32 %v7253_v61, %v4328_v7 }
 0xc45   : > { %6695 = vmatmul.mubr.msk.f32.gmra.mrb[72].mxu1 %vm1204_vm9, %v4368_v19 }
 0xc46   : > { %v4330_v25 = vpop.permute.xlu1 %4329  ;;  %v4332_v43 = vpop.permute.xlu0 %4331  ;;  %6697 = vmatprep.mubr.msk.f32.mxu1 %vm1204_vm9, %v4369_v46 }
 0xc47   : > { %v4370_v40 = vmul.f32 %v7255_v42, %v4330_v25  ;;  %v4371_v54 = vmul.f32 %v7259_v24, %v4332_v43 }
 0xc49   : > { %6698 = vmatmul.mubr.msk.f32.gmra.mrb[74].mxu1 %vm1204_vm9, %v4370_v40 }
 0xc4a   : > { %v4334_v56 = vpop.permute.xlu1 %4333  ;;  %v4336_v44 = vpop.permute.xlu0 %4335  ;;  %6700 = vmatprep.mubr.msk.f32.mxu1 %vm1204_vm9, %v4371_v54 }
 0xc4b   : > { %v4372_v39 = vmul.f32 %v7261_v31, %v4334_v56  ;;  %v4373_v17 = vmul.f32 %v7263_v55, %v4336_v44 }
 0xc4d   : > { %6701 = vmatmul.mubr.msk.f32.gmra.mrb[76].mxu1 %vm1204_vm9, %v4372_v39 }
 0xc4e   : > { %v4338_v30 = vpop.permute.xlu1 %4337  ;;  %v4340_v36 = vpop.permute.xlu0 %4339  ;;  %6703 = vmatprep.mubr.msk.f32.mxu1 %vm1204_vm9, %v4373_v17 }
 0xc4f   : > { %v4374_v6 = vmul.f32 %v7265_v51, %v4338_v30  ;;  %v4375_v14 = vmul.f32 %v7267_v15, %v4340_v36 }
 0xc51   : > { %6704 = vmatmul.mubr.msk.f32.gmra.mrb[78].mxu1 %vm1204_vm9, %v4374_v6 }
 0xc52   : > { %v4342_v18 = vpop.permute.xlu1 %4341  ;;  %v4344_v23 = vpop.permute.xlu0 %4343  ;;  %6706 = vmatprep.mubr.msk.f32.mxu1 %vm1204_vm9, %v4375_v14 }
 0xc53   : > { %v4376_v53 = vmul.f32 %v7269_v12, %v4342_v18  ;;  %v4377_v59 = vmul.f32 %v7271_v34, %v4344_v23 }
 0xc55   : > { %6707 = vmatmul.mubr.msk.f32.gmra.mrb[80].mxu1 %vm1204_vm9, %v4376_v53 }
 0xc56   : > { %v4346_v33 = vpop.permute.xlu1 %4345  ;;  %6709 = vmatprep.mubr.msk.f32.mxu1 %vm1204_vm9, %v4377_v59 }
 0xc57   : > { %v4378_v29 = vmul.f32 %v7273_v37, %v4346_v33 }
 0xc59   : > { %6710 = vmatmul.mubr.msk.f32.gmra.mrb[82].mxu1 %vm1204_vm9, %v4378_v29 }
 0xd07   : > { %v6690_v28 = vpop.f32.mrb[68].mxu1 }
 0xd08   : > { %v8981_v41 = vadd.f32 %v6690_v28, %v8780_v45  ;;  %v4502_v47 = vpop.f32.mrb[69].mxu1 }
 0xd09   : > { %v8984_v35 = vadd.f32 %v4502_v47, %v8777_v52 }
 0xd0a   : > { %v4604_v38 = vsel %vm546_vm1, %v8981_v41, 0.0 }
 0xd0b   : > { %4605 = vadd.xlane.f32.xlu1 %v4604_v38  ;;  %v4601_v10 = vsel %vm546_vm1, %v8984_v35, 0.0 }
 0xd0c   : > { %4602 = vadd.xlane.f32.xlu0 %v4601_v10 }
 0xd14   : > { %v6693_v9 = vpop.f32.mrb[70].mxu1 }
 0xd15   : > { %v4512_v20 = vpop.f32.mrb[71].mxu1  ;;  %v8994_v45 = vadd.f32 %v6693_v9, %v8789_v16 }
 0xd16   : > { %v8991_v27 = vadd.f32 %v4512_v20, %v8792_v21 }
 0xd17   : > { %v4610_v21 = vsel %vm546_vm1, %v8994_v45, 0.0 }
 0xd18   : > { %v6696_v2 = vpop.f32.mrb[72].mxu1  ;;  %v4607_v52 = vsel %vm546_vm1, %v8991_v27, 0.0 }
 0xd19   : > { %4608 = vadd.xlane.f32.xlu0 %v4607_v52  ;;  %v4522_v61 = vpop.f32.mrb[73].mxu1  ;;  %v9002_v7 = vadd.f32 %v6696_v2, %v8799_v49 }
 0xd1a   : > { %v8999_v48 = vadd.f32 %v4522_v61, %v8808_v8 }
 0xd1b   : > { %v4616_v49 = vsel %vm546_vm1, %v9002_v7, 0.0 }
 0xd1c   : > { %v6699_v19 = vpop.f32.mrb[74].mxu1  ;;  %v4613_v16 = vsel %vm546_vm1, %v8999_v48, 0.0 }
 0xd1d   : > { %4611 = vadd.xlane.f32.xlu0 %v4610_v21  ;;  %4614 = vadd.xlane.f32.xlu1 %v4613_v16  ;;  %v4532_v46 = vpop.f32.mrb[75].mxu1  ;;  %v9012_v42 = vadd.f32 %v6699_v19, %v8823_v4 }
 0xd1e   : > { %v9009_v26 = vadd.f32 %v4532_v46, %v8828_v57 }
 0xd1f   : > { %v4622_v4 = vsel %vm546_vm1, %v9012_v42, 0.0 }
 0xd20   : > { %v6702_v8 = vpop.f32.mrb[76].mxu1  ;;  %v4619_v32 = vsel %vm546_vm1, %v9009_v26, 0.0 }
 0xd21   : > { %4617 = vadd.xlane.f32.xlu0 %v4616_v49  ;;  %4620 = vadd.xlane.f32.xlu1 %v4619_v32  ;;  %v4542_v3 = vpop.f32.mrb[77].mxu1  ;;  %v9022_v25 = vadd.f32 %v6702_v8, %v8839_v11 }
 0xd22   : > { %v9019_v24 = vadd.f32 %v4542_v3, %v8844_v50 }
 0xd23   : > { %v4628_v11 = vsel %vm546_vm1, %v9022_v25, 0.0 }
 0xd24   : > { %v6705_v57 = vpop.f32.mrb[78].mxu1  ;;  %v4625_v43 = vsel %vm546_vm1, %v9019_v24, 0.0 }
 0xd25   : > { %4623 = vadd.xlane.f32.xlu0 %v4622_v4  ;;  %4626 = vadd.xlane.f32.xlu1 %v4625_v43  ;;  %v4552_v40 = vpop.f32.mrb[79].mxu1  ;;  %v9032_v5 = vadd.f32 %v6705_v57, %v8857_v22 }
 0xd26   : > { %v9029_v54 = vadd.f32 %v4552_v40, %v8860_v58 }
 0xd27   : > { %v4634_v22 = vsel %vm546_vm1, %v9032_v5, 0.0 }
 0xd28   : > { %v6708_v50 = vpop.f32.mrb[80].mxu1  ;;  %v4631_v31 = vsel %vm546_vm1, %v9029_v54, 0.0 }
 0xd29   : > { %4629 = vadd.xlane.f32.xlu0 %v4628_v11  ;;  %4632 = vadd.xlane.f32.xlu1 %v4631_v31  ;;  %v4562_v55 = vpop.f32.mrb[81].mxu1  ;;  %v9042_v44 = vadd.f32 %v6708_v50, %v8873_v63 }
 0xd2a   : > { %v9039_v56 = vadd.f32 %v4562_v55, %v8876_v60 }
 0xd2b   : > { %v4640_v63 = vsel %vm546_vm1, %v9042_v44, 0.0 }
 0xd2c   : > { %v6711_v58 = vpop.f32.mrb[82].mxu1  ;;  %v4637_v39 = vsel %vm546_vm1, %v9039_v56, 0.0 }
 0xd2d   : > { %4635 = vadd.xlane.f32.xlu0 %v4634_v22  ;;  %4638 = vadd.xlane.f32.xlu1 %v4637_v39  ;;  %v4572_v17 = vpop.f32.mrb[83].mxu1  ;;  %v9052_v15 = vadd.f32 %v6711_v58, %v8889_v62 }
 0xd2e   : > { %v9049_v51 = vadd.f32 %v4572_v17, %v8892_v13 }
 0xd2f   : > { %v4646_v30 = vsel %vm546_vm1, %v9052_v15, 0.0 }
 0xd30   : > { %v4643_v60 = vsel %vm546_vm1, %v9049_v51, 0.0 }
 0xd31   : > { %4641 = vadd.xlane.f32.xlu0 %v4640_v63  ;;  %4644 = vadd.xlane.f32.xlu1 %v4643_v60 }
 0xd35   : > { %4647 = vadd.xlane.f32.xlu0 %v4646_v30 }
 0xd98   : > { %v4606_v36 = vpop.xlane.xlu1 %4605 }
 0xd99   : > { %v4650_v6 = vmul.f32 0.03125, %v4606_v36  ;;  %v4603_v14 = vpop.xlane.xlu0 %4602 }
 0xd9a   : > { %v4649_v13 = vmul.f32 0.03125, %v4603_v14 }
 0xd9b   : > { %v9061_v12 = vsub.f32 %v8981_v41, %v4650_v6 }
 0xd9c   : > { %v9064_v62 = vsub.f32 %v8984_v35, %v4649_v13 }
 0xd9d   : > { %v4682_v34 = vmul.f32 %v9061_v12, %v9061_v12 }
 0xd9e   : > { %v4681_v18 = vmul.f32 %v9064_v62, %v9064_v62 }
 0xd9f   : > { %v4700_v23 = vsel %vm546_vm1, %v4682_v34, 0.0 }
 0xda0   : > { %4701 = vadd.xlane.f32.xlu0 %v4700_v23  ;;  %v4697_v53 = vsel %vm546_vm1, %v4681_v18, 0.0 }
 0xda1   : > { %4698 = vadd.xlane.f32.xlu1 %v4697_v53 }
 0xda6   : > { %v4609_v59 = vpop.xlane.xlu0 %4608 }
 0xda7   : > { %v4651_v37 = vmul.f32 0.03125, %v4609_v59 }
 0xda9   : > { %v9073_v33 = vsub.f32 %v8991_v27, %v4651_v37 }
 0xdaa   : > { %v4612_v29 = vpop.xlane.xlu0 %4611  ;;  %v4615_v28 = vpop.xlane.xlu1 %4614 }
 0xdab   : > { %v4652_v47 = vmul.f32 0.03125, %v4612_v29  ;;  %v4653_v38 = vmul.f32 0.03125, %v4615_v28  ;;  %v4683_v10 = vmul.f32 %v9073_v33, %v9073_v33 }
 0xdad   : > { %v9078_v9 = vsub.f32 %v8994_v45, %v4652_v47  ;;  %v9081_v20 = vsub.f32 %v8999_v48, %v4653_v38  ;;  %v4703_v2 = vsel %vm546_vm1, %v4683_v10, 0.0 }
 0xdae   : > { %v4618_v52 = vpop.xlane.xlu0 %4617  ;;  %v4621_v61 = vpop.xlane.xlu1 %4620  ;;  %4704 = vadd.xlane.f32.xlu1 %v4703_v2 }
 0xdaf   : > { %v4654_v19 = vmul.f32 0.03125, %v4618_v52  ;;  %v4655_v21 = vmul.f32 0.03125, %v4621_v61  ;;  %v4684_v16 = vmul.f32 %v9078_v9, %v9078_v9  ;;  %v4685_v46 = vmul.f32 %v9081_v20, %v9081_v20 }
 0xdb1   : > { %v9089_v8 = vsub.f32 %v9002_v7, %v4654_v19  ;;  %v9092_v49 = vsub.f32 %v9009_v26, %v4655_v21  ;;  %v4706_v32 = vsel %vm546_vm1, %v4684_v16, 0.0  ;;  %v4709_v3 = vsel %vm546_vm1, %v4685_v46, 0.0 }
 0xdb2   : > { %v4624_v57 = vpop.xlane.xlu0 %4623  ;;  %v4627_v4 = vpop.xlane.xlu1 %4626  ;;  %4707 = vadd.xlane.f32.xlu0 %v4706_v32  ;;  %4710 = vadd.xlane.f32.xlu1 %v4709_v3 }
 0xdb3   : > { %v4656_v43 = vmul.f32 0.03125, %v4624_v57  ;;  %v4657_v40 = vmul.f32 0.03125, %v4627_v4  ;;  %v4686_v50 = vmul.f32 %v9089_v8, %v9089_v8  ;;  %v4687_v11 = vmul.f32 %v9092_v49, %v9092_v49  ;;  %v4854_v4 = vld [vmem:[#allocation7 + $0x40] sm:$0xff] }
 0xdb5   : > { %v9101_v31 = vsub.f32 %v9012_v42, %v4656_v43  ;;  %v9104_v55 = vsub.f32 %v9019_v24, %v4657_v40  ;;  %v4712_v58 = vsel %vm546_vm1, %v4686_v50, 0.0  ;;  %v4715_v22 = vsel %vm546_vm1, %v4687_v11, 0.0  ;;  %v4855_v43 = vld [vmem:[#allocation7 + $0x48] sm:$0xff] }
 0xdb6   : > { %v4630_v39 = vpop.xlane.xlu0 %4629  ;;  %v4633_v17 = vpop.xlane.xlu1 %4632  ;;  %4713 = vadd.xlane.f32.xlu0 %v4712_v58  ;;  %4716 = vadd.xlane.f32.xlu1 %v4715_v22  ;;  %v6909_v50 = vpack.c.bf16 %v4855_v43, %v4854_v4  ;;  %v9167_v43 = vld [vmem:[%s9421_s5 + $0x2] ss:$0 sm:$0xff] }
 0xdb7   : > { %v4658_v63 = vmul.f32 0.03125, %v4630_v39  ;;  %v4659_v60 = vmul.f32 0.03125, %v4633_v17  ;;  %v4688_v30 = vmul.f32 %v9101_v31, %v9101_v31  ;;  %v4689_v36 = vmul.f32 %v9104_v55, %v9104_v55 }
 0xdb8   : > { %6910 = vmatprep.subr.bf16.mxu0 %v6909_v50 }
 0xdb9   : > { %v9113_v6 = vsub.f32 %v9022_v25, %v4658_v63  ;;  %v9116_v14 = vsub.f32 %v9029_v54, %v4659_v60  ;;  %v4718_v13 = vsel %vm546_vm1, %v4688_v30, 0.0  ;;  %v4721_v34 = vsel %vm546_vm1, %v4689_v36, 0.0  ;;  %6912 = vmatpush3.bf16.msra.mxu0 %v6909_v50  ;;  %v4856_v60 = vld [vmem:[#allocation7 + $0x50] sm:$0xff]  ;;  %v4857_v30 = vld [vmem:[#allocation7 + $0x58] sm:$0xff] }
 0xdba   : > { %v4636_v18 = vpop.xlane.xlu0 %4635  ;;  %v4639_v23 = vpop.xlane.xlu1 %4638  ;;  %4719 = vadd.xlane.f32.xlu0 %v4718_v13  ;;  %4722 = vadd.xlane.f32.xlu1 %v4721_v34  ;;  %v6913_v36 = vpack.c.bf16 %v4857_v30, %v4856_v60 }
 0xdbb   : > { %v4660_v53 = vmul.f32 0.03125, %v4636_v18  ;;  %v4661_v59 = vmul.f32 0.03125, %v4639_v23  ;;  %v4690_v37 = vmul.f32 %v9113_v6, %v9113_v6  ;;  %v4691_v29 = vmul.f32 %v9116_v14, %v9116_v14  ;;  %v5108_v18 = vld [vmem:[#allocation8 + $0x40] sm:$0xff]  ;;  %v5109_v23 = vld [vmem:[#allocation8 + $0x48] sm:$0xff] }
 0xdbc   : > { %6914 = vmatprep.subr.bf16.mxu0 %v6913_v36 }
 0xdbd   : > { %v9125_v28 = vsub.f32 %v9032_v5, %v4660_v53  ;;  %v9128_v47 = vsub.f32 %v9039_v56, %v4661_v59  ;;  %v4724_v38 = vsel %vm546_vm1, %v4690_v37, 0.0  ;;  %v4727_v10 = vsel %vm546_vm1, %v4691_v29, 0.0  ;;  %6916 = vmatpush3.bf16.msra.mxu0 %v6913_v36 }
 0xdbe   : > { %v4642_v2 = vpop.xlane.xlu0 %4641  ;;  %4725 = vadd.xlane.f32.xlu0 %v4724_v38  ;;  %4728 = vadd.xlane.f32.xlu1 %v4727_v10  ;;  %v4645_v52 = vpop.xlane.xlu1 %4644  ;;  %v6917_v53 = vpack.c.bf16 %v5109_v23, %v5108_v18 }
 0xdbf   : > { %v4662_v61 = vmul.f32 0.03125, %v4642_v2  ;;  %v4663_v19 = vmul.f32 0.03125, %v4645_v52  ;;  %v4692_v21 = vmul.f32 %v9125_v28, %v9125_v28  ;;  %v4693_v16 = vmul.f32 %v9128_v47, %v9128_v47  ;;  %6925 = vmatprep.subr.bf16.mxu0 %v7502_v0 }
 0xdc0   : > { %6918 = vmatprep.subr.bf16.mxu1 %v6917_v53 }
 0xdc1   : > { %v9137_v46 = vsub.f32 %v9042_v44, %v4662_v61  ;;  %v9140_v32 = vsub.f32 %v9049_v51, %v4663_v19  ;;  %v4730_v3 = vsel %vm546_vm1, %v4692_v21, 0.0  ;;  %v4733_v57 = vsel %vm546_vm1, %v4693_v16, 0.0  ;;  %6920 = vmatpush3.bf16.msra.mxu1 %v6917_v53  ;;  %v9160_v19 = vld [vmem:[%s9420_s4 + $0x2] ss:$0 sm:$0xff] }
 0xdc2   : > { %4731 = vadd.xlane.f32.xlu0 %v4730_v3  ;;  %v4648_v40 = vpop.xlane.xlu0 %4647  ;;  %4734 = vadd.xlane.f32.xlu1 %v4733_v57 }
 0xdc3   : > { %v4664_v11 = vmul.f32 0.03125, %v4648_v40  ;;  %v4694_v58 = vmul.f32 %v9137_v46, %v9137_v46  ;;  %v4695_v22 = vmul.f32 %v9140_v32, %v9140_v32 }
 0xdc5   : > { %v9149_v39 = vsub.f32 %v9052_v15, %v4664_v11  ;;  %v4736_v17 = vsel %vm546_vm1, %v4694_v58, 0.0  ;;  %v4739_v63 = vsel %vm546_vm1, %v4695_v22, 0.0 }
 0xdc6   : > { %4737 = vadd.xlane.f32.xlu0 %v4736_v17  ;;  %4740 = vadd.xlane.f32.xlu1 %v4739_v63 }
 0xdc7   : > { %v4696_v13 = vmul.f32 %v9149_v39, %v9149_v39 }
 0xdc9   : > { %v4742_v34 = vsel %vm546_vm1, %v4696_v13, 0.0 }
 0xdca   : > { %4743 = vadd.xlane.f32.xlu0 %v4742_v34 }
 0xe2d   : > { %v4702_v59 = vpop.xlane.xlu0 %4701 }
 0xe2e   : > { %v4746_v37 = vmul.f32 0.03125, %v4702_v59  ;;  %v4699_v29 = vpop.xlane.xlu1 %4698 }
 0xe2f   : > { %v4745_v38 = vmul.f32 0.03125, %v4699_v29 }
 0xe30   : > { %v4762_v10 = vadd.f32 1e-05, %v4746_v37 }
 0xe31   : > { %v4761_v2 = vadd.f32 1e-05, %v4745_v38 }
 0xe32   : > { %7274 = vrsqrt.f32 %v4762_v10 }
 0xe33   : > { %7276 = vrsqrt.f32 %v4761_v2 }
 0xe3b   : > { %v4705_v52 = vpop.xlane.xlu1 %4704 }
 0xe3c   : > { %v7275_v61 = vpop.eup %7274  ;;  %v4747_v21 = vmul.f32 0.03125, %v4705_v52 }
 0xe3d   : > { %v7277_v16 = vpop.eup %7276  ;;  %v4794_v3 = vmul.f32 %v7275_v61, %v9061_v12 }
 0xe3e   : > { %v4763_v57 = vadd.f32 1e-05, %v4747_v21  ;;  %v4793_v4 = vmul.f32 %v7277_v16, %v9064_v62 }
 0xe3f   : > { %v4816_v40 = vmul.f32 %v9160_v19, %v4794_v3  ;;  %v4708_v50 = vpop.xlane.xlu0 %4707  ;;  %v4711_v11 = vpop.xlane.xlu1 %4710 }
 0xe40   : > { %7278 = vrsqrt.f32 %v4763_v57  ;;  %v4748_v58 = vmul.f32 0.03125, %v4708_v50  ;;  %v4749_v22 = vmul.f32 0.03125, %v4711_v11  ;;  %v4815_v17 = vmul.f32 %v9160_v19, %v4793_v4 }
 0xe41   : > { %v4838_v62 = vadd.f32 %v9167_v43, %v4816_v40 }
 0xe42   : > { %v4764_v63 = vadd.f32 1e-05, %v4748_v58  ;;  %v4765_v60 = vadd.f32 1e-05, %v4749_v22  ;;  %v4837_v12 = vadd.f32 %v9167_v43, %v4815_v17 }
 0xe43   : > { %v4714_v30 = vpop.xlane.xlu0 %4713  ;;  %v4717_v36 = vpop.xlane.xlu1 %4716 }
 0xe44   : > { %7280 = vrsqrt.f32 %v4764_v63  ;;  %v4750_v13 = vmul.f32 0.03125, %v4714_v30  ;;  %v4751_v34 = vmul.f32 0.03125, %v4717_v36  ;;  %6720 = vmatprep.mubr.msk.f32.mxu0 %vm546_vm1, %v4837_v12 }
 0xe45   : > { %7282 = vrsqrt.f32 %v4765_v60  ;;  %6721 = vmatmul.mubr.msk.f32.vlgmr.msra.gmra.mrb[82].mxu0 %vm546_vm1, %v4838_v62 }
 0xe46   : > { %v4766_v18 = vadd.f32 1e-05, %v4750_v13  ;;  %v4767_v23 = vadd.f32 1e-05, %v4751_v34 }
 0xe47   : > { %v4720_v53 = vpop.xlane.xlu0 %4719  ;;  %v4723_v59 = vpop.xlane.xlu1 %4722 }
 0xe48   : > { %7284 = vrsqrt.f32 %v4766_v18  ;;  %v4752_v37 = vmul.f32 0.03125, %v4720_v53  ;;  %v4753_v29 = vmul.f32 0.03125, %v4723_v59 }
 0xe49   : > { %7286 = vrsqrt.f32 %v4767_v23 }
 0xe4a   : > { %v7279_v38 = vpop.eup %7278  ;;  %v4768_v10 = vadd.f32 1e-05, %v4752_v37  ;;  %v4769_v2 = vadd.f32 1e-05, %v4753_v29 }
 0xe4b   : > { %v4726_v52 = vpop.xlane.xlu0 %4725  ;;  %v4729_v61 = vpop.xlane.xlu1 %4728  ;;  %v4795_v21 = vmul.f32 %v7279_v38, %v9073_v33 }
 0xe4c   : > { %7288 = vrsqrt.f32 %v4768_v10  ;;  %v4754_v16 = vmul.f32 0.03125, %v4726_v52  ;;  %v4755_v3 = vmul.f32 0.03125, %v4729_v61 }
 0xe4d   : > { %7290 = vrsqrt.f32 %v4769_v2  ;;  %v4817_v57 = vmul.f32 %v9160_v19, %v4795_v21 }
 0xe4e   : > { %v7281_v4 = vpop.eup %7280  ;;  %v4770_v40 = vadd.f32 1e-05, %v4754_v16  ;;  %v4771_v50 = vadd.f32 1e-05, %v4755_v3 }
 0xe4f   : > { %v7283_v11 = vpop.eup %7282  ;;  %v4732_v58 = vpop.xlane.xlu0 %4731  ;;  %v4839_v17 = vadd.f32 %v9167_v43, %v4817_v57  ;;  %v4796_v63 = vmul.f32 %v7281_v4, %v9078_v9 }
 0xe50   : > { %v4735_v22 = vpop.xlane.xlu1 %4734  ;;  %7292 = vrsqrt.f32 %v4770_v40  ;;  %v4756_v60 = vmul.f32 0.03125, %v4732_v58  ;;  %v4797_v33 = vmul.f32 %v7283_v11, %v9081_v20 }
 0xe51   : > { %v4757_v12 = vmul.f32 0.03125, %v4735_v22  ;;  %7294 = vrsqrt.f32 %v4771_v50  ;;  %6723 = vmatprep.mubr.msk.f32.mxu0 %vm546_vm1, %v4839_v17  ;;  %v4818_v62 = vmul.f32 %v9160_v19, %v4796_v63 }
 0xe52   : > { %v7285_v30 = vpop.eup %7284  ;;  %v4772_v36 = vadd.f32 1e-05, %v4756_v60  ;;  %v4819_v34 = vmul.f32 %v9160_v19, %v4797_v33 }
 0xe53   : > { %v4773_v13 = vadd.f32 1e-05, %v4757_v12  ;;  %v7287_v18 = vpop.eup %7286  ;;  %v4738_v23 = vpop.xlane.xlu0 %4737  ;;  %v4840_v9 = vadd.f32 %v9167_v43, %v4818_v62  ;;  %v4798_v59 = vmul.f32 %v7285_v30, %v9089_v8 }
 0xe54   : > { %v4741_v53 = vpop.xlane.xlu1 %4740  ;;  %7296 = vrsqrt.f32 %v4772_v36  ;;  %v4758_v37 = vmul.f32 0.03125, %v4738_v23  ;;  %v4841_v29 = vadd.f32 %v9167_v43, %v4819_v34  ;;  %v4799_v10 = vmul.f32 %v7287_v18, %v9092_v49 }
 0xe55   : > { %v4759_v20 = vmul.f32 0.03125, %v4741_v53  ;;  %7298 = vrsqrt.f32 %v4773_v13  ;;  %6724 = vmatmul.mubr.msk.f32.gmra.mrb[84].mxu0 %vm546_vm1, %v4840_v9  ;;  %v4820_v38 = vmul.f32 %v9160_v19, %v4798_v59 }
 0xe56   : > { %v7289_v2 = vpop.eup %7288  ;;  %v4774_v52 = vadd.f32 1e-05, %v4758_v37  ;;  %6726 = vmatprep.mubr.msk.f32.mxu0 %vm546_vm1, %v4841_v29  ;;  %v4821_v3 = vmul.f32 %v9160_v19, %v4799_v10 }
 0xe57   : > { %v4775_v61 = vadd.f32 1e-05, %v4759_v20  ;;  %v7291_v21 = vpop.eup %7290  ;;  %v4744_v16 = vpop.xlane.xlu0 %4743  ;;  %v4842_v8 = vadd.f32 %v9167_v43, %v4820_v38  ;;  %v4800_v57 = vmul.f32 %v7289_v2, %v9101_v31 }
 0xe58   : > { %7300 = vrsqrt.f32 %v4774_v52  ;;  %v4760_v4 = vmul.f32 0.03125, %v4744_v16  ;;  %v4801_v40 = vmul.f32 %v7291_v21, %v9104_v55  ;;  %v4843_v49 = vadd.f32 %v9167_v43, %v4821_v3  ;;  %v5110_v52 = vld [vmem:[#allocation8 + $0x50] sm:$0xff] }
 0xe59   : > { %7302 = vrsqrt.f32 %v4775_v61  ;;  %6727 = vmatmul.mubr.msk.f32.gmra.mrb[86].mxu0 %vm546_vm1, %v4842_v8  ;;  %v4822_v50 = vmul.f32 %v9160_v19, %v4800_v57  ;;  %v5111_v61 = vld [vmem:[#allocation8 + $0x58] sm:$0xff] }
 0xe5a   : > { %v7293_v11 = vpop.eup %7292  ;;  %v4776_v58 = vadd.f32 1e-05, %v4760_v4  ;;  %v4823_v22 = vmul.f32 %v9160_v19, %v4801_v40  ;;  %6729 = vmatprep.mubr.msk.f32.mxu0 %vm546_vm1, %v4843_v49  ;;  %v6921_v21 = vpack.c.bf16 %v5111_v61, %v5110_v52 }
 0xe5b   : > { %v7295_v17 = vpop.eup %7294  ;;  %v4844_v31 = vadd.f32 %v9167_v43, %v4822_v50  ;;  %v4802_v63 = vmul.f32 %v7293_v11, %v9113_v6 }
 0xe5c   : > { %7304 = vrsqrt.f32 %v4776_v58  ;;  %v4845_v55 = vadd.f32 %v9167_v43, %v4823_v22  ;;  %v4803_v60 = vmul.f32 %v7295_v17, %v9116_v14  ;;  %6922 = vmatprep.subr.bf16.mxu1 %v6921_v21 }
 0xe5d   : > { %6730 = vmatmul.mubr.msk.f32.gmra.mrb[88].mxu0 %vm546_vm1, %v4844_v31  ;;  %v4824_v12 = vmul.f32 %v9160_v19, %v4802_v63  ;;  %6924 = vmatpush3.bf16.msra.mxu1 %v6921_v21 }
 0xe5e   : > { %v7297_v33 = vpop.eup %7296  ;;  %6732 = vmatprep.mubr.msk.f32.mxu0 %vm546_vm1, %v4845_v55  ;;  %v4825_v62 = vmul.f32 %v9160_v19, %v4803_v60 }
 0xe5f   : > { %v7299_v30 = vpop.eup %7298  ;;  %v4846_v36 = vadd.f32 %v9167_v43, %v4824_v12  ;;  %v4804_v13 = vmul.f32 %v7297_v33, %v9125_v28 }
 0xe60   : > { %v4847_v6 = vadd.f32 %v9167_v43, %v4825_v62  ;;  %v4805_v34 = vmul.f32 %v7299_v30, %v9128_v47 }
 0xe61   : > { %6733 = vmatmul.mubr.msk.f32.gmra.mrb[90].mxu0 %vm546_vm1, %v4846_v36  ;;  %v4826_v14 = vmul.f32 %v9160_v19, %v4804_v13 }
 0xe62   : > { %v7301_v18 = vpop.eup %7300  ;;  %6735 = vmatprep.mubr.msk.f32.mxu0 %vm546_vm1, %v4847_v6  ;;  %v4827_v23 = vmul.f32 %v9160_v19, %v4805_v34 }
 0xe63   : > { %v7303_v53 = vpop.eup %7302  ;;  %v4848_v9 = vadd.f32 %v9167_v43, %v4826_v14  ;;  %v4806_v59 = vmul.f32 %v7301_v18, %v9137_v46 }
 0xe64   : > { %v4849_v28 = vadd.f32 %v9167_v43, %v4827_v23  ;;  %v4807_v37 = vmul.f32 %v7303_v53, %v9140_v32 }
 0xe65   : > { %6736 = vmatmul.mubr.msk.f32.gmra.mrb[92].mxu0 %vm546_vm1, %v4848_v9  ;;  %v4828_v47 = vmul.f32 %v9160_v19, %v4806_v59 }
 0xe66   : > { %v7305_v20 = vpop.eup %7304  ;;  %6738 = vmatprep.mubr.msk.f32.mxu0 %vm546_vm1, %v4849_v28  ;;  %v4829_v29 = vmul.f32 %v9160_v19, %v4807_v37 }
 0xe67   : > { %v4850_v38 = vadd.f32 %v9167_v43, %v4828_v47  ;;  %v4808_v10 = vmul.f32 %v7305_v20, %v9149_v39  ;;  %v9236_v39 = vld [vmem:[%s9423_s7 + $0x2] ss:$0 sm:$0xff] }
 0xe68   : > { %v4851_v2 = vadd.f32 %v9167_v43, %v4829_v29 }
 0xe69   : > { %6739 = vmatmul.mubr.msk.f32.gmra.mrb[94].mxu0 %vm546_vm1, %v4850_v38  ;;  %v4830_v46 = vmul.f32 %v9160_v19, %v4808_v10 }
 0xe6a   : > { %6741 = vmatprep.mubr.msk.f32.mxu0 %vm546_vm1, %v4851_v2 }
 0xe6b   : > { %v4852_v32 = vadd.f32 %v9167_v43, %v4830_v46 }
 0xe6d   : > { %6742 = vmatmul.mubr.msk.f32.gmra.mrb[96].mxu0 %vm546_vm1, %v4852_v32 }
 0xe6e   : > { %6784 = vmatprep.mubr.msk.f32.mxu0 %vm7503_vm0, %v7504_v1 }
 0xf18   : > { %v6722_v19 = vpop.f32.mrb[82].mxu0 }
 0xf19   : > { %v4986_v16 = vadd.f32 %v6722_v19, %v9236_v39  ;;  %v4980_v8 = vpop.f32.mrb[83].mxu0 }
 0xf1a   : > { %v4981_v43 = vadd.f32 %v9236_v39, %v4980_v8 }
 0xf1b   : > { %v5076_v3 = vmul.f32 0.01, %v4986_v16  ;;  %vm5060_vm9 = vcmp.ge.f32.partialorder %v4986_v16, 0.0 }
 0xf1c   : > { %vm5059_vm12 = vcmp.ge.f32.partialorder %v4981_v43, 0.0  ;;  %v5075_v1 = vmul.f32 0.01, %v4981_v43 }
 0xf1d   : > { %v5092_v4 = vsel %vm5060_vm9, %v4986_v16, %v5076_v3 }
 0xf1e   : > { %v5091_v57 = vsel %vm5059_vm12, %v4981_v43, %v5075_v1 }
 0xf1f   : > { %6752 = vmatprep.mubr.msk.f32.mxu1 %vm546_vm1, %v5091_v57 }
 0xf20   : > { %6753 = vmatmul.mubr.msk.f32.vlgmr.msra.gmra.mrb[84].mxu1 %vm546_vm1, %v5092_v4 }
 0xf28   : > { %v6725_v40 = vpop.f32.mrb[84].mxu0 }
 0xf29   : > { %v4996_v49 = vadd.f32 %v6725_v40, %v9236_v39  ;;  %v4990_v50 = vpop.f32.mrb[85].mxu0 }
 0xf2a   : > { %v4991_v11 = vadd.f32 %v9236_v39, %v4990_v50 }
 0xf2b   : > { %v5078_v58 = vmul.f32 0.01, %v4996_v49  ;;  %vm5062_vm0 = vcmp.ge.f32.partialorder %v4996_v49, 0.0 }
 0xf2c   : > { %vm5061_vm13 = vcmp.ge.f32.partialorder %v4991_v11, 0.0  ;;  %v5077_v22 = vmul.f32 0.01, %v4991_v11  ;;  %v6728_v17 = vpop.f32.mrb[86].mxu0 }
 0xf2d   : > { %v5006_v31 = vadd.f32 %v6728_v17, %v9236_v39  ;;  %v5000_v63 = vpop.f32.mrb[87].mxu0  ;;  %v5094_v33 = vsel %vm5062_vm0, %v4996_v49, %v5078_v58 }
 0xf2e   : > { %v5001_v55 = vadd.f32 %v9236_v39, %v5000_v63  ;;  %v5093_v60 = vsel %vm5061_vm13, %v4991_v11, %v5077_v22 }
 0xf2f   : > { %v5080_v12 = vmul.f32 0.01, %v5006_v31  ;;  %6755 = vmatprep.mubr.msk.f32.mxu1 %vm546_vm1, %v5093_v60  ;;  %vm5064_vm14 = vcmp.ge.f32.partialorder %v5006_v31, 0.0 }
 0xf30   : > { %vm5063_vm15 = vcmp.ge.f32.partialorder %v5001_v55, 0.0  ;;  %v5079_v62 = vmul.f32 0.01, %v5001_v55  ;;  %v6731_v30 = vpop.f32.mrb[88].mxu0  ;;  %6756 = vmatmul.mubr.msk.f32.gmra.mrb[86].mxu1 %vm546_vm1, %v5094_v33 }
 0xf31   : > { %v5016_v36 = vadd.f32 %v6731_v30, %v9236_v39  ;;  %v5010_v13 = vpop.f32.mrb[89].mxu0  ;;  %v5096_v18 = vsel %vm5064_vm14, %v5006_v31, %v5080_v12 }
 0xf32   : > { %v5011_v6 = vadd.f32 %v9236_v39, %v5010_v13  ;;  %v5095_v34 = vsel %vm5063_vm15, %v5001_v55, %v5079_v62 }
 0xf33   : > { %v5082_v14 = vmul.f32 0.01, %v5016_v36  ;;  %6758 = vmatprep.mubr.msk.f32.mxu1 %vm546_vm1, %v5095_v34  ;;  %vm5066_vm10 = vcmp.ge.f32.partialorder %v5016_v36, 0.0 }
 0xf34   : > { %vm5065_vm11 = vcmp.ge.f32.partialorder %v5011_v6, 0.0  ;;  %v5081_v23 = vmul.f32 0.01, %v5011_v6  ;;  %v6734_v53 = vpop.f32.mrb[90].mxu0  ;;  %6759 = vmatmul.mubr.msk.f32.gmra.mrb[88].mxu1 %vm546_vm1, %v5096_v18 }
 0xf35   : > { %v5026_v9 = vadd.f32 %v6734_v53, %v9236_v39  ;;  %v5020_v59 = vpop.f32.mrb[91].mxu0  ;;  %v5098_v20 = vsel %vm5066_vm10, %v5016_v36, %v5082_v14 }
 0xf36   : > { %v5021_v28 = vadd.f32 %v9236_v39, %v5020_v59  ;;  %v5097_v37 = vsel %vm5065_vm11, %v5011_v6, %v5081_v23 }
 0xf37   : > { %v5084_v47 = vmul.f32 0.01, %v5026_v9  ;;  %6761 = vmatprep.mubr.msk.f32.mxu1 %vm546_vm1, %v5097_v37  ;;  %vm5068_vm9 = vcmp.ge.f32.partialorder %v5026_v9, 0.0 }
 0xf38   : > { %vm5067_vm12 = vcmp.ge.f32.partialorder %v5021_v28, 0.0  ;;  %v5083_v29 = vmul.f32 0.01, %v5021_v28  ;;  %v6737_v38 = vpop.f32.mrb[92].mxu0  ;;  %6762 = vmatmul.mubr.msk.f32.gmra.mrb[90].mxu1 %vm546_vm1, %v5098_v20 }
 0xf39   : > { %v5036_v10 = vadd.f32 %v6737_v38, %v9236_v39  ;;  %v5030_v2 = vpop.f32.mrb[93].mxu0  ;;  %v5100_v61 = vsel %vm5068_vm9, %v5026_v9, %v5084_v47 }
 0xf3a   : > { %v5031_v46 = vadd.f32 %v9236_v39, %v5030_v2  ;;  %v5099_v32 = vsel %vm5067_vm12, %v5021_v28, %v5083_v29 }
 0xf3b   : > { %v5086_v52 = vmul.f32 0.01, %v5036_v10  ;;  %6764 = vmatprep.mubr.msk.f32.mxu1 %vm546_vm1, %v5099_v32  ;;  %vm5070_vm0 = vcmp.ge.f32.partialorder %v5036_v10, 0.0 }
 0xf3c   : > { %vm5069_vm13 = vcmp.ge.f32.partialorder %v5031_v46, 0.0  ;;  %v5085_v21 = vmul.f32 0.01, %v5031_v46  ;;  %v6740_v19 = vpop.f32.mrb[94].mxu0  ;;  %6765 = vmatmul.mubr.msk.f32.gmra.mrb[92].mxu1 %vm546_vm1, %v5100_v61 }
 0xf3d   : > { %v5046_v16 = vadd.f32 %v6740_v19, %v9236_v39  ;;  %v5040_v8 = vpop.f32.mrb[95].mxu0  ;;  %v5102_v57 = vsel %vm5070_vm0, %v5036_v10, %v5086_v52 }
 0xf3e   : > { %v5041_v43 = vadd.f32 %v9236_v39, %v5040_v8  ;;  %v5101_v3 = vsel %vm5069_vm13, %v5031_v46, %v5085_v21 }
 0xf3f   : > { %v5088_v1 = vmul.f32 0.01, %v5046_v16  ;;  %6767 = vmatprep.mubr.msk.f32.mxu1 %vm546_vm1, %v5101_v3  ;;  %vm5072_vm14 = vcmp.ge.f32.partialorder %v5046_v16, 0.0 }
 0xf40   : > { %vm5071_vm15 = vcmp.ge.f32.partialorder %v5041_v43, 0.0  ;;  %v5087_v4 = vmul.f32 0.01, %v5041_v43  ;;  %v6743_v40 = vpop.f32.mrb[96].mxu0  ;;  %6768 = vmatmul.mubr.msk.f32.gmra.mrb[94].mxu1 %vm546_vm1, %v5102_v57 }
 0xf41   : > { %v5056_v49 = vadd.f32 %v6743_v40, %v9236_v39  ;;  %v5050_v50 = vpop.f32.mrb[97].mxu0  ;;  %v5104_v17 = vsel %vm5072_vm14, %v5046_v16, %v5088_v1 }
 0xf42   : > { %v5051_v11 = vadd.f32 %v9236_v39, %v5050_v50  ;;  %v5103_v58 = vsel %vm5071_vm15, %v5041_v43, %v5087_v4  ;;  %v9273_v39 = vld [vmem:[%s9425_s9 + $0x2] ss:$0 sm:$0xff] }
 0xf43   : > { %v5090_v22 = vmul.f32 0.01, %v5056_v49  ;;  %6770 = vmatprep.mubr.msk.f32.mxu1 %vm546_vm1, %v5103_v58  ;;  %vm5074_vm10 = vcmp.ge.f32.partialorder %v5056_v49, 0.0 }
 0xf44   : > { %vm5073_vm11 = vcmp.ge.f32.partialorder %v5051_v11, 0.0  ;;  %v5089_v31 = vmul.f32 0.01, %v5051_v11  ;;  %6771 = vmatmul.mubr.msk.f32.gmra.mrb[96].mxu1 %vm546_vm1, %v5104_v17 }
 0xf45   : > { %v5106_v55 = vsel %vm5074_vm10, %v5056_v49, %v5090_v22 }
 0xf46   : > { %v5105_v63 = vsel %vm5073_vm11, %v5051_v11, %v5089_v31 }
 0xf47   : > { %6773 = vmatprep.mubr.msk.f32.mxu1 %vm546_vm1, %v5105_v63 }
 0xf48   : > { %6774 = vmatmul.mubr.msk.f32.gmra.mrb[98].mxu1 %vm546_vm1, %v5106_v55 }
 0xff3   : > { %v6754_v60 = vpop.f32.mrb[84].mxu1 }
 0xff4   : > { %v5240_v12 = vadd.f32 %v6754_v60, %v9273_v39  ;;  %v5234_v33 = vpop.f32.mrb[85].mxu1 }
 0xff5   : > { %v5235_v62 = vadd.f32 %v9273_v39, %v5234_v33 }
 0xff6   : > { %v5314_v30 = vadd.f32 %v5240_v12, %v8981_v41 }
 0xff7   : > { %v5313_v36 = vadd.f32 %v5235_v62, %v8984_v35 }
 0xff8   : > { %v5330_v13 = vsel %vm546_vm1, %v5314_v30, -inf }
 0xff9   : > { %v5329_v6 = vsel %vm546_vm1, %v5313_v36, -inf }
 0xffa   : > { %v5331_v34 = vmax.f32 %v5329_v6, %v5330_v13 }
 0xffc   : > { %v5332_v50 = vrot.slane %v5331_v34, 4 }
 0xffe   : > { %v5333_v33 = vmax.f32 %v5331_v34, %v5332_v50 }
0x1003   : > { %v6757_v14 = vpop.f32.mrb[86].mxu1 }
0x1004   : > { %v5250_v18 = vadd.f32 %v6757_v14, %v9273_v39  ;;  %v5244_v23 = vpop.f32.mrb[87].mxu1 }
0x1005   : > { %v5245_v53 = vadd.f32 %v9273_v39, %v5244_v23 }
0x1006   : > { %v5316_v9 = vadd.f32 %v5250_v18, %v8994_v45 }
0x1007   : > { %v5315_v59 = vadd.f32 %v5245_v53, %v8991_v27  ;;  %v6760_v28 = vpop.f32.mrb[88].mxu1 }
0x1008   : > { %v5339_v41 = vsel %vm546_vm1, %v5316_v9, -inf  ;;  %v5260_v35 = vadd.f32 %v6760_v28, %v9273_v39  ;;  %v5254_v37 = vpop.f32.mrb[89].mxu1  ;;  %v5334_v28 = vrot.slane %v5333_v33, 2 }
0x1009   : > { %v5338_v47 = vsel %vm546_vm1, %v5315_v59, -inf  ;;  %v5255_v20 = vadd.f32 %v9273_v39, %v5254_v37 }
0x100a   : > { %v5340_v29 = vmax.f32 %v5338_v47, %v5339_v41  ;;  %v5318_v38 = vadd.f32 %v5260_v35, %v9002_v7 }
0x100b   : > { %v5317_v10 = vadd.f32 %v5255_v20, %v8999_v48  ;;  %v6763_v2 = vpop.f32.mrb[90].mxu1 }
0x100c   : > { %v5348_v45 = vsel %vm546_vm1, %v5318_v38, -inf  ;;  %v5270_v27 = vadd.f32 %v6763_v2, %v9273_v39  ;;  %v5264_v46 = vpop.f32.mrb[91].mxu1  ;;  %v5341_v1 = vrot.slane %v5340_v29, 4 }
0x100d   : > { %v5347_v32 = vsel %vm546_vm1, %v5317_v10, -inf  ;;  %v5265_v52 = vadd.f32 %v9273_v39, %v5264_v46 }
0x100e   : > { %v5349_v61 = vmax.f32 %v5347_v32, %v5348_v45  ;;  %v5320_v21 = vadd.f32 %v5270_v27, %v9012_v42  ;;  %v5342_v63 = vmax.f32 %v5340_v29, %v5341_v1  ;;  %v5335_v32 = vmax.f32 %v5333_v33, %v5334_v28 }
0x100f   : > { %v5319_v19 = vadd.f32 %v5265_v52, %v9009_v26  ;;  %v6766_v16 = vpop.f32.mrb[92].mxu1 }
0x1010   : > { %v5357_v7 = vsel %vm546_vm1, %v5320_v21, -inf  ;;  %v5280_v48 = vadd.f32 %v6766_v16, %v9273_v39  ;;  %v5274_v8 = vpop.f32.mrb[93].mxu1  ;;  %v5350_v40 = vrot.slane %v5349_v61, 4  ;;  %v5343_v23 = vrot.slane %v5342_v63, 2 }
0x1011   : > { %v5356_v43 = vsel %vm546_vm1, %v5319_v19, -inf  ;;  %v5275_v3 = vadd.f32 %v9273_v39, %v5274_v8  ;;  %v5336_v1 = vrot.slane %v5335_v32, 1 }
0x1012   : > { %v5358_v57 = vmax.f32 %v5356_v43, %v5357_v7  ;;  %v5322_v4 = vadd.f32 %v5280_v48, %v9022_v25  ;;  %v5351_v60 = vmax.f32 %v5349_v61, %v5350_v40  ;;  %v5344_v2 = vmax.f32 %v5342_v63, %v5343_v23 }
0x1013   : > { %v5321_v49 = vadd.f32 %v5275_v3, %v9019_v24  ;;  %v6769_v42 = vpop.f32.mrb[94].mxu1 }
0x1014   : > { %v5359_v26 = vrot.slane %v5358_v57, 4  ;;  %v5366_v11 = vsel %vm546_vm1, %v5322_v4, -inf  ;;  %v5284_v58 = vpop.f32.mrb[95].mxu1  ;;  %v5290_v17 = vadd.f32 %v6769_v42, %v9273_v39  ;;  %v5352_v59 = vrot.slane %v5351_v60, 2 }
0x1015   : > { %v5365_v22 = vsel %vm546_vm1, %v5321_v49, -inf  ;;  %v5285_v31 = vadd.f32 %v9273_v39, %v5284_v58  ;;  %v5345_v48 = vrot.slane %v5344_v2, 1 }
0x1016   : > { %v5367_v55 = vmax.f32 %v5365_v22, %v5366_v11  ;;  %v5324_v25 = vadd.f32 %v5290_v17, %v9032_v5  ;;  %v5360_v62 = vmax.f32 %v5358_v57, %v5359_v26  ;;  %v5337_v11 = vmax.f32 %v5335_v32, %v5336_v1 }
0x1017   : > { %v5323_v12 = vadd.f32 %v5285_v31, %v9029_v54  ;;  %v6772_v24 = vpop.f32.mrb[96].mxu1 }
0x1018   : > { %v5368_v30 = vrot.slane %v5367_v55, 4  ;;  %v5294_v36 = vpop.f32.mrb[97].mxu1  ;;  %v5375_v13 = vsel %vm546_vm1, %v5324_v25, -inf  ;;  %v5300_v14 = vadd.f32 %v6772_v24, %v9273_v39  ;;  %v5361_v41 = vrot.slane %v5360_v62, 2 }
0x1019   : > { %v5374_v6 = vsel %vm546_vm1, %v5323_v12, -inf  ;;  %v5295_v18 = vadd.f32 %v9273_v39, %v5294_v36 }
0x101a   : > { %v5369_v53 = vmax.f32 %v5367_v55, %v5368_v30  ;;  %v5376_v9 = vmax.f32 %v5374_v6, %v5375_v13  ;;  %v5326_v5 = vadd.f32 %v5300_v14, %v9042_v44  ;;  %v5353_v44 = vmax.f32 %v5351_v60, %v5352_v59 }
0x101b   : > { %v5325_v54 = vadd.f32 %v5295_v18, %v9039_v56  ;;  %v6775_v34 = vpop.f32.mrb[98].mxu1  ;;  %v5362_v52 = vmax.f32 %v5360_v62, %v5361_v41 }
0x101c   : > { %v5377_v35 = vrot.slane %v5376_v9, 4  ;;  %v5310_v37 = vadd.f32 %v6775_v34, %v9273_v39  ;;  %v5304_v47 = vpop.f32.mrb[99].mxu1  ;;  %v5370_v20 = vrot.slane %v5369_v53, 2  ;;  %v5384_v29 = vsel %vm546_vm1, %v5326_v5, -inf }
0x101d   : > { %v5383_v38 = vsel %vm546_vm1, %v5325_v54, -inf  ;;  %v5305_v10 = vadd.f32 %v9273_v39, %v5304_v47  ;;  %v5354_v3 = vrot.slane %v5353_v44, 1  ;;  %v5363_v57 = vrot.slane %v5362_v52, 1 }
0x101e   : > { %v5378_v45 = vmax.f32 %v5376_v9, %v5377_v35  ;;  %v5385_v27 = vmax.f32 %v5383_v38, %v5384_v29  ;;  %v5328_v56 = vadd.f32 %v5310_v37, %v9052_v15  ;;  %v5371_v19 = vmax.f32 %v5369_v53, %v5370_v20 }
0x101f   : > { %v5327_v46 = vadd.f32 %v5305_v10, %v9049_v51  ;;  %v5346_v51 = vmax.f32 %v5344_v2, %v5345_v48  ;;  %v5355_v26 = vmax.f32 %v5353_v44, %v5354_v3  ;;  %v5364_v58 = vmax.f32 %v5362_v52, %v5363_v57 }
0x1020   : > { %v5379_v61 = vrot.slane %v5378_v45, 2  ;;  %v5386_v21 = vrot.slane %v5385_v27, 4  ;;  %v5393_v16 = vsel %vm546_vm1, %v5328_v56, -inf  ;;  %v5372_v40 = vrot.slane %v5371_v19, 1 }
0x1021   : > { %v5392_v7 = vsel %vm546_vm1, %v5327_v46, -inf  ;;  %v5411_v63 = vsel %vm631_vm2, %v5346_v51, %v5337_v11 }
0x1022   : > { %v5380_v8 = vmax.f32 %v5378_v45, %v5379_v61  ;;  %v5387_v39 = vmax.f32 %v5385_v27, %v5386_v21  ;;  %v5394_v43 = vmax.f32 %v5392_v7, %v5393_v16  ;;  %v5373_v31 = vmax.f32 %v5371_v19, %v5372_v40 }
0x1023   : > { %v5412_v12 = vsel %vm633_vm3, %v5355_v26, %v5411_v63  ;;  %v6054_v63 = vld [vmem:[%s9426_s10] ss:$0 sm:$0xff] }
0x1024   : > { %v5388_v4 = vrot.slane %v5387_v39, 2  ;;  %v5395_v15 = vrot.slane %v5394_v43, 4  ;;  %v5381_v49 = vrot.slane %v5380_v8, 1  ;;  %v5413_v33 = vsel %vm635_vm4, %v5364_v58, %v5412_v12 }
0x1025   : > { %v5414_v62 = vsel %vm637_vm5, %v5373_v31, %v5413_v33 }
0x1026   : > { %v5389_v42 = vmax.f32 %v5387_v39, %v5388_v4  ;;  %v5396_v50 = vmax.f32 %v5394_v43, %v5395_v15  ;;  %v5382_v55 = vmax.f32 %v5380_v8, %v5381_v49  ;;  %v5537_v49 = vld [vmem:[%s9428_s12 + $0x8] sm:$0xff] }
0x1028   : > { %v5397_v22 = vrot.slane %v5396_v50, 2  ;;  %v5390_v17 = vrot.slane %v5389_v42, 1  ;;  %v5415_v36 = vsel %vm639_vm6, %v5382_v55, %v5414_v62 }
0x102a   : > { %v5398_v60 = vmax.f32 %v5396_v50, %v5397_v22  ;;  %v5391_v25 = vmax.f32 %v5389_v42, %v5390_v17  ;;  %v5538_v42 = vld [vmem:[%s9428_s12 + $0x10] sm:$0xff] }
0x102c   : > { %v5399_v24 = vrot.slane %v5398_v60, 1  ;;  %v5416_v13 = vsel %vm641_vm7, %v5391_v25, %v5415_v36 }
0x102e   : > { %v5400_v30 = vmax.f32 %v5398_v60, %v5399_v24 }
0x1030   : > { %v5417_v6 = vsel %vm643_vm8, %v5400_v30, %v5416_v13 }
0x1031   : > { %v5419_v14 = vsel %vm546_vm1, %v5417_v6, 0.0 }
0x1032   : > { %5420 = vadd.xlane.f32.xlu1 %v5419_v14 }
0x10bf   : > { %v5421_v18 = vpop.xlane.xlu1 %5420 }
0x10c0   : > { %v5422_v23 = vmul.f32 0.03125, %v5421_v18 }
0x10c2   : > { %v5424_v53 = vrot.slane %v5422_v23, 1  ;;  %v5425_v9 = vrot.slane %v5422_v23, 2  ;;  %v5426_v59 = vrot.slane %v5422_v23, 3  ;;  %v5427_v5 = vrot.slane %v5422_v23, 4 }
0x10c3   : > { %v5428_v54 = vrot.slane %v5422_v23, 5  ;;  %v5429_v34 = vrot.slane %v5422_v23, 6  ;;  %v5430_v28 = vrot.slane %v5422_v23, 7  ;;  %v5439_v41 = vsub.f32 %v5337_v11, %v5422_v23 }
0x10c4   : > { %v5440_v35 = vsub.f32 %v5346_v51, %v5424_v53  ;;  %v5441_v37 = vsub.f32 %v5355_v26, %v5425_v9  ;;  %v5442_v47 = vsub.f32 %v5364_v58, %v5426_v59  ;;  %v5443_v20 = vsub.f32 %v5373_v31, %v5427_v5  ;;  %v5536_v51 = vld [vmem:[%s9428_s12] sm:$0xff]  ;;  %v5539_v26 = vld [vmem:[%s9428_s12 + $0x18] sm:$0xff] }
0x10c5   : > { %v5444_v29 = vsub.f32 %v5382_v55, %v5428_v54  ;;  %v5445_v38 = vsub.f32 %v5391_v25, %v5429_v34  ;;  %v5446_v10 = vsub.f32 %v5400_v30, %v5430_v28  ;;  %v5447_v56 = vmul.f32 %v5439_v41, %v5439_v41  ;;  %v6055_v34 = vld [vmem:[%s9427_s11] ss:$0 sm:$0xff] }
0x10c6   : > { %v5448_v2 = vmul.f32 %v5440_v35, %v5440_v35  ;;  %v5449_v45 = vmul.f32 %v5441_v37, %v5441_v37  ;;  %v5450_v27 = vmul.f32 %v5442_v47, %v5442_v47  ;;  %v5451_v44 = vmul.f32 %v5443_v20, %v5443_v20 }
0x10c7   : > { %v5452_v46 = vmul.f32 %v5444_v29, %v5444_v29  ;;  %v5453_v61 = vmul.f32 %v5445_v38, %v5445_v38  ;;  %v5454_v21 = vmul.f32 %v5446_v10, %v5446_v10  ;;  %v6926_v50 = vpack.c.bf16 %v5537_v49, %v5536_v51 }
0x10c8   : > { %v5463_v32 = vrot.slane %v5448_v2, 7  ;;  %v5465_v52 = vrot.slane %v5449_v45, 6  ;;  %v5467_v16 = vrot.slane %v5450_v27, 5  ;;  %v5469_v48 = vrot.slane %v5451_v44, 4 }
0x10c9   : > { %v5471_v39 = vrot.slane %v5452_v46, 3  ;;  %v5473_v3 = vrot.slane %v5453_v61, 2  ;;  %v5475_v57 = vrot.slane %v5454_v21, 1  ;;  %6927 = vmatpush3.bf16.msra.mxu0 %v6926_v50  ;;  %v6929_v11 = vpack.c.bf16 %v5539_v26, %v5538_v42 }
0x10ca   : > { %v5464_v19 = vsel %vm631_vm2, %v5463_v32, %v5447_v56  ;;  %6928 = vmatprep.subr.bf16.mxu0 %v7502_v0 }
0x10cb   : > { %v5466_v7 = vsel %vm633_vm3, %v5465_v52, %v5464_v19 }
0x10cc   : > { %v5468_v8 = vsel %vm635_vm4, %v5467_v16, %v5466_v7 }
0x10cd   : > { %v5470_v43 = vsel %vm637_vm5, %v5469_v48, %v5468_v8  ;;  %6930 = vmatpush3.bf16.msra.mxu0 %v6929_v11 }
0x10ce   : > { %v5472_v1 = vsel %vm639_vm6, %v5471_v39, %v5470_v43  ;;  %v6056_v43 = vld [vmem:[%s9467_s29] ss:$0 sm:$0xff] }
0x10cf   : > { %v5474_v4 = vsel %vm641_vm7, %v5473_v3, %v5472_v1 }
0x10d0   : > { %v5476_v15 = vsel %vm643_vm8, %v5475_v57, %v5474_v4 }
0x10d1   : > { %v5478_v40 = vsel %vm546_vm1, %v5476_v15, 0.0 }
0x10d2   : > { %5479 = vadd.xlane.f32.xlu0 %v5478_v40 }
0x115f   : > { %v5480_v58 = vpop.xlane.xlu0 %5479 }
0x1160   : > { %v5481_v22 = vmul.f32 0.03125, %v5480_v58 }
0x1162   : > { %v5482_v17 = vadd.f32 1e-05, %v5481_v22 }
0x1164   : > { %7306 = vrsqrt.f32 %v5482_v17 }
0x116e   : > { %v7307_v31 = vpop.eup %7306 }
0x116f   : > { %v5485_v55 = vrot.slane %v7307_v31, 1  ;;  %v5486_v60 = vrot.slane %v7307_v31, 2  ;;  %v5487_v25 = vrot.slane %v7307_v31, 3  ;;  %v5488_v12 = vrot.slane %v7307_v31, 4 }
0x1170   : > { %v5489_v24 = vrot.slane %v7307_v31, 5  ;;  %v5490_v33 = vrot.slane %v7307_v31, 6  ;;  %v5491_v62 = vrot.slane %v7307_v31, 7  ;;  %v5500_v30 = vmul.f32 %v7307_v31, %v5439_v41 }
0x1171   : > { %v5501_v36 = vmul.f32 %v5485_v55, %v5440_v35  ;;  %v5502_v0 = vmul.f32 %v5486_v60, %v5441_v37  ;;  %v5503_v13 = vmul.f32 %v5487_v25, %v5442_v47  ;;  %v5504_v6 = vmul.f32 %v5488_v12, %v5443_v20 }
0x1172   : > { %v5505_v14 = vmul.f32 %v5489_v24, %v5444_v29  ;;  %v5506_v18 = vmul.f32 %v5490_v33, %v5445_v38  ;;  %v5507_v23 = vmul.f32 %v5491_v62, %v5446_v10  ;;  %v5514_v53 = vmul.f32 %v6054_v63, %v5500_v30 }
0x1173   : > { %v5515_v9 = vmul.f32 %v6054_v63, %v5501_v36  ;;  %v5516_v59 = vmul.f32 %v6054_v63, %v5502_v0  ;;  %v5517_v5 = vmul.f32 %v6054_v63, %v5503_v13  ;;  %v5518_v54 = vmul.f32 %v6054_v63, %v5504_v6 }
0x1174   : > { %v5519_v28 = vmul.f32 %v6054_v63, %v5505_v14  ;;  %v5520_v2 = vmul.f32 %v6054_v63, %v5506_v18  ;;  %v5521_v45 = vmul.f32 %v6054_v63, %v5507_v23  ;;  %v5528_v20 = vadd.f32 %v6055_v34, %v5514_v53 }
0x1175   : > { %v5529_v41 = vadd.f32 %v6055_v34, %v5515_v9  ;;  %v5530_v35 = vadd.f32 %v6055_v34, %v5516_v59  ;;  %v5531_v37 = vadd.f32 %v6055_v34, %v5517_v5  ;;  %v5532_v47 = vadd.f32 %v6055_v34, %v5518_v54 }
0x1176   : > { %v5533_v29 = vadd.f32 %v6055_v34, %v5519_v28  ;;  %v5534_v27 = vadd.f32 %v6055_v34, %v5520_v2  ;;  %v5535_v44 = vadd.f32 %v6055_v34, %v5521_v45 }
0x1177   : > { %v5555_v38 = vrot.slane %v5529_v41, 7  ;;  %v5557_v10 = vrot.slane %v5530_v35, 6  ;;  %v5559_v46 = vrot.slane %v5531_v37, 5  ;;  %v5561_v52 = vrot.slane %v5532_v47, 4 }
0x1178   : > { %v5563_v21 = vrot.slane %v5533_v29, 3  ;;  %v5565_v16 = vrot.slane %v5534_v27, 2  ;;  %v5567_v48 = vrot.slane %v5535_v44, 1 }
0x1179   : > { %v5556_v56 = vsel %vm631_vm2, %v5555_v38, %v5528_v20 }
0x117a   : > { %v5558_v32 = vsel %vm633_vm3, %v5557_v10, %v5556_v56 }
0x117b   : > { %v5560_v61 = vsel %vm635_vm4, %v5559_v46, %v5558_v32 }
0x117c   : > { %v5562_v19 = vsel %vm637_vm5, %v5561_v52, %v5560_v61 }
0x117d   : > { %v5564_v7 = vsel %vm639_vm6, %v5563_v21, %v5562_v19 }
0x117e   : > { %v5566_v8 = vsel %vm641_vm7, %v5565_v16, %v5564_v7 }
0x117f   : > { %v5568_v39 = vsel %vm643_vm8, %v5567_v48, %v5566_v8 }
0x1180   : > { %6785 = vmatmul.mubr.msk.f32.vlgmr.msra.gmra.mrb[98].mxu0 %vm546_vm1, %v5568_v39 }
0x1253   : > { %v5637_v3 = vpop.f32.mrb[98].mxu0 }
0x1254   : > { %v5638_v1 = vadd.f32 %v6056_v43, %v5637_v3  ;;  %v6786_v57 = vpop.f32.mrb[99].mxu0 }
0x1256   : > { %vm5641_vm2 = vcmp.ge.f32.partialorder %v5638_v1, 0.0  ;;  %v5642_v4 = vmul.f32 0.01, %v5638_v1 }
0x1258   : > { %v5643_v15 = vsel %vm5641_vm2, %v5638_v1, %v5642_v4 }
0x1259   : > { %5644 = vst [vmem:[%s522_s20] sm:$0xff] %v5643_v15 }
0x125a   : > { %7433 = shalt.err (!%p7430_p0)
}
0x125b   : > { %s7434_s24 = scalar_lea.hbm %s9374_s15, 128  ;;  %s7438_s21 = scalar_lea.hbm %s9469_s28, 256 }
0x125c   : > { %p7435_p10 = scmp.ne.s32.totalorder %s9374_s15, %s7434_s24  ;;  %p7439_p4 = scmp.lt.u32.totalorder %s9374_s15, %s9469_s28 }
0x125d   : > { %p7440_p12 = scmp.lt.u32.totalorder %s7438_s21, %s7434_s24  ;;  %p7442_p8 = scmp.lt.u32.totalorder %s7434_s24, %s9374_s15 }
0x125e   : > { %p7436_p2 = pnand %p7435_p10, %p9470_p11 }
0x125f   : > { %p7441_p7 = por %p7440_p12, %p7439_p4 }
0x1260   : > { %p7437_p3 = pneg %p7436_p2 }
0x1261   : > { %p7443_p13 = por %p7442_p8, %p7441_p7 }
0x1263   : > { %p7444_p1 = pnand %p7443_p13, %p7437_p3 }
0x1265   : > { %7447 = shalt.err (!%p7444_p1)
}
0x1266   : > { %6947 = dma.vmem_to_hbm [thread:$0]  (%p9470_p11), %s9376_s13, 128, %s9374_s15, %s5646_s19  }
0x1267 PF: > { %s9471_s20 = sld [smem:[#allocation18_spill]]  ;;  %s9472_s16 = sld [smem:[#allocation15_spill]] }
0x1268   : > { %s9473_s25 = sld [smem:[#allocation22_spill]] }
0x126d   : > { %p6974_p6 = scmp.ge.s32.totalorder %s9471_s20, 2  ;;  %s5671_s14 = sand.u32 1, %s9472_s16  }
0x126e   : > { %p9474_p9 = scmp.ne.s32.totalorder %s9473_s25, 0  ;;  %s5672_s17 = scalar_lea.sflag [#allocation4], %s5671_s14 }
0x1270   : > { %p6963_p5 = pnand %p6974_p6, %p9474_p9 }
0x1272   : > { %7477 = dma.done.wait (!%p6963_p5), %s5672_s17, 128  }
0x1273   : > { %7479 = vsyncadd (!%p6963_p5), %s5672_s17, 4294967168  ;;  %s9475_s16 = sld [smem:[#allocation19_spill]]  ;;  %s9476_s29 = sld [smem:[#allocation16_spill]] }
0x1274   : > { %s9477_s30 = sld [smem:[#allocation17_spill]]  ;;  %s9478_s15 = sld [smem:[#allocation20_spill]] }
0x1279   : > { %p27_p0 = scmp.ge.s32.totalorder %s9475_s16, 4  }
0x127b   :  { %29 = sbr.rel (!%p27_p0) target bundleno = 9 (0x9), region = 146 }
0x1282   :  { %5677 = vsyncpa [#allocation3], 1 }
0x1283   :  { %5679 = vsyncpa [#allocation3 + $0x1], 1 }
0x1284   :  { %5680 = vsyncpa [#allocation6], 1 }
0x1285   :  { %5681 = vsyncpa [#allocation9], 1 }
0x1286   :  { %5682 = vsyncpa [#allocation4], 1 }
0x1287   :  { %5684 = vsyncpa [#allocation4 + $0x1], 1 }

</bundles_post_ra>
